<compile_context>
chip_gen: v7x
topology: tpu7x:2x2x1
jax: 0.10.0
libtpu: 0.0.40
codegen_flags: <defaults>
</compile_context>

<pallas_src>
import functools

import jax
import jax.numpy as jnp
from jax import lax
from jax.experimental import pallas as pl
from jax.experimental.pallas import tpu as pltpu


# ----------------------------- Pallas kernel --------------------------------


def _encoder_block_kernel(*refs, num_tn, h, w, kh, kw, pad_hw, eps):
    # refs = (xp, wband, bias, gamma, beta, tn_w0, tn_b0, ..., out, yn_scratch)
    # xp    : (Hp, Wp, T*Cin_g)   spatially 'same'-padded input, one (batch, group)
    # wband : (KH, KW, T*Cin_g, T*Cout_g)  temporal taps banded into the contraction
    # bias/gamma/beta : (1, T*Cout_g)
    # tn_w_j: (Tin_j*Cg, Tout_j*Cg)  block-diagonal temporal-mix weight (VMEM)
    # tn_b_j: (1, Tout_j*Cg)
    # out   : (H2//2, W2//2, Tlast*Cg)
    # yn    : (H2, W2, T*Cout_g) VMEM scratch (only touched when pad_hw)
    xp_ref, w_ref, b_ref, gamma_ref, beta_ref = refs[:5]
    tn_refs = refs[5:5 + 2 * num_tn]
    o_ref = refs[5 + 2 * num_tn]
    yn_ref = refs[6 + 2 * num_tn]

    kin = xp_ref.shape[-1]                     # T * Cin_g
    n = b_ref.shape[-1]                        # T * Cout_g
    pad_i = 1 if pad_hw else 0
    h2, w2 = h + pad_i, w + pad_i
    hh, wh = h2 // 2, w2 // 2
    n_el = h2 * w2 * n

    # ---- Conv3d('same') + bias + ReLU: KH*KW large MXU dots (temporal taps banded) ----
    acc = jnp.zeros((h * w, n), jnp.float32)
    for i in range(kh):                        # fully unrolled: 9 dots per (batch, group)
        for j in range(kw):
            xs = xp_ref[i:i + h, j:j + w, :].reshape(h * w, kin)
            acc = acc + jnp.dot(xs, w_ref[i, j], preferred_element_type=jnp.float32)
    y = jnp.maximum(acc + b_ref[...], 0.0)     # (H*W, T*Cout_g), bias + ReLU once

    # ---- GroupNorm over the whole (batch, group) block (two-pass, pad-aware) ----
    mean = jnp.sum(y) / n_el
    d = y - mean
    n_pad = n_el - h * w * n                   # fused-ZeroPad2d zeros in the statistics
    var = (jnp.sum(d * d) + n_pad * (mean * mean)) / n_el
    inv = lax.rsqrt(var + eps)
    scale = gamma_ref[...] * inv               # computed once, broadcast over rows
    yn = d * scale + beta_ref[...]             # (H*W, T*Cout_g)

    # ---- fused ZeroPad2d((0,1,0,1)): a zero cell normalizes to beta - mean*scale ----
    if pad_hw:
        shift = (beta_ref[...] - mean * scale).reshape(1, 1, n)
        yn_ref[...] = jnp.broadcast_to(shift, (h2, w2, n))
        yn_ref[0:h, 0:w, :] = yn.reshape(h, w, n)
        ynp = yn_ref[...]
    else:
        ynp = yn.reshape(h, w, n)

    # ---- MaxPool3d((1,2,2)), once on the whole block ----
    m = jnp.max(ynp.reshape(hh, 2, w2, n), axis=1)    # H pool: splits the major dim (free)
    p = jnp.max(m.reshape(hh, wh, 2, n), axis=2)      # W pool: single reshape + pairwise max

    # ---- PointWiseTN chain: one lane-dense MXU matmul per layer ----
    z = p.reshape(hh * wh, n)
    for j in range(num_tn):
        z = jnp.dot(z, tn_refs[2 * j][...],
                    preferred_element_type=jnp.float32) + tn_refs[2 * j + 1][...]
        if j < num_tn - 1:
            z = jnp.maximum(z, 0.0)
    o_ref[...] = z.reshape(hh, wh, z.shape[-1])       # single lane-dense store


# ----------------------------- wrappers (glue) ------------------------------


def _build_conv_band(conv_w, groups, t):
    """(Cout, Cin_g, KT, KH, KW) torch weight -> (G, KH, KW, T*Cin_g, T*Cout_g) band.

    band[ti*Cin_g + ci, to*Cout_g + co] = w[co, ci, kt, kh, kw] with ti = to + kt - pt,
    rows clipped at the temporal boundary, so the temporal 'same' convolution (incl.
    its zero padding) happens inside the matmul and the input needs no temporal pad.
    """
    cout, cin_g, kt_sz, kh, kw = conv_w.shape
    g = groups
    cout_g = cout // g
    pt = (kt_sz - 1) // 2
    wk = jnp.transpose(conv_w.reshape(g, cout_g, cin_g, kt_sz, kh, kw), (0, 4, 5, 3, 2, 1))
    band = jnp.zeros((g, kh, kw, t, cin_g, t, cout_g), conv_w.dtype)
    for to in range(t):                        # static trace-time loops
        for kt in range(kt_sz):
            ti = to + kt - pt
            if 0 <= ti < t:
                band = band.at[:, :, :, ti, :, to, :].set(wk[:, :, :, kt])
    return band.reshape(g, kh, kw, t * cin_g, t * cout_g)


def _tile_over_t(v, groups, t):
    """(C,) per-channel parameter -> (G, 1, T*Cg) matching the (..., T*Cg) lane layout."""
    g = groups
    cg = v.shape[0] // g
    return jnp.broadcast_to(v.reshape(g, 1, cg), (g, t, cg)).reshape(g, 1, t * cg)


@functools.partial(jax.jit, static_argnames=("num_hidden_layers", "pad_flags", "eps"))
def encoder_forward_pallas(x_ncthw, params, *, num_hidden_layers, pad_flags, eps=1e-5):
    """x_ncthw: (B, C, T, H, W) -> tuple of per-block outputs in PyTorch layout."""
    g = num_hidden_layers
    bsz, c0, t, h, w = x_ncthw.shape
    cg = c0 // g
    # (B, C, T, H, W) -> (B, G, H, W, T*Cg): group split, lane axis = T*Cg (lane-dense).
    x5 = jnp.transpose(x_ncthw.reshape(bsz, g, cg, t, h, w),
                       (0, 1, 4, 5, 3, 2)).reshape(bsz, g, h, w, t * cg)

    outs = []
    for blk, pad_hw in zip(params, pad_flags):
        conv_w, conv_b = blk["conv_w"], blk["conv_b"]
        cout, cin_g, kt, kh, kw = conv_w.shape
        cout_g = cout // g
        bsz, _, h, w, _ = x5.shape

        # spatial-only 'same' pad (temporal pad is folded into the banded weight)
        ph, pw = (kh - 1) // 2, (kw - 1) // 2
        xp = jnp.pad(x5, ((0, 0), (0, 0), (ph, kh - 1 - ph), (pw, kw - 1 - pw), (0, 0)))
        hp, wp = h + kh - 1, w + kw - 1
        kin = t * cin_g
        n = t * cout_g

        wband = _build_conv_band(conv_w, g, t)           # (G, KH, KW, T*Cin_g, T*Cout_g)
        b2 = _tile_over_t(conv_b, g, t)                  # (G, 1, T*Cout_g)
        gamma2 = _tile_over_t(blk["gn_gamma"], g, t)
        beta2 = _tile_over_t(blk["gn_beta"], g, t)

        eye = jnp.eye(cout_g, dtype=jnp.float32)
        tn_args, t_last = [], t
        for wt_, bt_ in zip(blk["tn_w"], blk["tn_b"]):
            tn_args.append(jnp.kron(wt_, eye))           # (Tin*Cg, Tout*Cg) block-diagonal
            tn_args.append(jnp.repeat(bt_, cout_g).reshape(1, -1))
            t_last = wt_.shape[1]
        num_tn = len(blk["tn_w"])
        n_last = t_last * cout_g

        pad_i = 1 if pad_hw else 0
        h2, w2 = h + pad_i, w + pad_i
        hh, wh = h2 // 2, w2 // 2

        in_specs = [
            pl.BlockSpec((None, None, hp, wp, kin), lambda b, gi: (b, gi, 0, 0, 0)),
            pl.BlockSpec((None, kh, kw, kin, n), lambda b, gi: (gi, 0, 0, 0, 0)),
            pl.BlockSpec((None, 1, n), lambda b, gi: (gi, 0, 0)),
            pl.BlockSpec((None, 1, n), lambda b, gi: (gi, 0, 0)),
            pl.BlockSpec((None, 1, n), lambda b, gi: (gi, 0, 0)),
        ]
        in_specs += [pl.BlockSpec(a.shape, lambda b, gi: (0, 0)) for a in tn_args]

        z = pl.pallas_call(
            functools.partial(_encoder_block_kernel, num_tn=num_tn, h=h, w=w,
                              kh=kh, kw=kw, pad_hw=pad_hw, eps=eps),
            out_shape=jax.ShapeDtypeStruct((bsz, g, hh, wh, n_last), jnp.float32),
            grid=(bsz, g),
            in_specs=in_specs,
            out_specs=pl.BlockSpec((None, None, hh, wh, n_last),
                                   lambda b, gi: (b, gi, 0, 0, 0)),
            scratch_shapes=[pltpu.VMEM((h2, w2, n), jnp.float32)],
            compiler_params=pltpu.CompilerParams(
                dimension_semantics=("parallel", "parallel")),
        )(xp, wband, b2, gamma2, beta2, *tn_args)

        # next block consumes the same lane-dense (B, G, H', W', T*Cg) layout directly
        x5 = z
        t = t_last
        # per-block output back to PyTorch (B, C, T, H, W) layout
        outs.append(jnp.transpose(z.reshape(bsz, g, hh, wh, t_last, cout_g),
                                  (0, 1, 5, 4, 2, 3))
                    .reshape(bsz, g * cout_g, t_last, hh, wh))
    return tuple(outs)


# --------------------------- pure-JAX reference -----------------------------


def encoder_forward_reference(x, params, num_hidden_layers, pad_flags, eps=1e-5):
    outs = []
    g = num_hidden_layers
    for blk, pad_hw in zip(params, pad_flags):
        w, b = blk["conv_w"], blk["conv_b"]
        kt, kh, kw = w.shape[2], w.shape[3], w.shape[4]
        pads = [((k - 1) // 2, k - 1 - (k - 1) // 2) for k in (kt, kh, kw)]
        y = lax.conv_general_dilated(
            x, w, window_strides=(1, 1, 1), padding=pads,
            dimension_numbers=("NCDHW", "OIDHW", "NCDHW"),
            feature_group_count=g, precision=lax.Precision.HIGHEST)
        y = jnp.maximum(y + b[None, :, None, None, None], 0.0)
        if pad_hw:
            y = jnp.pad(y, ((0, 0), (0, 0), (0, 0), (0, 1), (0, 1)))
        bsz, c, t, h, wd = y.shape
        yg = y.reshape(bsz, g, -1)
        mu = jnp.mean(yg, axis=-1, keepdims=True)
        var = jnp.var(yg, axis=-1, keepdims=True)
        yn = ((yg - mu) / jnp.sqrt(var + eps)).reshape(bsz, c, t, h, wd)
        yn = (yn * blk["gn_gamma"][None, :, None, None, None]
              + blk["gn_beta"][None, :, None, None, None])
        y = lax.reduce_window(yn, -jnp.inf, lax.max,
                              (1, 1, 1, 2, 2), (1, 1, 1, 2, 2), "VALID")
        n_tn = len(blk["tn_w"])
        for j, (wt, bt) in enumerate(zip(blk["tn_w"], blk["tn_b"])):
            y = jnp.einsum("bcthw,ts->bcshw", y, wt, precision=lax.Precision.HIGHEST)
            y = y + bt[None, None, :, None, None]
            if j < n_tn - 1:
                y = jnp.maximum(y, 0.0)
        x = y
        outs.append(y)
    return tuple(outs)


# ------------------------------ param init ----------------------------------


def init_encoder_params(key, spatial_channels, temporal_channels_list, kernel_size,
                        num_hidden_layers, patch_per_side):
    params, pad_flags = [], []
    pps = patch_per_side
    g = num_hidden_layers
    for (sc_in, sc_out), t_channels in zip(spatial_channels, temporal_channels_list):
        cin = sc_in * g
        cout = sc_out * g
        key, k1, k2, k3, k4 = jax.random.split(key, 5)
        conv_w = 0.1 * jax.random.normal(
            k1, (cout, cin // g) + tuple(kernel_size), jnp.float32)
        conv_b = 0.1 * jax.random.normal(k2, (cout,), jnp.float32)
        gamma = 1.0 + 0.1 * jax.random.normal(k3, (cout,), jnp.float32)
        beta = 0.1 * jax.random.normal(k4, (cout,), jnp.float32)
        pad_hw = bool(pps % 2)
        if pad_hw:
            pps += 1
        pps //= 2
        tn_w, tn_b = [], []
        for t_in, t_out in zip(t_channels[:-1], t_channels[1:]):
            key, kw_, kb_ = jax.random.split(key, 3)
            tn_w.append(0.1 * jax.random.normal(kw_, (t_in, t_out), jnp.float32))
            tn_b.append(0.1 * jax.random.normal(kb_, (t_out,), jnp.float32))
        params.append(dict(conv_w=conv_w, conv_b=conv_b, gn_gamma=gamma, gn_beta=beta,
                           tn_w=tn_w, tn_b=tn_b))
        pad_flags.append(pad_hw)
    return params, tuple(pad_flags)


# --------------------------------- main --------------------------------------


if __name__ == "__main__":
    key = jax.random.PRNGKey(0)
    B, T, HW = 2, 8, 16
    num_hidden_layers = 2                      # exercises the grouped (grid) path
    spatial_channels = [(4, 8), (8, 16)]
    temporal_channels_list = [[T, T], [T, T]]
    kernel_size = (3, 3, 3)

    key, kp, kx = jax.random.split(key, 3)
    params, pad_flags = init_encoder_params(
        kp, spatial_channels, temporal_channels_list, kernel_size,
        num_hidden_layers, patch_per_side=HW)
    cin0 = spatial_channels[0][0] * num_hidden_layers
    x = jax.random.normal(kx, (B, cin0, T, HW, HW), jnp.float32)

    outs = jax.block_until_ready(
        encoder_forward_pallas(x, params, num_hidden_layers=num_hidden_layers,
                               pad_flags=pad_flags))
    refs = jax.block_until_ready(
        encoder_forward_reference(x, params, num_hidden_layers, pad_flags))

    assert len(outs) == len(refs) == len(params)
    for o, r in zip(outs, refs):
        assert o.shape == r.shape, (o.shape, r.shape)
        err = float(jnp.max(jnp.abs(o - r)))
        # Kernels use default (single-pass) MXU precision vs. a HIGHEST-precision
        # reference, so allow a few bf16-class ulps of accumulated error.
        assert err < 3e-2, f"mismatch: max abs err = {err}"

    print("KERNEL_OK")
</pallas_src>

<mosaic_0001>
module attributes {stable_mosaic.version = 11 : i64} {
  func.func @_encoder_block_kernel(%arg0: i32, %arg1: i32, %arg2: memref<1x1x18x18x32xf32, #tpu.memory_space<vmem>>, %arg3: memref<1x3x3x32x64xf32, #tpu.memory_space<vmem>>, %arg4: memref<1x1x64xf32, #tpu.memory_space<vmem>>, %arg5: memref<1x1x64xf32, #tpu.memory_space<vmem>>, %arg6: memref<1x1x64xf32, #tpu.memory_space<vmem>>, %arg7: memref<64x64xf32, #tpu.memory_space<vmem>>, %arg8: memref<1x64xf32, #tpu.memory_space<vmem>>, %arg9: memref<1x1x8x8x64xf32, #tpu.memory_space<vmem>>, %arg10: memref<16x16x64xf32, #tpu.memory_space<vmem>>) attributes {dimension_semantics = [#tpu.dimension_semantics<parallel>, #tpu.dimension_semantics<parallel>], iteration_bounds = array<i64: 2, 2>, scalar_prefetch = 0 : i64, scratch_operands = 1 : i64, tpu.core_type = #tpu.core_type<tc>, window_params = [{transform_indices = @transform_0, window_bounds = array<i64: 1, 1, 18, 18, 32>}, {transform_indices = @transform_1, window_bounds = array<i64: 1, 3, 3, 32, 64>}, {transform_indices = @transform_2, window_bounds = array<i64: 1, 1, 64>}, {transform_indices = @transform_3, window_bounds = array<i64: 1, 1, 64>}, {transform_indices = @transform_4, window_bounds = array<i64: 1, 1, 64>}, {pipeline_mode = #tpu.pipeline_mode<synchronous>, transform_indices = @transform_5, window_bounds = array<i64: 64, 64>}, {pipeline_mode = #tpu.pipeline_mode<synchronous>, transform_indices = @transform_6, window_bounds = array<i64: 1, 64>}, {transform_indices = @transform_7, window_bounds = array<i64: 1, 1, 8, 8, 64>}]} {
    %cst = arith.constant 0.000000e+00 : f32
    %0 = vector.broadcast %cst : f32 to vector<256x64xf32>
    %c0 = arith.constant 0 : index
    %c0_0 = arith.constant 0 : index
    %c0_1 = arith.constant 0 : index
    %c0_2 = arith.constant 0 : index
    %c0_3 = arith.constant 0 : index
    %1 = vector.load %arg2[%c0, %c0_0, %c0_1, %c0_2, %c0_3] : memref<1x1x18x18x32xf32, #tpu.memory_space<vmem>>, vector<1x1x16x16x32xf32>
    %2 = vector.shape_cast %1 : vector<1x1x16x16x32xf32> to vector<16x16x32xf32>
    %3 = vector.shape_cast %2 : vector<16x16x32xf32> to vector<256x32xf32>
    %c0_4 = arith.constant 0 : index
    %c0_5 = arith.constant 0 : index
    %c0_6 = arith.constant 0 : index
    %c0_7 = arith.constant 0 : index
    %c0_8 = arith.constant 0 : index
    %4 = vector.load %arg3[%c0_4, %c0_5, %c0_6, %c0_7, %c0_8] : memref<1x3x3x32x64xf32, #tpu.memory_space<vmem>>, vector<1x1x1x32x64xf32>
    %5 = vector.shape_cast %4 : vector<1x1x1x32x64xf32> to vector<32x64xf32>
    %cst_9 = arith.constant dense<0.000000e+00> : vector<256x64xf32>
    %6 = tpu.matmul %3, %5, %cst_9 {dimension_numbers = #tpu.dot_dimension_numbers<[1], [0], [0], [1], [0, 0, 1, 1], [], []>} : vector<256x32xf32>, vector<32x64xf32>, vector<256x64xf32> -> vector<256x64xf32>
    %7 = arith.addf %0, %6 : vector<256x64xf32>
    %c0_10 = arith.constant 0 : index
    %c0_11 = arith.constant 0 : index
    %c0_12 = arith.constant 0 : index
    %c1 = arith.constant 1 : index
    %c0_13 = arith.constant 0 : index
    %8 = vector.load %arg2[%c0_10, %c0_11, %c0_12, %c1, %c0_13] : memref<1x1x18x18x32xf32, #tpu.memory_space<vmem>>, vector<1x1x16x16x32xf32>
    %9 = vector.shape_cast %8 : vector<1x1x16x16x32xf32> to vector<16x16x32xf32>
    %10 = vector.shape_cast %9 : vector<16x16x32xf32> to vector<256x32xf32>
    %c0_14 = arith.constant 0 : index
    %c0_15 = arith.constant 0 : index
    %c1_16 = arith.constant 1 : index
    %c0_17 = arith.constant 0 : index
    %c0_18 = arith.constant 0 : index
    %11 = vector.load %arg3[%c0_14, %c0_15, %c1_16, %c0_17, %c0_18] : memref<1x3x3x32x64xf32, #tpu.memory_space<vmem>>, vector<1x1x1x32x64xf32>
    %12 = vector.shape_cast %11 : vector<1x1x1x32x64xf32> to vector<32x64xf32>
    %cst_19 = arith.constant dense<0.000000e+00> : vector<256x64xf32>
    %13 = tpu.matmul %10, %12, %cst_19 {dimension_numbers = #tpu.dot_dimension_numbers<[1], [0], [0], [1], [0, 0, 1, 1], [], []>} : vector<256x32xf32>, vector<32x64xf32>, vector<256x64xf32> -> vector<256x64xf32>
    %14 = arith.addf %7, %13 : vector<256x64xf32>
    %c0_20 = arith.constant 0 : index
    %c0_21 = arith.constant 0 : index
    %c0_22 = arith.constant 0 : index
    %c2 = arith.constant 2 : index
    %c0_23 = arith.constant 0 : index
    %15 = vector.load %arg2[%c0_20, %c0_21, %c0_22, %c2, %c0_23] : memref<1x1x18x18x32xf32, #tpu.memory_space<vmem>>, vector<1x1x16x16x32xf32>
    %16 = vector.shape_cast %15 : vector<1x1x16x16x32xf32> to vector<16x16x32xf32>
    %17 = vector.shape_cast %16 : vector<16x16x32xf32> to vector<256x32xf32>
    %c0_24 = arith.constant 0 : index
    %c0_25 = arith.constant 0 : index
    %c2_26 = arith.constant 2 : index
    %c0_27 = arith.constant 0 : index
    %c0_28 = arith.constant 0 : index
    %18 = vector.load %arg3[%c0_24, %c0_25, %c2_26, %c0_27, %c0_28] : memref<1x3x3x32x64xf32, #tpu.memory_space<vmem>>, vector<1x1x1x32x64xf32>
    %19 = vector.shape_cast %18 : vector<1x1x1x32x64xf32> to vector<32x64xf32>
    %cst_29 = arith.constant dense<0.000000e+00> : vector<256x64xf32>
    %20 = tpu.matmul %17, %19, %cst_29 {dimension_numbers = #tpu.dot_dimension_numbers<[1], [0], [0], [1], [0, 0, 1, 1], [], []>} : vector<256x32xf32>, vector<32x64xf32>, vector<256x64xf32> -> vector<256x64xf32>
    %21 = arith.addf %14, %20 : vector<256x64xf32>
    %c0_30 = arith.constant 0 : index
    %c0_31 = arith.constant 0 : index
    %c1_32 = arith.constant 1 : index
    %c0_33 = arith.constant 0 : index
    %c0_34 = arith.constant 0 : index
    %22 = vector.load %arg2[%c0_30, %c0_31, %c1_32, %c0_33, %c0_34] : memref<1x1x18x18x32xf32, #tpu.memory_space<vmem>>, vector<1x1x16x16x32xf32>
    %23 = vector.shape_cast %22 : vector<1x1x16x16x32xf32> to vector<16x16x32xf32>
    %24 = vector.shape_cast %23 : vector<16x16x32xf32> to vector<256x32xf32>
    %c0_35 = arith.constant 0 : index
    %c1_36 = arith.constant 1 : index
    %c0_37 = arith.constant 0 : index
    %c0_38 = arith.constant 0 : index
    %c0_39 = arith.constant 0 : index
    %25 = vector.load %arg3[%c0_35, %c1_36, %c0_37, %c0_38, %c0_39] : memref<1x3x3x32x64xf32, #tpu.memory_space<vmem>>, vector<1x1x1x32x64xf32>
    %26 = vector.shape_cast %25 : vector<1x1x1x32x64xf32> to vector<32x64xf32>
    %cst_40 = arith.constant dense<0.000000e+00> : vector<256x64xf32>
    %27 = tpu.matmul %24, %26, %cst_40 {dimension_numbers = #tpu.dot_dimension_numbers<[1], [0], [0], [1], [0, 0, 1, 1], [], []>} : vector<256x32xf32>, vector<32x64xf32>, vector<256x64xf32> -> vector<256x64xf32>
    %28 = arith.addf %21, %27 : vector<256x64xf32>
    %c0_41 = arith.constant 0 : index
    %c0_42 = arith.constant 0 : index
    %c1_43 = arith.constant 1 : index
    %c1_44 = arith.constant 1 : index
    %c0_45 = arith.constant 0 : index
    %29 = vector.load %arg2[%c0_41, %c0_42, %c1_43, %c1_44, %c0_45] : memref<1x1x18x18x32xf32, #tpu.memory_space<vmem>>, vector<1x1x16x16x32xf32>
    %30 = vector.shape_cast %29 : vector<1x1x16x16x32xf32> to vector<16x16x32xf32>
    %31 = vector.shape_cast %30 : vector<16x16x32xf32> to vector<256x32xf32>
    %c0_46 = arith.constant 0 : index
    %c1_47 = arith.constant 1 : index
    %c1_48 = arith.constant 1 : index
    %c0_49 = arith.constant 0 : index
    %c0_50 = arith.constant 0 : index
    %32 = vector.load %arg3[%c0_46, %c1_47, %c1_48, %c0_49, %c0_50] : memref<1x3x3x32x64xf32, #tpu.memory_space<vmem>>, vector<1x1x1x32x64xf32>
    %33 = vector.shape_cast %32 : vector<1x1x1x32x64xf32> to vector<32x64xf32>
    %cst_51 = arith.constant dense<0.000000e+00> : vector<256x64xf32>
    %34 = tpu.matmul %31, %33, %cst_51 {dimension_numbers = #tpu.dot_dimension_numbers<[1], [0], [0], [1], [0, 0, 1, 1], [], []>} : vector<256x32xf32>, vector<32x64xf32>, vector<256x64xf32> -> vector<256x64xf32>
    %35 = arith.addf %28, %34 : vector<256x64xf32>
    %c0_52 = arith.constant 0 : index
    %c0_53 = arith.constant 0 : index
    %c1_54 = arith.constant 1 : index
    %c2_55 = arith.constant 2 : index
    %c0_56 = arith.constant 0 : index
    %36 = vector.load %arg2[%c0_52, %c0_53, %c1_54, %c2_55, %c0_56] : memref<1x1x18x18x32xf32, #tpu.memory_space<vmem>>, vector<1x1x16x16x32xf32>
    %37 = vector.shape_cast %36 : vector<1x1x16x16x32xf32> to vector<16x16x32xf32>
    %38 = vector.shape_cast %37 : vector<16x16x32xf32> to vector<256x32xf32>
    %c0_57 = arith.constant 0 : index
    %c1_58 = arith.constant 1 : index
    %c2_59 = arith.constant 2 : index
    %c0_60 = arith.constant 0 : index
    %c0_61 = arith.constant 0 : index
    %39 = vector.load %arg3[%c0_57, %c1_58, %c2_59, %c0_60, %c0_61] : memref<1x3x3x32x64xf32, #tpu.memory_space<vmem>>, vector<1x1x1x32x64xf32>
    %40 = vector.shape_cast %39 : vector<1x1x1x32x64xf32> to vector<32x64xf32>
    %cst_62 = arith.constant dense<0.000000e+00> : vector<256x64xf32>
    %41 = tpu.matmul %38, %40, %cst_62 {dimension_numbers = #tpu.dot_dimension_numbers<[1], [0], [0], [1], [0, 0, 1, 1], [], []>} : vector<256x32xf32>, vector<32x64xf32>, vector<256x64xf32> -> vector<256x64xf32>
    %42 = arith.addf %35, %41 : vector<256x64xf32>
    %c0_63 = arith.constant 0 : index
    %c0_64 = arith.constant 0 : index
    %c2_65 = arith.constant 2 : index
    %c0_66 = arith.constant 0 : index
    %c0_67 = arith.constant 0 : index
    %43 = vector.load %arg2[%c0_63, %c0_64, %c2_65, %c0_66, %c0_67] : memref<1x1x18x18x32xf32, #tpu.memory_space<vmem>>, vector<1x1x16x16x32xf32>
    %44 = vector.shape_cast %43 : vector<1x1x16x16x32xf32> to vector<16x16x32xf32>
    %45 = vector.shape_cast %44 : vector<16x16x32xf32> to vector<256x32xf32>
    %c0_68 = arith.constant 0 : index
    %c2_69 = arith.constant 2 : index
    %c0_70 = arith.constant 0 : index
    %c0_71 = arith.constant 0 : index
    %c0_72 = arith.constant 0 : index
    %46 = vector.load %arg3[%c0_68, %c2_69, %c0_70, %c0_71, %c0_72] : memref<1x3x3x32x64xf32, #tpu.memory_space<vmem>>, vector<1x1x1x32x64xf32>
    %47 = vector.shape_cast %46 : vector<1x1x1x32x64xf32> to vector<32x64xf32>
    %cst_73 = arith.constant dense<0.000000e+00> : vector<256x64xf32>
    %48 = tpu.matmul %45, %47, %cst_73 {dimension_numbers = #tpu.dot_dimension_numbers<[1], [0], [0], [1], [0, 0, 1, 1], [], []>} : vector<256x32xf32>, vector<32x64xf32>, vector<256x64xf32> -> vector<256x64xf32>
    %49 = arith.addf %42, %48 : vector<256x64xf32>
    %c0_74 = arith.constant 0 : index
    %c0_75 = arith.constant 0 : index
    %c2_76 = arith.constant 2 : index
    %c1_77 = arith.constant 1 : index
    %c0_78 = arith.constant 0 : index
    %50 = vector.load %arg2[%c0_74, %c0_75, %c2_76, %c1_77, %c0_78] : memref<1x1x18x18x32xf32, #tpu.memory_space<vmem>>, vector<1x1x16x16x32xf32>
    %51 = vector.shape_cast %50 : vector<1x1x16x16x32xf32> to vector<16x16x32xf32>
    %52 = vector.shape_cast %51 : vector<16x16x32xf32> to vector<256x32xf32>
    %c0_79 = arith.constant 0 : index
    %c2_80 = arith.constant 2 : index
    %c1_81 = arith.constant 1 : index
    %c0_82 = arith.constant 0 : index
    %c0_83 = arith.constant 0 : index
    %53 = vector.load %arg3[%c0_79, %c2_80, %c1_81, %c0_82, %c0_83] : memref<1x3x3x32x64xf32, #tpu.memory_space<vmem>>, vector<1x1x1x32x64xf32>
    %54 = vector.shape_cast %53 : vector<1x1x1x32x64xf32> to vector<32x64xf32>
    %cst_84 = arith.constant dense<0.000000e+00> : vector<256x64xf32>
    %55 = tpu.matmul %52, %54, %cst_84 {dimension_numbers = #tpu.dot_dimension_numbers<[1], [0], [0], [1], [0, 0, 1, 1], [], []>} : vector<256x32xf32>, vector<32x64xf32>, vector<256x64xf32> -> vector<256x64xf32>
    %56 = arith.addf %49, %55 : vector<256x64xf32>
    %c0_85 = arith.constant 0 : index
    %c0_86 = arith.constant 0 : index
    %c2_87 = arith.constant 2 : index
    %c2_88 = arith.constant 2 : index
    %c0_89 = arith.constant 0 : index
    %57 = vector.load %arg2[%c0_85, %c0_86, %c2_87, %c2_88, %c0_89] : memref<1x1x18x18x32xf32, #tpu.memory_space<vmem>>, vector<1x1x16x16x32xf32>
    %58 = vector.shape_cast %57 : vector<1x1x16x16x32xf32> to vector<16x16x32xf32>
    %59 = vector.shape_cast %58 : vector<16x16x32xf32> to vector<256x32xf32>
    %c0_90 = arith.constant 0 : index
    %c2_91 = arith.constant 2 : index
    %c2_92 = arith.constant 2 : index
    %c0_93 = arith.constant 0 : index
    %c0_94 = arith.constant 0 : index
    %60 = vector.load %arg3[%c0_90, %c2_91, %c2_92, %c0_93, %c0_94] : memref<1x3x3x32x64xf32, #tpu.memory_space<vmem>>, vector<1x1x1x32x64xf32>
    %61 = vector.shape_cast %60 : vector<1x1x1x32x64xf32> to vector<32x64xf32>
    %cst_95 = arith.constant dense<0.000000e+00> : vector<256x64xf32>
    %62 = tpu.matmul %59, %61, %cst_95 {dimension_numbers = #tpu.dot_dimension_numbers<[1], [0], [0], [1], [0, 0, 1, 1], [], []>} : vector<256x32xf32>, vector<32x64xf32>, vector<256x64xf32> -> vector<256x64xf32>
    %63 = arith.addf %56, %62 : vector<256x64xf32>
    %c0_96 = arith.constant 0 : index
    %c0_97 = arith.constant 0 : index
    %c0_98 = arith.constant 0 : index
    %64 = vector.load %arg4[%c0_96, %c0_97, %c0_98] : memref<1x1x64xf32, #tpu.memory_space<vmem>>, vector<1x1x64xf32>
    %65 = vector.shape_cast %64 : vector<1x1x64xf32> to vector<1x64xf32>
    %66 = vector.broadcast %65 : vector<1x64xf32> to vector<256x64xf32>
    %67 = arith.addf %63, %66 : vector<256x64xf32>
    %cst_99 = arith.constant 0.000000e+00 : f32
    %68 = vector.broadcast %cst_99 : f32 to vector<256x64xf32>
    %69 = arith.maximumf %67, %68 : vector<256x64xf32>
    %70 = vector.shape_cast %69 : vector<256x64xf32> to vector<1x256x64xf32>
    %cst_100 = arith.constant dense<0.000000e+00> : vector<1xf32>
    %71 = vector.multi_reduction <add>, %70, %cst_100 [1, 2] : vector<1x256x64xf32> to vector<1xf32>
    %72 = vector.shape_cast %71 : vector<1xf32> to vector<1x1x1xf32>
    %73 = vector.extract %72[0, 0, 0] : f32 from vector<1x1x1xf32>
    %cst_101 = arith.constant 1.638400e+04 : f32
    %74 = arith.divf %73, %cst_101 : f32
    %75 = vector.broadcast %74 : f32 to vector<256x64xf32>
    %76 = arith.subf %69, %75 : vector<256x64xf32>
    %77 = arith.mulf %76, %76 : vector<256x64xf32>
    %78 = vector.shape_cast %77 : vector<256x64xf32> to vector<1x256x64xf32>
    %cst_102 = arith.constant dense<0.000000e+00> : vector<1xf32>
    %79 = vector.multi_reduction <add>, %78, %cst_102 [1, 2] : vector<1x256x64xf32> to vector<1xf32>
    %80 = vector.shape_cast %79 : vector<1xf32> to vector<1x1x1xf32>
    %81 = vector.extract %80[0, 0, 0] : f32 from vector<1x1x1xf32>
    %82 = arith.mulf %74, %74 : f32
    %cst_103 = arith.constant 0.000000e+00 : f32
    %83 = arith.mulf %cst_103, %82 : f32
    %84 = arith.addf %81, %83 : f32
    %cst_104 = arith.constant 1.638400e+04 : f32
    %85 = arith.divf %84, %cst_104 : f32
    %cst_105 = arith.constant 9.99999974E-6 : f32
    %86 = arith.addf %85, %cst_105 : f32
    %87 = math.rsqrt %86 : f32
    %c0_106 = arith.constant 0 : index
    %c0_107 = arith.constant 0 : index
    %c0_108 = arith.constant 0 : index
    %88 = vector.load %arg5[%c0_106, %c0_107, %c0_108] : memref<1x1x64xf32, #tpu.memory_space<vmem>>, vector<1x1x64xf32>
    %89 = vector.shape_cast %88 : vector<1x1x64xf32> to vector<1x64xf32>
    %90 = vector.broadcast %87 : f32 to vector<1x64xf32>
    %91 = arith.mulf %89, %90 : vector<1x64xf32>
    %92 = vector.broadcast %91 : vector<1x64xf32> to vector<256x64xf32>
    %93 = arith.mulf %76, %92 : vector<256x64xf32>
    %c0_109 = arith.constant 0 : index
    %c0_110 = arith.constant 0 : index
    %c0_111 = arith.constant 0 : index
    %94 = vector.load %arg6[%c0_109, %c0_110, %c0_111] : memref<1x1x64xf32, #tpu.memory_space<vmem>>, vector<1x1x64xf32>
    %95 = vector.shape_cast %94 : vector<1x1x64xf32> to vector<1x64xf32>
    %96 = vector.broadcast %95 : vector<1x64xf32> to vector<256x64xf32>
    %97 = arith.addf %93, %96 : vector<256x64xf32>
    %98 = vector.shape_cast %97 : vector<256x64xf32> to vector<16x16x64xf32>
    %99 = vector.shape_cast %98 : vector<16x16x64xf32> to vector<8x2x16x64xf32>
    %cst_112 = arith.constant dense<0xFF800000> : vector<8x16x64xf32>
    %100 = vector.multi_reduction <maximumf>, %99, %cst_112 [1] : vector<8x2x16x64xf32> to vector<8x16x64xf32>
    %101 = vector.shape_cast %100 : vector<8x16x64xf32> to vector<8x8x2x64xf32>
    %cst_113 = arith.constant dense<0xFF800000> : vector<8x8x64xf32>
    %102 = vector.multi_reduction <maximumf>, %101, %cst_113 [2] : vector<8x8x2x64xf32> to vector<8x8x64xf32>
    %103 = vector.shape_cast %102 : vector<8x8x64xf32> to vector<64x64xf32>
    %c0_114 = arith.constant 0 : index
    %c0_115 = arith.constant 0 : index
    %104 = vector.load %arg7[%c0_114, %c0_115] : memref<64x64xf32, #tpu.memory_space<vmem>>, vector<64x64xf32>
    %cst_116 = arith.constant dense<0.000000e+00> : vector<64x64xf32>
    %105 = tpu.matmul %103, %104, %cst_116 {dimension_numbers = #tpu.dot_dimension_numbers<[1], [0], [0], [1], [0, 0, 1, 1], [], []>} : vector<64x64xf32>, vector<64x64xf32>, vector<64x64xf32> -> vector<64x64xf32>
    %c0_117 = arith.constant 0 : index
    %c0_118 = arith.constant 0 : index
    %106 = vector.load %arg8[%c0_117, %c0_118] : memref<1x64xf32, #tpu.memory_space<vmem>>, vector<1x64xf32>
    %107 = vector.broadcast %106 : vector<1x64xf32> to vector<64x64xf32>
    %108 = arith.addf %105, %107 : vector<64x64xf32>
    %109 = vector.shape_cast %108 : vector<64x64xf32> to vector<8x8x64xf32>
    %c0_119 = arith.constant 0 : index
    %c0_120 = arith.constant 0 : index
    %c0_121 = arith.constant 0 : index
    %c0_122 = arith.constant 0 : index
    %c0_123 = arith.constant 0 : index
    %110 = vector.load %arg9[%c0_119, %c0_120, %c0_121, %c0_122, %c0_123] : memref<1x1x8x8x64xf32, #tpu.memory_space<vmem>>, vector<1x1x8x8x64xf32>
    %111 = vector.shape_cast %110 : vector<1x1x8x8x64xf32> to vector<8x8x64xf32>
    %112 = vector.shape_cast %109 : vector<8x8x64xf32> to vector<1x1x8x8x64xf32>
    tpu.vector_store %arg9[%c0_119, %c0_120, %c0_121, %c0_122, %c0_123], %112 {strides = array<i32>} : memref<1x1x8x8x64xf32, #tpu.memory_space<vmem>>, vector<1x1x8x8x64xf32>,
    return
  }
  func.func @transform_0(%arg0: i32, %arg1: i32) -> (i32, i32, i32, i32, i32) {
    %c0_i32 = arith.constant 0 : i32
    %c0_i32_0 = arith.constant 0 : i32
    %c0_i32_1 = arith.constant 0 : i32
    %c0_i32_2 = arith.constant 0 : i32
    return %arg0, %arg1, %c0_i32, %c0_i32_0, %c0_i32_1 : i32, i32, i32, i32, i32
  }
  func.func @transform_1(%arg0: i32, %arg1: i32) -> (i32, i32, i32, i32, i32) {
    %c0_i32 = arith.constant 0 : i32
    %c0_i32_0 = arith.constant 0 : i32
    %c0_i32_1 = arith.constant 0 : i32
    %c0_i32_2 = arith.constant 0 : i32
    %c0_i32_3 = arith.constant 0 : i32
    return %arg1, %c0_i32, %c0_i32_0, %c0_i32_1, %c0_i32_2 : i32, i32, i32, i32, i32
  }
  func.func @transform_2(%arg0: i32, %arg1: i32) -> (i32, i32, i32) {
    %c0_i32 = arith.constant 0 : i32
    %c0_i32_0 = arith.constant 0 : i32
    %c0_i32_1 = arith.constant 0 : i32
    return %arg1, %c0_i32, %c0_i32_0 : i32, i32, i32
  }
  func.func @transform_3(%arg0: i32, %arg1: i32) -> (i32, i32, i32) {
    %c0_i32 = arith.constant 0 : i32
    %c0_i32_0 = arith.constant 0 : i32
    %c0_i32_1 = arith.constant 0 : i32
    return %arg1, %c0_i32, %c0_i32_0 : i32, i32, i32
  }
  func.func @transform_4(%arg0: i32, %arg1: i32) -> (i32, i32, i32) {
    %c0_i32 = arith.constant 0 : i32
    %c0_i32_0 = arith.constant 0 : i32
    %c0_i32_1 = arith.constant 0 : i32
    return %arg1, %c0_i32, %c0_i32_0 : i32, i32, i32
  }
  func.func @transform_5(%arg0: i32, %arg1: i32) -> (i32, i32) {
    %c0_i32 = arith.constant 0 : i32
    %c0_i32_0 = arith.constant 0 : i32
    %c0_i32_1 = arith.constant 0 : i32
    return %c0_i32, %c0_i32_0 : i32, i32
  }
  func.func @transform_6(%arg0: i32, %arg1: i32) -> (i32, i32) {
    %c0_i32 = arith.constant 0 : i32
    %c0_i32_0 = arith.constant 0 : i32
    %c0_i32_1 = arith.constant 0 : i32
    return %c0_i32, %c0_i32_0 : i32, i32
  }
  func.func @transform_7(%arg0: i32, %arg1: i32) -> (i32, i32, i32, i32, i32) {
    %c0_i32 = arith.constant 0 : i32
    %c0_i32_0 = arith.constant 0 : i32
    %c0_i32_1 = arith.constant 0 : i32
    %c0_i32_2 = arith.constant 0 : i32
    return %arg0, %arg1, %c0_i32, %c0_i32_0, %c0_i32_1 : i32, i32, i32, i32, i32
  }
}

module attributes {stable_mosaic.version = 11 : i64} {
  func.func @_encoder_block_kernel(%arg0: i32, %arg1: i32, %arg2: memref<1x1x10x10x64xf32, #tpu.memory_space<vmem>>, %arg3: memref<1x3x3x64x128xf32, #tpu.memory_space<vmem>>, %arg4: memref<1x1x128xf32, #tpu.memory_space<vmem>>, %arg5: memref<1x1x128xf32, #tpu.memory_space<vmem>>, %arg6: memref<1x1x128xf32, #tpu.memory_space<vmem>>, %arg7: memref<128x128xf32, #tpu.memory_space<vmem>>, %arg8: memref<1x128xf32, #tpu.memory_space<vmem>>, %arg9: memref<1x1x4x4x128xf32, #tpu.memory_space<vmem>>, %arg10: memref<8x8x128xf32, #tpu.memory_space<vmem>>) attributes {dimension_semantics = [#tpu.dimension_semantics<parallel>, #tpu.dimension_semantics<parallel>], iteration_bounds = array<i64: 2, 2>, scalar_prefetch = 0 : i64, scratch_operands = 1 : i64, tpu.core_type = #tpu.core_type<tc>, window_params = [{transform_indices = @transform_0, window_bounds = array<i64: 1, 1, 10, 10, 64>}, {transform_indices = @transform_1, window_bounds = array<i64: 1, 3, 3, 64, 128>}, {transform_indices = @transform_2, window_bounds = array<i64: 1, 1, 128>}, {transform_indices = @transform_3, window_bounds = array<i64: 1, 1, 128>}, {transform_indices = @transform_4, window_bounds = array<i64: 1, 1, 128>}, {pipeline_mode = #tpu.pipeline_mode<synchronous>, transform_indices = @transform_5, window_bounds = array<i64: 128, 128>}, {pipeline_mode = #tpu.pipeline_mode<synchronous>, transform_indices = @transform_6, window_bounds = array<i64: 1, 128>}, {transform_indices = @transform_7, window_bounds = array<i64: 1, 1, 4, 4, 128>}]} {
    %cst = arith.constant 0.000000e+00 : f32
    %0 = vector.broadcast %cst : f32 to vector<64x128xf32>
    %c0 = arith.constant 0 : index
    %c0_0 = arith.constant 0 : index
    %c0_1 = arith.constant 0 : index
    %c0_2 = arith.constant 0 : index
    %c0_3 = arith.constant 0 : index
    %1 = vector.load %arg2[%c0, %c0_0, %c0_1, %c0_2, %c0_3] : memref<1x1x10x10x64xf32, #tpu.memory_space<vmem>>, vector<1x1x8x8x64xf32>
    %2 = vector.shape_cast %1 : vector<1x1x8x8x64xf32> to vector<8x8x64xf32>
    %3 = vector.shape_cast %2 : vector<8x8x64xf32> to vector<64x64xf32>
    %c0_4 = arith.constant 0 : index
    %c0_5 = arith.constant 0 : index
    %c0_6 = arith.constant 0 : index
    %c0_7 = arith.constant 0 : index
    %c0_8 = arith.constant 0 : index
    %4 = vector.load %arg3[%c0_4, %c0_5, %c0_6, %c0_7, %c0_8] : memref<1x3x3x64x128xf32, #tpu.memory_space<vmem>>, vector<1x1x1x64x128xf32>
    %5 = vector.shape_cast %4 : vector<1x1x1x64x128xf32> to vector<64x128xf32>
    %cst_9 = arith.constant dense<0.000000e+00> : vector<64x128xf32>
    %6 = tpu.matmul %3, %5, %cst_9 {dimension_numbers = #tpu.dot_dimension_numbers<[1], [0], [0], [1], [0, 0, 1, 1], [], []>} : vector<64x64xf32>, vector<64x128xf32>, vector<64x128xf32> -> vector<64x128xf32>
    %7 = arith.addf %0, %6 : vector<64x128xf32>
    %c0_10 = arith.constant 0 : index
    %c0_11 = arith.constant 0 : index
    %c0_12 = arith.constant 0 : index
    %c1 = arith.constant 1 : index
    %c0_13 = arith.constant 0 : index
    %8 = vector.load %arg2[%c0_10, %c0_11, %c0_12, %c1, %c0_13] : memref<1x1x10x10x64xf32, #tpu.memory_space<vmem>>, vector<1x1x8x8x64xf32>
    %9 = vector.shape_cast %8 : vector<1x1x8x8x64xf32> to vector<8x8x64xf32>
    %10 = vector.shape_cast %9 : vector<8x8x64xf32> to vector<64x64xf32>
    %c0_14 = arith.constant 0 : index
    %c0_15 = arith.constant 0 : index
    %c1_16 = arith.constant 1 : index
    %c0_17 = arith.constant 0 : index
    %c0_18 = arith.constant 0 : index
    %11 = vector.load %arg3[%c0_14, %c0_15, %c1_16, %c0_17, %c0_18] : memref<1x3x3x64x128xf32, #tpu.memory_space<vmem>>, vector<1x1x1x64x128xf32>
    %12 = vector.shape_cast %11 : vector<1x1x1x64x128xf32> to vector<64x128xf32>
    %cst_19 = arith.constant dense<0.000000e+00> : vector<64x128xf32>
    %13 = tpu.matmul %10, %12, %cst_19 {dimension_numbers = #tpu.dot_dimension_numbers<[1], [0], [0], [1], [0, 0, 1, 1], [], []>} : vector<64x64xf32>, vector<64x128xf32>, vector<64x128xf32> -> vector<64x128xf32>
    %14 = arith.addf %7, %13 : vector<64x128xf32>
    %c0_20 = arith.constant 0 : index
    %c0_21 = arith.constant 0 : index
    %c0_22 = arith.constant 0 : index
    %c2 = arith.constant 2 : index
    %c0_23 = arith.constant 0 : index
    %15 = vector.load %arg2[%c0_20, %c0_21, %c0_22, %c2, %c0_23] : memref<1x1x10x10x64xf32, #tpu.memory_space<vmem>>, vector<1x1x8x8x64xf32>
    %16 = vector.shape_cast %15 : vector<1x1x8x8x64xf32> to vector<8x8x64xf32>
    %17 = vector.shape_cast %16 : vector<8x8x64xf32> to vector<64x64xf32>
    %c0_24 = arith.constant 0 : index
    %c0_25 = arith.constant 0 : index
    %c2_26 = arith.constant 2 : index
    %c0_27 = arith.constant 0 : index
    %c0_28 = arith.constant 0 : index
    %18 = vector.load %arg3[%c0_24, %c0_25, %c2_26, %c0_27, %c0_28] : memref<1x3x3x64x128xf32, #tpu.memory_space<vmem>>, vector<1x1x1x64x128xf32>
    %19 = vector.shape_cast %18 : vector<1x1x1x64x128xf32> to vector<64x128xf32>
    %cst_29 = arith.constant dense<0.000000e+00> : vector<64x128xf32>
    %20 = tpu.matmul %17, %19, %cst_29 {dimension_numbers = #tpu.dot_dimension_numbers<[1], [0], [0], [1], [0, 0, 1, 1], [], []>} : vector<64x64xf32>, vector<64x128xf32>, vector<64x128xf32> -> vector<64x128xf32>
    %21 = arith.addf %14, %20 : vector<64x128xf32>
    %c0_30 = arith.constant 0 : index
    %c0_31 = arith.constant 0 : index
    %c1_32 = arith.constant 1 : index
    %c0_33 = arith.constant 0 : index
    %c0_34 = arith.constant 0 : index
    %22 = vector.load %arg2[%c0_30, %c0_31, %c1_32, %c0_33, %c0_34] : memref<1x1x10x10x64xf32, #tpu.memory_space<vmem>>, vector<1x1x8x8x64xf32>
    %23 = vector.shape_cast %22 : vector<1x1x8x8x64xf32> to vector<8x8x64xf32>
    %24 = vector.shape_cast %23 : vector<8x8x64xf32> to vector<64x64xf32>
    %c0_35 = arith.constant 0 : index
    %c1_36 = arith.constant 1 : index
    %c0_37 = arith.constant 0 : index
    %c0_38 = arith.constant 0 : index
    %c0_39 = arith.constant 0 : index
    %25 = vector.load %arg3[%c0_35, %c1_36, %c0_37, %c0_38, %c0_39] : memref<1x3x3x64x128xf32, #tpu.memory_space<vmem>>, vector<1x1x1x64x128xf32>
    %26 = vector.shape_cast %25 : vector<1x1x1x64x128xf32> to vector<64x128xf32>
    %cst_40 = arith.constant dense<0.000000e+00> : vector<64x128xf32>
    %27 = tpu.matmul %24, %26, %cst_40 {dimension_numbers = #tpu.dot_dimension_numbers<[1], [0], [0], [1], [0, 0, 1, 1], [], []>} : vector<64x64xf32>, vector<64x128xf32>, vector<64x128xf32> -> vector<64x128xf32>
    %28 = arith.addf %21, %27 : vector<64x128xf32>
    %c0_41 = arith.constant 0 : index
    %c0_42 = arith.constant 0 : index
    %c1_43 = arith.constant 1 : index
    %c1_44 = arith.constant 1 : index
    %c0_45 = arith.constant 0 : index
    %29 = vector.load %arg2[%c0_41, %c0_42, %c1_43, %c1_44, %c0_45] : memref<1x1x10x10x64xf32, #tpu.memory_space<vmem>>, vector<1x1x8x8x64xf32>
    %30 = vector.shape_cast %29 : vector<1x1x8x8x64xf32> to vector<8x8x64xf32>
    %31 = vector.shape_cast %30 : vector<8x8x64xf32> to vector<64x64xf32>
    %c0_46 = arith.constant 0 : index
    %c1_47 = arith.constant 1 : index
    %c1_48 = arith.constant 1 : index
    %c0_49 = arith.constant 0 : index
    %c0_50 = arith.constant 0 : index
    %32 = vector.load %arg3[%c0_46, %c1_47, %c1_48, %c0_49, %c0_50] : memref<1x3x3x64x128xf32, #tpu.memory_space<vmem>>, vector<1x1x1x64x128xf32>
    %33 = vector.shape_cast %32 : vector<1x1x1x64x128xf32> to vector<64x128xf32>
    %cst_51 = arith.constant dense<0.000000e+00> : vector<64x128xf32>
    %34 = tpu.matmul %31, %33, %cst_51 {dimension_numbers = #tpu.dot_dimension_numbers<[1], [0], [0], [1], [0, 0, 1, 1], [], []>} : vector<64x64xf32>, vector<64x128xf32>, vector<64x128xf32> -> vector<64x128xf32>
    %35 = arith.addf %28, %34 : vector<64x128xf32>
    %c0_52 = arith.constant 0 : index
    %c0_53 = arith.constant 0 : index
    %c1_54 = arith.constant 1 : index
    %c2_55 = arith.constant 2 : index
    %c0_56 = arith.constant 0 : index
    %36 = vector.load %arg2[%c0_52, %c0_53, %c1_54, %c2_55, %c0_56] : memref<1x1x10x10x64xf32, #tpu.memory_space<vmem>>, vector<1x1x8x8x64xf32>
    %37 = vector.shape_cast %36 : vector<1x1x8x8x64xf32> to vector<8x8x64xf32>
    %38 = vector.shape_cast %37 : vector<8x8x64xf32> to vector<64x64xf32>
    %c0_57 = arith.constant 0 : index
    %c1_58 = arith.constant 1 : index
    %c2_59 = arith.constant 2 : index
    %c0_60 = arith.constant 0 : index
    %c0_61 = arith.constant 0 : index
    %39 = vector.load %arg3[%c0_57, %c1_58, %c2_59, %c0_60, %c0_61] : memref<1x3x3x64x128xf32, #tpu.memory_space<vmem>>, vector<1x1x1x64x128xf32>
    %40 = vector.shape_cast %39 : vector<1x1x1x64x128xf32> to vector<64x128xf32>
    %cst_62 = arith.constant dense<0.000000e+00> : vector<64x128xf32>
    %41 = tpu.matmul %38, %40, %cst_62 {dimension_numbers = #tpu.dot_dimension_numbers<[1], [0], [0], [1], [0, 0, 1, 1], [], []>} : vector<64x64xf32>, vector<64x128xf32>, vector<64x128xf32> -> vector<64x128xf32>
    %42 = arith.addf %35, %41 : vector<64x128xf32>
    %c0_63 = arith.constant 0 : index
    %c0_64 = arith.constant 0 : index
    %c2_65 = arith.constant 2 : index
    %c0_66 = arith.constant 0 : index
    %c0_67 = arith.constant 0 : index
    %43 = vector.load %arg2[%c0_63, %c0_64, %c2_65, %c0_66, %c0_67] : memref<1x1x10x10x64xf32, #tpu.memory_space<vmem>>, vector<1x1x8x8x64xf32>
    %44 = vector.shape_cast %43 : vector<1x1x8x8x64xf32> to vector<8x8x64xf32>
    %45 = vector.shape_cast %44 : vector<8x8x64xf32> to vector<64x64xf32>
    %c0_68 = arith.constant 0 : index
    %c2_69 = arith.constant 2 : index
    %c0_70 = arith.constant 0 : index
    %c0_71 = arith.constant 0 : index
    %c0_72 = arith.constant 0 : index
    %46 = vector.load %arg3[%c0_68, %c2_69, %c0_70, %c0_71, %c0_72] : memref<1x3x3x64x128xf32, #tpu.memory_space<vmem>>, vector<1x1x1x64x128xf32>
    %47 = vector.shape_cast %46 : vector<1x1x1x64x128xf32> to vector<64x128xf32>
    %cst_73 = arith.constant dense<0.000000e+00> : vector<64x128xf32>
    %48 = tpu.matmul %45, %47, %cst_73 {dimension_numbers = #tpu.dot_dimension_numbers<[1], [0], [0], [1], [0, 0, 1, 1], [], []>} : vector<64x64xf32>, vector<64x128xf32>, vector<64x128xf32> -> vector<64x128xf32>
    %49 = arith.addf %42, %48 : vector<64x128xf32>
    %c0_74 = arith.constant 0 : index
    %c0_75 = arith.constant 0 : index
    %c2_76 = arith.constant 2 : index
    %c1_77 = arith.constant 1 : index
    %c0_78 = arith.constant 0 : index
    %50 = vector.load %arg2[%c0_74, %c0_75, %c2_76, %c1_77, %c0_78] : memref<1x1x10x10x64xf32, #tpu.memory_space<vmem>>, vector<1x1x8x8x64xf32>
    %51 = vector.shape_cast %50 : vector<1x1x8x8x64xf32> to vector<8x8x64xf32>
    %52 = vector.shape_cast %51 : vector<8x8x64xf32> to vector<64x64xf32>
    %c0_79 = arith.constant 0 : index
    %c2_80 = arith.constant 2 : index
    %c1_81 = arith.constant 1 : index
    %c0_82 = arith.constant 0 : index
    %c0_83 = arith.constant 0 : index
    %53 = vector.load %arg3[%c0_79, %c2_80, %c1_81, %c0_82, %c0_83] : memref<1x3x3x64x128xf32, #tpu.memory_space<vmem>>, vector<1x1x1x64x128xf32>
    %54 = vector.shape_cast %53 : vector<1x1x1x64x128xf32> to vector<64x128xf32>
    %cst_84 = arith.constant dense<0.000000e+00> : vector<64x128xf32>
    %55 = tpu.matmul %52, %54, %cst_84 {dimension_numbers = #tpu.dot_dimension_numbers<[1], [0], [0], [1], [0, 0, 1, 1], [], []>} : vector<64x64xf32>, vector<64x128xf32>, vector<64x128xf32> -> vector<64x128xf32>
    %56 = arith.addf %49, %55 : vector<64x128xf32>
    %c0_85 = arith.constant 0 : index
    %c0_86 = arith.constant 0 : index
    %c2_87 = arith.constant 2 : index
    %c2_88 = arith.constant 2 : index
    %c0_89 = arith.constant 0 : index
    %57 = vector.load %arg2[%c0_85, %c0_86, %c2_87, %c2_88, %c0_89] : memref<1x1x10x10x64xf32, #tpu.memory_space<vmem>>, vector<1x1x8x8x64xf32>
    %58 = vector.shape_cast %57 : vector<1x1x8x8x64xf32> to vector<8x8x64xf32>
    %59 = vector.shape_cast %58 : vector<8x8x64xf32> to vector<64x64xf32>
    %c0_90 = arith.constant 0 : index
    %c2_91 = arith.constant 2 : index
    %c2_92 = arith.constant 2 : index
    %c0_93 = arith.constant 0 : index
    %c0_94 = arith.constant 0 : index
    %60 = vector.load %arg3[%c0_90, %c2_91, %c2_92, %c0_93, %c0_94] : memref<1x3x3x64x128xf32, #tpu.memory_space<vmem>>, vector<1x1x1x64x128xf32>
    %61 = vector.shape_cast %60 : vector<1x1x1x64x128xf32> to vector<64x128xf32>
    %cst_95 = arith.constant dense<0.000000e+00> : vector<64x128xf32>
    %62 = tpu.matmul %59, %61, %cst_95 {dimension_numbers = #tpu.dot_dimension_numbers<[1], [0], [0], [1], [0, 0, 1, 1], [], []>} : vector<64x64xf32>, vector<64x128xf32>, vector<64x128xf32> -> vector<64x128xf32>
    %63 = arith.addf %56, %62 : vector<64x128xf32>
    %c0_96 = arith.constant 0 : index
    %c0_97 = arith.constant 0 : index
    %c0_98 = arith.constant 0 : index
    %64 = vector.load %arg4[%c0_96, %c0_97, %c0_98] : memref<1x1x128xf32, #tpu.memory_space<vmem>>, vector<1x1x128xf32>
    %65 = vector.shape_cast %64 : vector<1x1x128xf32> to vector<1x128xf32>
    %66 = vector.broadcast %65 : vector<1x128xf32> to vector<64x128xf32>
    %67 = arith.addf %63, %66 : vector<64x128xf32>
    %cst_99 = arith.constant 0.000000e+00 : f32
    %68 = vector.broadcast %cst_99 : f32 to vector<64x128xf32>
    %69 = arith.maximumf %67, %68 : vector<64x128xf32>
    %70 = vector.shape_cast %69 : vector<64x128xf32> to vector<1x64x128xf32>
    %cst_100 = arith.constant dense<0.000000e+00> : vector<1xf32>
    %71 = vector.multi_reduction <add>, %70, %cst_100 [1, 2] : vector<1x64x128xf32> to vector<1xf32>
    %72 = vector.shape_cast %71 : vector<1xf32> to vector<1x1x1xf32>
    %73 = vector.extract %72[0, 0, 0] : f32 from vector<1x1x1xf32>
    %cst_101 = arith.constant 8.192000e+03 : f32
    %74 = arith.divf %73, %cst_101 : f32
    %75 = vector.broadcast %74 : f32 to vector<64x128xf32>
    %76 = arith.subf %69, %75 : vector<64x128xf32>
    %77 = arith.mulf %76, %76 : vector<64x128xf32>
    %78 = vector.shape_cast %77 : vector<64x128xf32> to vector<1x64x128xf32>
    %cst_102 = arith.constant dense<0.000000e+00> : vector<1xf32>
    %79 = vector.multi_reduction <add>, %78, %cst_102 [1, 2] : vector<1x64x128xf32> to vector<1xf32>
    %80 = vector.shape_cast %79 : vector<1xf32> to vector<1x1x1xf32>
    %81 = vector.extract %80[0, 0, 0] : f32 from vector<1x1x1xf32>
    %82 = arith.mulf %74, %74 : f32
    %cst_103 = arith.constant 0.000000e+00 : f32
    %83 = arith.mulf %cst_103, %82 : f32
    %84 = arith.addf %81, %83 : f32
    %cst_104 = arith.constant 8.192000e+03 : f32
    %85 = arith.divf %84, %cst_104 : f32
    %cst_105 = arith.constant 9.99999974E-6 : f32
    %86 = arith.addf %85, %cst_105 : f32
    %87 = math.rsqrt %86 : f32
    %c0_106 = arith.constant 0 : index
    %c0_107 = arith.constant 0 : index
    %c0_108 = arith.constant 0 : index
    %88 = vector.load %arg5[%c0_106, %c0_107, %c0_108] : memref<1x1x128xf32, #tpu.memory_space<vmem>>, vector<1x1x128xf32>
    %89 = vector.shape_cast %88 : vector<1x1x128xf32> to vector<1x128xf32>
    %90 = vector.broadcast %87 : f32 to vector<1x128xf32>
    %91 = arith.mulf %89, %90 : vector<1x128xf32>
    %92 = vector.broadcast %91 : vector<1x128xf32> to vector<64x128xf32>
    %93 = arith.mulf %76, %92 : vector<64x128xf32>
    %c0_109 = arith.constant 0 : index
    %c0_110 = arith.constant 0 : index
    %c0_111 = arith.constant 0 : index
    %94 = vector.load %arg6[%c0_109, %c0_110, %c0_111] : memref<1x1x128xf32, #tpu.memory_space<vmem>>, vector<1x1x128xf32>
    %95 = vector.shape_cast %94 : vector<1x1x128xf32> to vector<1x128xf32>
    %96 = vector.broadcast %95 : vector<1x128xf32> to vector<64x128xf32>
    %97 = arith.addf %93, %96 : vector<64x128xf32>
    %98 = vector.shape_cast %97 : vector<64x128xf32> to vector<8x8x128xf32>
    %99 = vector.shape_cast %98 : vector<8x8x128xf32> to vector<4x2x8x128xf32>
    %cst_112 = arith.constant dense<0xFF800000> : vector<4x8x128xf32>
    %100 = vector.multi_reduction <maximumf>, %99, %cst_112 [1] : vector<4x2x8x128xf32> to vector<4x8x128xf32>
    %101 = vector.shape_cast %100 : vector<4x8x128xf32> to vector<4x4x2x128xf32>
    %cst_113 = arith.constant dense<0xFF800000> : vector<4x4x128xf32>
    %102 = vector.multi_reduction <maximumf>, %101, %cst_113 [2] : vector<4x4x2x128xf32> to vector<4x4x128xf32>
    %103 = vector.shape_cast %102 : vector<4x4x128xf32> to vector<16x128xf32>
    %c0_114 = arith.constant 0 : index
    %c0_115 = arith.constant 0 : index
    %104 = vector.load %arg7[%c0_114, %c0_115] : memref<128x128xf32, #tpu.memory_space<vmem>>, vector<128x128xf32>
    %cst_116 = arith.constant dense<0.000000e+00> : vector<16x128xf32>
    %105 = tpu.matmul %103, %104, %cst_116 {dimension_numbers = #tpu.dot_dimension_numbers<[1], [0], [0], [1], [0, 0, 1, 1], [], []>} : vector<16x128xf32>, vector<128x128xf32>, vector<16x128xf32> -> vector<16x128xf32>
    %c0_117 = arith.constant 0 : index
    %c0_118 = arith.constant 0 : index
    %106 = vector.load %arg8[%c0_117, %c0_118] : memref<1x128xf32, #tpu.memory_space<vmem>>, vector<1x128xf32>
    %107 = vector.broadcast %106 : vector<1x128xf32> to vector<16x128xf32>
    %108 = arith.addf %105, %107 : vector<16x128xf32>
    %109 = vector.shape_cast %108 : vector<16x128xf32> to vector<4x4x128xf32>
    %c0_119 = arith.constant 0 : index
    %c0_120 = arith.constant 0 : index
    %c0_121 = arith.constant 0 : index
    %c0_122 = arith.constant 0 : index
    %c0_123 = arith.constant 0 : index
    %110 = vector.load %arg9[%c0_119, %c0_120, %c0_121, %c0_122, %c0_123] : memref<1x1x4x4x128xf32, #tpu.memory_space<vmem>>, vector<1x1x4x4x128xf32>
    %111 = vector.shape_cast %110 : vector<1x1x4x4x128xf32> to vector<4x4x128xf32>
    %112 = vector.shape_cast %109 : vector<4x4x128xf32> to vector<1x1x4x4x128xf32>
    tpu.vector_store %arg9[%c0_119, %c0_120, %c0_121, %c0_122, %c0_123], %112 {strides = array<i32>} : memref<1x1x4x4x128xf32, #tpu.memory_space<vmem>>, vector<1x1x4x4x128xf32>,
    return
  }
  func.func @transform_0(%arg0: i32, %arg1: i32) -> (i32, i32, i32, i32, i32) {
    %c0_i32 = arith.constant 0 : i32
    %c0_i32_0 = arith.constant 0 : i32
    %c0_i32_1 = arith.constant 0 : i32
    %c0_i32_2 = arith.constant 0 : i32
    return %arg0, %arg1, %c0_i32, %c0_i32_0, %c0_i32_1 : i32, i32, i32, i32, i32
  }
  func.func @transform_1(%arg0: i32, %arg1: i32) -> (i32, i32, i32, i32, i32) {
    %c0_i32 = arith.constant 0 : i32
    %c0_i32_0 = arith.constant 0 : i32
    %c0_i32_1 = arith.constant 0 : i32
    %c0_i32_2 = arith.constant 0 : i32
    %c0_i32_3 = arith.constant 0 : i32
    return %arg1, %c0_i32, %c0_i32_0, %c0_i32_1, %c0_i32_2 : i32, i32, i32, i32, i32
  }
  func.func @transform_2(%arg0: i32, %arg1: i32) -> (i32, i32, i32) {
    %c0_i32 = arith.constant 0 : i32
    %c0_i32_0 = arith.constant 0 : i32
    %c0_i32_1 = arith.constant 0 : i32
    return %arg1, %c0_i32, %c0_i32_0 : i32, i32, i32
  }
  func.func @transform_3(%arg0: i32, %arg1: i32) -> (i32, i32, i32) {
    %c0_i32 = arith.constant 0 : i32
    %c0_i32_0 = arith.constant 0 : i32
    %c0_i32_1 = arith.constant 0 : i32
    return %arg1, %c0_i32, %c0_i32_0 : i32, i32, i32
  }
  func.func @transform_4(%arg0: i32, %arg1: i32) -> (i32, i32, i32) {
    %c0_i32 = arith.constant 0 : i32
    %c0_i32_0 = arith.constant 0 : i32
    %c0_i32_1 = arith.constant 0 : i32
    return %arg1, %c0_i32, %c0_i32_0 : i32, i32, i32
  }
  func.func @transform_5(%arg0: i32, %arg1: i32) -> (i32, i32) {
    %c0_i32 = arith.constant 0 : i32
    %c0_i32_0 = arith.constant 0 : i32
    %c0_i32_1 = arith.constant 0 : i32
    return %c0_i32, %c0_i32_0 : i32, i32
  }
  func.func @transform_6(%arg0: i32, %arg1: i32) -> (i32, i32) {
    %c0_i32 = arith.constant 0 : i32
    %c0_i32_0 = arith.constant 0 : i32
    %c0_i32_1 = arith.constant 0 : i32
    return %c0_i32, %c0_i32_0 : i32, i32
  }
  func.func @transform_7(%arg0: i32, %arg1: i32) -> (i32, i32, i32, i32, i32) {
    %c0_i32 = arith.constant 0 : i32
    %c0_i32_0 = arith.constant 0 : i32
    %c0_i32_1 = arith.constant 0 : i32
    %c0_i32_2 = arith.constant 0 : i32
    return %arg0, %arg1, %c0_i32, %c0_i32_0, %c0_i32_1 : i32, i32, i32, i32, i32
  }
}

</mosaic_0001>

<bundles_post_ra>
// kernel: encoder_forward_pallas.3
= control target key start
LH: loop header
LB: loop body
LE: loop exit
PB: predicated region body
PF: predicated region fallthrough
CT: control target
= control target key end

     0   :  { %s3373_s24 = smov 0   ;;  %s3375_s25 = smov 0   ;;  %s3891_s0 = inlined_call_operand.vmem [shape: f32[2,2,10,10,64], index: 0, kind: input, shape index: {}]   ;;  %s3892_s1 = inlined_call_operand.vmem [shape: f32[2,3,3,64,128], index: 1, kind: input, shape index: {}]   ;;  %s3893_s2 = inlined_call_operand.vmem [shape: f32[2,1,128], index: 2, kind: input, shape index: {}]   ;;  %s3894_s3 = inlined_call_operand.vmem [shape: f32[2,1,128], index: 3, kind: input, shape index: {}]   ;;  %s3895_s4 = inlined_call_operand.vmem [shape: f32[2,1,128], index: 4, kind: input, shape index: {}]   ;;  %s3896_s5 = inlined_call_operand.vmem [shape: f32[128,128], index: 5, kind: input, shape index: {}]   ;;  %s3897_s6 = inlined_call_operand.vmem [shape: f32[1,128], index: 6, kind: input, shape index: {}]   ;;  %s3898_s7 = inlined_call_operand.vmem [shape: f32[2,2,4,4,128], index: 7, kind: output, shape index: {}]  }
   0x1   :  { %s3377_s26 = smov 0   ;;  %s3379_s27 = smov 0  }
   0x2   :  { %s3381_s28 = smov 0  }
   0x3 LB: > { %s26_s29 = sadd.s32 1, %s3322_s26  ;;  %s29_s30 = sadd.s32 1, %s3326_s27  ;;  %s3330_s28 = sphi %s3381_s28, %s17_s28   ;;  %s3326_s27 = sphi %s3379_s27, %s3902_s27   ;;  %s3322_s26 = sphi %s3377_s26, %s3901_s26   ;;  %s3318_s25 = sphi %s3375_s25, %s3900_s25   ;;  %s3314_s24 = sphi %s3373_s24, %s3899_s24  }
   0x4   : > { %p27_p0 = scmp.ge.s32.totalorder %s26_s29, 2  ;;  %p2356_p1 = scmp.ge.s32.totalorder %s3330_s28, 1 }
   0x5   : > { %p291_p2 = scmp.lt.s32.totalorder %s3330_s28, 5 }
   0x6   : > { %s3904_s29 = smov (%p27_p0, %s26_s29), 0  ;;  %s3906_s30 = smov (!%p27_p0, %s29_s30), %s3326_s27 }
   0x7   : > { %p292_p3 = pnand %p2356_p1, %p291_p2  ;;  %p31_p4 = scmp.ge.s32.totalorder %s3906_s30, 2 }
   0x8   : > { %p347_p5 = scmp.lt.s32.totalorder (!%p292_p3), %s3314_s24, 1  ;;  %p345_p6 = scmp.lt.s32.totalorder (!%p292_p3), %s3318_s25, 1  ;;  %vm410_vm0 = vcmask (!%p292_p3), 523264   ;;  %vm1958_vm1 = vcmask (!%p292_p3), 1041408   ;;  %vm2110_vm2 = vcmask (!%p292_p3), 1041409   ;;  %vm2112_vm3 = vcmask (!%p292_p3), 1042434  }
   0x9   : > { %s3908_s30 = smov (%p31_p4, %s3906_s30), 0  ;;  %295 = sbr.rel (%p292_p3) target bundleno = 1106 (0x452), region = 48 }
   0xa   : > { %vm2114_vm4 = vcmask (!%p292_p3), 1043459   ;;  %vm2116_vm5 = vcmask (!%p292_p3), 1044484   ;;  %vm2118_vm6 = vcmask (!%p292_p3), 1045509   ;;  %vm2120_vm7 = vcmask (!%p292_p3), 1046534  }
   0xb   : > { %vm2122_vm8 = vcmask (!%p292_p3), 1047559  }
  0x10   : > { %s3910_s24 = smov (!%p347_p5, %s3314_s24), 1  ;;  %s3912_s25 = smov (!%p345_p6, %s3318_s25), 1 }
  0x11   : > { %s3242_s8 = smul.u32 576, %s3910_s24  ;;  %s361_s21 = scalar_lea.vmem %s3893_s2, %s3910_s24 }
  0x12   : > { %s3240_s9 = smul.u32 20, %s3910_s24 }
  0x13   : > { %s3412_s12 = scalar_lea.vmem %s3892_s1, %s3242_s8  ;;  %s3241_s13 = smul.u32 40, %s3912_s25 }
  0x14   : > { %v2362_v0 = vld [vmem:[%s3412_s12 + $0x40] sm:$0xff]  ;;  %v2363_v1 = vld [vmem:[%s3412_s12 + $0x48] sm:$0xff]  ;;  %v2364_v5 = vld [vmem:[%s3412_s12 + $0x50] sm:$0xff]  ;;  %s2360_s8 = sshll.u32 %s3912_s25, 3 }
  0x15   : > { %v2434_v2 = vld [vmem:[%s3412_s12 + $0x100] sm:$0xff]  ;;  %v3000_v3 = vpack.c.bf16 %v2363_v1, %v2362_v0  ;;  %v2435_v4 = vld [vmem:[%s3412_s12 + $0x108] sm:$0xff]  ;;  %v2365_v6 = vld [vmem:[%s3412_s12 + $0x58] sm:$0xff]  ;;  %s351_s14 = sadd.s32 %s3241_s13, %s3240_s9 }
  0x16   : > { %v3064_v7 = vpack.c.bf16 %v2435_v4, %v2434_v2  ;;  %v3004_v8 = vpack.c.bf16 %v2365_v6, %v2364_v5  ;;  %v2436_v9 = vld [vmem:[%s3412_s12 + $0x110] sm:$0xff]  ;;  %v2437_v10 = vld [vmem:[%s3412_s12 + $0x118] sm:$0xff]  ;;  %v2366_v11 = vld [vmem:[%s3412_s12 + $0x60] sm:$0xff]  ;;  %s2357_s15 = sshll.u32 %s351_s14, 3 }
  0x17   : > { %3001 = vmatprep.subr.bf16.mxu1 %v3000_v3  ;;  %v3068_v12 = vpack.c.bf16 %v2437_v10, %v2436_v9  ;;  %v2367_v13 = vld [vmem:[%s3412_s12 + $0x68] sm:$0xff]  ;;  %v2438_v14 = vld [vmem:[%s3412_s12 + $0x120] sm:$0xff]  ;;  %s3430_s18 = scalar_lea.vmem %s3891_s0, %s2357_s15  ;;  %v2368_v20 = vld [vmem:[%s3412_s12 + $0x70] sm:$0xff] }
  0x18   : > { %v2439_v15 = vld [vmem:[%s3412_s12 + $0x128] sm:$0xff]  ;;  %3065 = vmatprep.subr.bf16.mxu0 %v3064_v7  ;;  %3003 = vmatpush3.bf16.msra.mxu1 %v3000_v3  ;;  %v3008_v16 = vpack.c.bf16 %v2367_v13, %v2366_v11  ;;  %v2426_v18 = vld [vmem:[%s3430_s18 + $0x11] sm:$0xff]  ;;  %v385_v26 = vld [vmem:[%s3412_s12] sm:$0xff] }
  0x19   : > { %3067 = vmatpush3.bf16.msra.mxu0 %v3064_v7  ;;  %3005 = vmatprep.subr.bf16.mxu1 %v3004_v8  ;;  %v393_v17 = vld [vmem:[%s3430_s18 + $0x1] sm:$0xff]  ;;  %v3072_v19 = vpack.c.bf16 %v2439_v15, %v2438_v14  ;;  %v2369_v21 = vld [vmem:[%s3412_s12 + $0x78] sm:$0xff]  ;;  %v2440_v22 = vld [vmem:[%s3412_s12 + $0x130] sm:$0xff] }
  0x1a   : > { %3069 = vmatprep.subr.bf16.mxu0 %v3068_v12  ;;  %2729 = vmatprep.mubr.msk.f32.mxu1 %vm410_vm0, %v393_v17  ;;  %v2441_v23 = vld [vmem:[%s3412_s12 + $0x138] sm:$0xff]  ;;  %v3012_v24 = vpack.c.bf16 %v2369_v21, %v2368_v20  ;;  %v386_v27 = vld [vmem:[%s3412_s12 + $0x8] sm:$0xff]  ;;  %v2458_v28 = vld [vmem:[%s3412_s12 + $0x140] sm:$0xff] }
  0x1b   : > { %2841 = vmatprep.mubr.msk.f32.mxu0 %vm410_vm0, %v2426_v18  ;;  %v3076_v25 = vpack.c.bf16 %v2441_v23, %v2440_v22  ;;  %v2459_v29 = vld [vmem:[%s3412_s12 + $0x148] sm:$0xff]  ;;  %v3016_v30 = vpack.c.bf16 %v386_v27, %v385_v26  ;;  %v387_v32 = vld [vmem:[%s3412_s12 + $0x10] sm:$0xff]  ;;  %v388_v33 = vld [vmem:[%s3412_s12 + $0x18] sm:$0xff] }
  0x1c   : > { %3007 = vmatpush3.bf16.msra.mxu1 %v3004_v8  ;;  %v3080_v31 = vpack.c.bf16 %v2459_v29, %v2458_v28  ;;  %v2460_v34 = vld [vmem:[%s3412_s12 + $0x150] sm:$0xff]  ;;  %v2461_v35 = vld [vmem:[%s3412_s12 + $0x158] sm:$0xff]  ;;  %v3449_v36 = vld [vmem:[%s3430_s18 + $0x21] sm:$0xff]  ;;  %v3020_v37 = vpack.c.bf16 %v388_v33, %v387_v32 }
  0x1d   : > { %3071 = vmatpush3.bf16.msra.mxu0 %v3068_v12  ;;  %3009 = vmatprep.subr.bf16.mxu1 %v3008_v16  ;;  %v3453_v38 = vld [vmem:[%s3430_s18 + $0x31] sm:$0xff]  ;;  %v3084_v39 = vpack.c.bf16 %v2461_v35, %v2460_v34  ;;  %v389_v40 = vld [vmem:[%s3412_s12 + $0x20] sm:$0xff]  ;;  %v390_v41 = vld [vmem:[%s3412_s12 + $0x28] sm:$0xff] }
  0x1e   : > { %3073 = vmatprep.subr.bf16.mxu0 %v3072_v19  ;;  %v2462_v42 = vld [vmem:[%s3412_s12 + $0x160] sm:$0xff]  ;;  %v2463_v43 = vld [vmem:[%s3412_s12 + $0x168] sm:$0xff]  ;;  %v3024_v45 = vpack.c.bf16 %v390_v41, %v389_v40  ;;  %v3471_v46 = vld [vmem:[%s3430_s18 + $0x51] sm:$0xff] }
  0x1f   : > { %v3464_v44 = vld [vmem:[%s3430_s18 + $0x41] sm:$0xff]  ;;  %v3088_v47 = vpack.c.bf16 %v2463_v43, %v2462_v42  ;;  %v391_v48 = vld [vmem:[%s3412_s12 + $0x30] sm:$0xff]  ;;  %v392_v49 = vld [vmem:[%s3412_s12 + $0x38] sm:$0xff] }
  0x20   : > { %3011 = vmatpush3.bf16.msra.mxu1 %v3008_v16  ;;  %v2464_v50 = vld [vmem:[%s3412_s12 + $0x170] sm:$0xff]  ;;  %v2465_v51 = vld [vmem:[%s3412_s12 + $0x178] sm:$0xff]  ;;  %v3482_v52 = vld [vmem:[%s3430_s18 + $0x61] sm:$0xff]  ;;  %v3028_v53 = vpack.c.bf16 %v392_v49, %v391_v48 }
  0x21   : > { %3075 = vmatpush3.bf16.msra.mxu0 %v3072_v19  ;;  %3013 = vmatprep.subr.bf16.mxu1 %v3012_v24  ;;  %v3489_v54 = vld [vmem:[%s3430_s18 + $0x71] sm:$0xff]  ;;  %v3092_v55 = vpack.c.bf16 %v2465_v51, %v2464_v50  ;;  %v2386_v56 = vld [vmem:[%s3412_s12 + $0x80] sm:$0xff]  ;;  %v2387_v57 = vld [vmem:[%s3412_s12 + $0x88] sm:$0xff] }
  0x22   : > { %3077 = vmatprep.subr.bf16.mxu0 %v3076_v25  ;;  %v2482_v58 = vld [vmem:[%s3412_s12 + $0x180] sm:$0xff]  ;;  %v2483_v59 = vld [vmem:[%s3412_s12 + $0x188] sm:$0xff]  ;;  %v3032_v62 = vpack.c.bf16 %v2387_v57, %v2386_v56  ;;  %v3508_v63 = vld [vmem:[%s3430_s18 + $0x12] sm:$0xff] }
  0x23   : > { %v3500_v60 = vld [vmem:[%s3430_s18 + $0x81] sm:$0xff]  ;;  %v3096_v0 = vpack.c.bf16 %v2483_v59, %v2482_v58  ;;  %v2388_v1 = vld [vmem:[%s3412_s12 + $0x90] sm:$0xff]  ;;  %v2389_v2 = vld [vmem:[%s3412_s12 + $0x98] sm:$0xff] }
  0x24   : > { %3015 = vmatpush3.bf16.msra.mxu1 %v3012_v24  ;;  %v377_v61 = vld [vmem:[%s3430_s18] sm:$0xff]  ;;  %v3515_v3 = vld [vmem:[%s3430_s18 + $0x10] sm:$0xff]  ;;  %v2485_v5 = vld [vmem:[%s3412_s12 + $0x198] sm:$0xff]  ;;  %v3036_v8 = vpack.c.bf16 %v2389_v2, %v2388_v1 }
  0x25   : > { %3079 = vmatpush3.bf16.msra.mxu0 %v3076_v25  ;;  %3017 = vmatprep.subr.bf16.mxu1 %v3016_v30  ;;  %v2484_v4 = vld [vmem:[%s3412_s12 + $0x190] sm:$0xff]  ;;  %v3521_v6 = vld [vmem:[%s3430_s18 + $0x22] sm:$0xff]  ;;  %v2393_v22 = vld [vmem:[%s3412_s12 + $0xb8] sm:$0xff] }
  0x26   : > { %3081 = vmatprep.subr.bf16.mxu0 %v3080_v31  ;;  %v3526_v7 = vld [vmem:[%s3430_s18 + $0x20] sm:$0xff]  ;;  %v3531_v9 = vld [vmem:[%s3430_s18 + $0x32] sm:$0xff]  ;;  %v3100_v10 = vpack.c.bf16 %v2485_v5, %v2484_v4  ;;  %v2391_v12 = vld [vmem:[%s3412_s12 + $0xa8] sm:$0xff] }
  0x27   : > { %2730 = vmatmul.mubr.msk.f32.vlgmr.msra.gmra.mrb[0].mxu1 %vm410_vm0, %v2426_v18  ;;  %v2390_v11 = vld [vmem:[%s3412_s12 + $0xa0] sm:$0xff]  ;;  %v3538_v13 = vld [vmem:[%s3430_s18 + $0x30] sm:$0xff]  ;;  %v2487_v15 = vld [vmem:[%s3412_s12 + $0x1a8] sm:$0xff] }
  0x28   : > { %2842 = vmatmul.mubr.msk.f32.vlgmr.msra.gmra.mrb[0].mxu0 %vm410_vm0, %v3449_v36  ;;  %3019 = vmatpush3.bf16.msra.mxu1 %v3016_v30  ;;  %v2486_v14 = vld [vmem:[%s3412_s12 + $0x1a0] sm:$0xff]  ;;  %v3040_v18 = vpack.c.bf16 %v2391_v12, %v2390_v11  ;;  %v3555_v19 = vld [vmem:[%s3430_s18 + $0x52] sm:$0xff]  ;;  %v2411_v32 = vld [vmem:[%s3412_s12 + $0xc8] sm:$0xff] }
  0x29   : > { %3083 = vmatpush3.bf16.msra.mxu0 %v3080_v31  ;;  %2732 = vmatprep.mubr.msk.f32.mxu1 %vm410_vm0, %v3449_v36  ;;  %v3545_v16 = vld [vmem:[%s3430_s18 + $0x42] sm:$0xff]  ;;  %v3104_v20 = vpack.c.bf16 %v2487_v15, %v2486_v14  ;;  %v2392_v21 = vld [vmem:[%s3412_s12 + $0xb0] sm:$0xff]  ;;  %v2489_v25 = vld [vmem:[%s3412_s12 + $0x1b8] sm:$0xff] }
  0x2a   : > { %2844 = vmatprep.mubr.msk.f32.mxu0 %vm410_vm0, %v3453_v38  ;;  %3021 = vmatprep.subr.bf16.mxu1 %v3020_v37  ;;  %v3550_v17 = vld [vmem:[%s3430_s18 + $0x40] sm:$0xff]  ;;  %v3562_v23 = vld [vmem:[%s3430_s18 + $0x50] sm:$0xff]  ;;  %v3044_v28 = vpack.c.bf16 %v2393_v22, %v2392_v21  ;;  %v2507_v35 = vld [vmem:[%s3412_s12 + $0x1c8] sm:$0xff] }
  0x2b   : > { %2733 = vmatmul.mubr.msk.f32.gmra.mrb[2].mxu1 %vm410_vm0, %v3453_v38  ;;  %3085 = vmatprep.subr.bf16.mxu0 %v3084_v39  ;;  %v2488_v24 = vld [vmem:[%s3412_s12 + $0x1b0] sm:$0xff]  ;;  %v3569_v26 = vld [vmem:[%s3430_s18 + $0x62] sm:$0xff]  ;;  %v2413_v43 = vld [vmem:[%s3412_s12 + $0xd8] sm:$0xff] }
  0x2c   : > { %2845 = vmatmul.mubr.msk.f32.gmra.mrb[2].mxu0 %vm410_vm0, %v3464_v44  ;;  %3023 = vmatpush3.bf16.msra.mxu1 %v3020_v37  ;;  %v3574_v27 = vld [vmem:[%s3430_s18 + $0x60] sm:$0xff]  ;;  %v3579_v29 = vld [vmem:[%s3430_s18 + $0x72] sm:$0xff]  ;;  %v3108_v30 = vpack.c.bf16 %v2489_v25, %v2488_v24  ;;  %v2415_v51 = vld [vmem:[%s3412_s12 + $0xe8] sm:$0xff] }
  0x2d   : > { %3087 = vmatpush3.bf16.msra.mxu0 %v3084_v39  ;;  %2735 = vmatprep.mubr.msk.f32.mxu1 %vm410_vm0, %v3464_v44  ;;  %v2410_v31 = vld [vmem:[%s3412_s12 + $0xc0] sm:$0xff]  ;;  %v3586_v33 = vld [vmem:[%s3430_s18 + $0x70] sm:$0xff]  ;;  %v2417_v59 = vld [vmem:[%s3412_s12 + $0xf8] sm:$0xff] }
  0x2e   : > { %2847 = vmatprep.mubr.msk.f32.mxu0 %vm410_vm0, %v3471_v46  ;;  %3025 = vmatprep.subr.bf16.mxu1 %v3024_v45  ;;  %v2506_v34 = vld [vmem:[%s3412_s12 + $0x1c0] sm:$0xff]  ;;  %v3048_v40 = vpack.c.bf16 %v2411_v32, %v2410_v31  ;;  %v2412_v42 = vld [vmem:[%s3412_s12 + $0xd0] sm:$0xff]  ;;  %v2531_v4 = vld [vmem:[%s3412_s12 + $0x208] sm:$0xff] }
  0x2f   : > { %2736 = vmatmul.mubr.msk.f32.gmra.mrb[4].mxu1 %vm410_vm0, %v3471_v46  ;;  %3089 = vmatprep.subr.bf16.mxu0 %v3088_v47  ;;  %v3593_v37 = vld [vmem:[%s3430_s18 + $0x82] sm:$0xff]  ;;  %v3112_v41 = vpack.c.bf16 %v2507_v35, %v2506_v34  ;;  %v3052_v48 = vpack.c.bf16 %v2413_v43, %v2412_v42  ;;  %v2416_v58 = vld [vmem:[%s3412_s12 + $0xf0] sm:$0xff]  ;;  %v2533_v11 = vld [vmem:[%s3412_s12 + $0x218] sm:$0xff] }
  0x30   : > { %2848 = vmatmul.mubr.msk.f32.gmra.mrb[4].mxu0 %vm410_vm0, %v3482_v52  ;;  %3027 = vmatpush3.bf16.msra.mxu1 %v3024_v45  ;;  %v669_v39 = vld [vmem:[%s3430_s18 + $0x2] sm:$0xff]  ;;  %v2508_v45 = vld [vmem:[%s3412_s12 + $0x1d0] sm:$0xff] }
  0x31   : > { %3091 = vmatpush3.bf16.msra.mxu0 %v3088_v47  ;;  %2738 = vmatprep.mubr.msk.f32.mxu1 %vm410_vm0, %v3482_v52  ;;  %v2509_v47 = vld [vmem:[%s3412_s12 + $0x1d8] sm:$0xff]  ;;  %v2414_v50 = vld [vmem:[%s3412_s12 + $0xe0] sm:$0xff]  ;;  %v2481_v5 = vld [vmem:[%s3430_s18 + $0x90] sm:$0xff] }
  0x32   : > { %2850 = vmatprep.mubr.msk.f32.mxu0 %vm410_vm0, %v3489_v54  ;;  %3029 = vmatprep.subr.bf16.mxu1 %v3028_v53  ;;  %v3116_v49 = vpack.c.bf16 %v2509_v47, %v2508_v45  ;;  %v3056_v56 = vpack.c.bf16 %v2415_v51, %v2414_v50  ;;  %v2530_v2 = vld [vmem:[%s3412_s12 + $0x200] sm:$0xff]  ;;  %v2535_v15 = vld [vmem:[%s3412_s12 + $0x228] sm:$0xff] }
  0x33   : > { %2739 = vmatmul.mubr.msk.f32.gmra.mrb[6].mxu1 %vm410_vm0, %v3489_v54  ;;  %3093 = vmatprep.subr.bf16.mxu0 %v3092_v55  ;;  %v2534_v14 = vld [vmem:[%s3412_s12 + $0x220] sm:$0xff] }
  0x34   : > { %2851 = vmatmul.mubr.msk.f32.gmra.mrb[6].mxu0 %vm410_vm0, %v3500_v60  ;;  %3031 = vmatpush3.bf16.msra.mxu1 %v3028_v53  ;;  %v2510_v53 = vld [vmem:[%s3412_s12 + $0x1e0] sm:$0xff] }
  0x35   : > { %3095 = vmatpush3.bf16.msra.mxu0 %v3092_v55  ;;  %2757 = vmatprep.mubr.msk.f32.mxu1 %vm410_vm0, %v377_v61  ;;  %v2511_v55 = vld [vmem:[%s3412_s12 + $0x1e8] sm:$0xff]  ;;  %v2512_v61 = vld [vmem:[%s3412_s12 + $0x1f0] sm:$0xff] }
  0x36   : > { %2869 = vmatprep.mubr.msk.f32.mxu0 %vm410_vm0, %v3508_v63  ;;  %3033 = vmatprep.subr.bf16.mxu1 %v3032_v62  ;;  %v3120_v57 = vpack.c.bf16 %v2511_v55, %v2510_v53 }
  0x37   : > { %2758 = vmatmul.mubr.msk.f32.vlgmr.msra.gmra.mrb[0].mxu1 %vm410_vm0, %v3515_v3  ;;  %3097 = vmatprep.subr.bf16.mxu0 %v3096_v0 }
  0x38   : > { %2870 = vmatmul.mubr.msk.f32.vlgmr.msra.gmra.mrb[0].mxu0 %vm410_vm0, %v3521_v6  ;;  %3035 = vmatpush3.bf16.msra.mxu1 %v3032_v62  ;;  %v2513_v62 = vld [vmem:[%s3412_s12 + $0x1f8] sm:$0xff] }
  0x39   : > { %3099 = vmatpush3.bf16.msra.mxu0 %v3096_v0  ;;  %2760 = vmatprep.mubr.msk.f32.mxu1 %vm410_vm0, %v3526_v7  ;;  %v2480_v0 = vld [vmem:[%s3430_s18 + $0x80] sm:$0xff]  ;;  %v3124_v1 = vpack.c.bf16 %v2513_v62, %v2512_v61 }
  0x3a   : > { %2872 = vmatprep.mubr.msk.f32.mxu0 %vm410_vm0, %v3531_v9  ;;  %3037 = vmatprep.subr.bf16.mxu1 %v3036_v8 }
  0x3b   : > { %2761 = vmatmul.mubr.msk.f32.gmra.mrb[2].mxu1 %vm410_vm0, %v3538_v13  ;;  %3101 = vmatprep.subr.bf16.mxu0 %v3100_v10 }
  0x3c   : > { %2873 = vmatmul.mubr.msk.f32.gmra.mrb[2].mxu0 %vm410_vm0, %v3545_v16  ;;  %3039 = vmatpush3.bf16.msra.mxu1 %v3036_v8  ;;  %v3128_v8 = vpack.c.bf16 %v2531_v4, %v2530_v2 }
  0x3d   : > { %3103 = vmatpush3.bf16.msra.mxu0 %v3100_v10  ;;  %2763 = vmatprep.mubr.msk.f32.mxu1 %vm410_vm0, %v3550_v17  ;;  %v2532_v10 = vld [vmem:[%s3412_s12 + $0x210] sm:$0xff] }
  0x3e   : > { %2875 = vmatprep.mubr.msk.f32.mxu0 %vm410_vm0, %v3555_v19  ;;  %3041 = vmatprep.subr.bf16.mxu1 %v3040_v18  ;;  %v3132_v12 = vpack.c.bf16 %v2533_v11, %v2532_v10 }
  0x3f   : > { %2764 = vmatmul.mubr.msk.f32.gmra.mrb[4].mxu1 %vm410_vm0, %v3562_v23  ;;  %3105 = vmatprep.subr.bf16.mxu0 %v3104_v20 }
  0x40   : > { %2876 = vmatmul.mubr.msk.f32.gmra.mrb[4].mxu0 %vm410_vm0, %v3569_v26  ;;  %3043 = vmatpush3.bf16.msra.mxu1 %v3040_v18 }
  0x41   : > { %3107 = vmatpush3.bf16.msra.mxu0 %v3104_v20  ;;  %2766 = vmatprep.mubr.msk.f32.mxu1 %vm410_vm0, %v3574_v27 }
  0x42   : > { %2878 = vmatprep.mubr.msk.f32.mxu0 %vm410_vm0, %v3579_v29  ;;  %3045 = vmatprep.subr.bf16.mxu1 %v3044_v28 }
  0x43   : > { %2767 = vmatmul.mubr.msk.f32.gmra.mrb[6].mxu1 %vm410_vm0, %v3586_v33  ;;  %3109 = vmatprep.subr.bf16.mxu0 %v3108_v30 }
  0x44   : > { %2879 = vmatmul.mubr.msk.f32.gmra.mrb[6].mxu0 %vm410_vm0, %v3593_v37  ;;  %3047 = vmatpush3.bf16.msra.mxu1 %v3044_v28 }
  0x45   : > { %3111 = vmatpush3.bf16.msra.mxu0 %v3108_v30  ;;  %2785 = vmatprep.mubr.msk.f32.mxu1 %vm410_vm0, %v669_v39 }
  0x46   : > { %2897 = vmatprep.mubr.msk.f32.mxu0 %vm410_vm0, %v3526_v7  ;;  %3049 = vmatprep.subr.bf16.mxu1 %v3048_v40 }
  0x47   : > { %2786 = vmatmul.mubr.msk.f32.vlgmr.msra.gmra.mrb[0].mxu1 %vm410_vm0, %v3508_v63  ;;  %3113 = vmatprep.subr.bf16.mxu0 %v3112_v41  ;;  %v3060_v63 = vpack.c.bf16 %v2417_v59, %v2416_v58 }
  0x48   : > { %2898 = vmatmul.mubr.msk.f32.vlgmr.msra.gmra.mrb[0].mxu0 %vm410_vm0, %v3538_v13  ;;  %3051 = vmatpush3.bf16.msra.mxu1 %v3048_v40 }
  0x49   : > { %3115 = vmatpush3.bf16.msra.mxu0 %v3112_v41  ;;  %2788 = vmatprep.mubr.msk.f32.mxu1 %vm410_vm0, %v3521_v6 }
  0x4a   : > { %2900 = vmatprep.mubr.msk.f32.mxu0 %vm410_vm0, %v3550_v17  ;;  %3053 = vmatprep.subr.bf16.mxu1 %v3052_v48 }
  0x4b   : > { %2789 = vmatmul.mubr.msk.f32.gmra.mrb[2].mxu1 %vm410_vm0, %v3531_v9  ;;  %3117 = vmatprep.subr.bf16.mxu0 %v3116_v49 }
  0x4c   : > { %2901 = vmatmul.mubr.msk.f32.gmra.mrb[2].mxu0 %vm410_vm0, %v3562_v23  ;;  %3055 = vmatpush3.bf16.msra.mxu1 %v3052_v48 }
  0x4d   : > { %3119 = vmatpush3.bf16.msra.mxu0 %v3116_v49  ;;  %2791 = vmatprep.mubr.msk.f32.mxu1 %vm410_vm0, %v3545_v16 }
  0x4e   : > { %2903 = vmatprep.mubr.msk.f32.mxu0 %vm410_vm0, %v3574_v27  ;;  %3057 = vmatprep.subr.bf16.mxu1 %v3056_v56 }
  0x4f   : > { %2792 = vmatmul.mubr.msk.f32.gmra.mrb[4].mxu1 %vm410_vm0, %v3555_v19  ;;  %3121 = vmatprep.subr.bf16.mxu0 %v3120_v57 }
  0x50   : > { %2904 = vmatmul.mubr.msk.f32.gmra.mrb[4].mxu0 %vm410_vm0, %v3586_v33  ;;  %3059 = vmatpush3.bf16.msra.mxu1 %v3056_v56 }
  0x51   : > { %3123 = vmatpush3.bf16.msra.mxu0 %v3120_v57  ;;  %2794 = vmatprep.mubr.msk.f32.mxu1 %vm410_vm0, %v3569_v26 }
  0x52   : > { %2906 = vmatprep.mubr.msk.f32.mxu0 %vm410_vm0, %v2480_v0  ;;  %3061 = vmatprep.subr.bf16.mxu1 %v3060_v63 }
  0x53   : > { %2795 = vmatmul.mubr.msk.f32.gmra.mrb[6].mxu1 %vm410_vm0, %v3579_v29  ;;  %3125 = vmatprep.subr.bf16.mxu0 %v3124_v1 }
  0x54   : > { %2907 = vmatmul.mubr.msk.f32.gmra.mrb[6].mxu0 %vm410_vm0, %v2481_v5  ;;  %3063 = vmatpush3.bf16.msra.mxu1 %v3060_v63 }
  0x55   : > { %3127 = vmatpush3.bf16.msra.mxu0 %v3124_v1  ;;  %2813 = vmatprep.mubr.msk.f32.mxu1 %vm410_vm0, %v3515_v3  ;;  %v2536_v3 = vld [vmem:[%s3412_s12 + $0x230] sm:$0xff] }
  0x56   : > { %2925 = vmatprep.mubr.msk.f32.mxu0 %vm410_vm0, %v3449_v36  ;;  %3129 = vmatprep.subr.bf16.mxu0 %v3128_v8  ;;  %v3136_v36 = vpack.c.bf16 %v2535_v15, %v2534_v14 }
  0x57   : > { %2814 = vmatmul.mubr.msk.f32.vlgmr.msra.gmra.mrb[0].mxu1 %vm410_vm0, %v3526_v7  ;;  %v2537_v7 = vld [vmem:[%s3412_s12 + $0x238] sm:$0xff] }
  0x58   : > { %2926 = vmatmul.mubr.msk.f32.vlgmr.msra.gmra.mrb[0].mxu0 %vm410_vm0, %v3453_v38  ;;  %2816 = vmatprep.mubr.msk.f32.mxu1 %vm410_vm0, %v3538_v13  ;;  %v3140_v38 = vpack.c.bf16 %v2537_v7, %v2536_v3 }
  0x59   : > { %3131 = vmatpush3.bf16.msra.mxu0 %v3128_v8  ;;  %2928 = vmatprep.mubr.msk.f32.mxu0 %vm410_vm0, %v3464_v44  ;;  %v2505_v44 = vld [vmem:[%s3430_s18 + $0x91] sm:$0xff] }
  0x5a   : > { %3133 = vmatprep.subr.bf16.mxu0 %v3132_v12 }
  0x5b   : > { %2817 = vmatmul.mubr.msk.f32.gmra.mrb[2].mxu1 %vm410_vm0, %v3550_v17 }
  0x5c   : > { %2929 = vmatmul.mubr.msk.f32.gmra.mrb[2].mxu0 %vm410_vm0, %v3471_v46  ;;  %2819 = vmatprep.mubr.msk.f32.mxu1 %vm410_vm0, %v3562_v23  ;;  %v2529_v46 = vld [vmem:[%s3430_s18 + $0x92] sm:$0xff]  ;;  %s364_s18 = scalar_lea.vmem %s3894_s3, %s3910_s24 }
  0x5d   : > { %3135 = vmatpush3.bf16.msra.mxu0 %v3132_v12  ;;  %2931 = vmatprep.mubr.msk.f32.mxu0 %vm410_vm0, %v3482_v52 }
  0x5e   : > { %3137 = vmatprep.subr.bf16.mxu0 %v3136_v36 }
  0x5f   : > { %2820 = vmatmul.mubr.msk.f32.gmra.mrb[4].mxu1 %vm410_vm0, %v3574_v27 }
  0x60   : > { %2932 = vmatmul.mubr.msk.f32.gmra.mrb[4].mxu0 %vm410_vm0, %v3489_v54  ;;  %2822 = vmatprep.mubr.msk.f32.mxu1 %vm410_vm0, %v3586_v33 }
  0x61   : > { %3139 = vmatpush3.bf16.msra.mxu0 %v3136_v36  ;;  %2934 = vmatprep.mubr.msk.f32.mxu0 %vm410_vm0, %v3500_v60 }
  0x62   : > { %3141 = vmatprep.subr.bf16.mxu0 %v3140_v38 }
  0x63   : > { %2823 = vmatmul.mubr.msk.f32.gmra.mrb[6].mxu1 %vm410_vm0, %v2480_v0 }
  0x64   : > { %2935 = vmatmul.mubr.msk.f32.gmra.mrb[6].mxu0 %vm410_vm0, %v2505_v44 }
  0x65   : > { %3143 = vmatpush3.bf16.msra.mxu0 %v3140_v38  ;;  %2953 = vmatprep.mubr.msk.f32.mxu0 %vm410_vm0, %v3521_v6 }
  0x68   : > { %2954 = vmatmul.mubr.msk.f32.vlgmr.msra.gmra.mrb[0].mxu0 %vm410_vm0, %v3531_v9 }
  0x69   : > { %2956 = vmatprep.mubr.msk.f32.mxu0 %vm410_vm0, %v3545_v16 }
  0x6c   : > { %2957 = vmatmul.mubr.msk.f32.gmra.mrb[2].mxu0 %vm410_vm0, %v3555_v19  ;;  %v2546_v19 = vld [vmem:[%s361_s21] ss:$0 sm:$0xff]  ;;  %s367_s21 = scalar_lea.vmem %s3895_s4, %s3910_s24 }
  0x6d   : > { %2959 = vmatprep.mubr.msk.f32.mxu0 %vm410_vm0, %v3569_v26 }
  0x70   : > { %2960 = vmatmul.mubr.msk.f32.gmra.mrb[4].mxu0 %vm410_vm0, %v3579_v29 }
  0x71   : > { %2962 = vmatprep.mubr.msk.f32.mxu0 %vm410_vm0, %v3593_v37 }
  0x74   : > { %2963 = vmatmul.mubr.msk.f32.gmra.mrb[6].mxu0 %vm410_vm0, %v2529_v46 }
 0x12a   : > { %v2815_v52 = vpop.f32.mrb[0].mxu1 }
 0x12b   : > { %v931_v54 = vpop.f32.mrb[1].mxu1 }
 0x12e   : > { %v2818_v60 = vpop.f32.mrb[2].mxu1 }
 0x12f   : > { %v941_v6 = vpop.f32.mrb[3].mxu1 }
 0x132   : > { %v2821_v9 = vpop.f32.mrb[4].mxu1 }
 0x133   : > { %v951_v13 = vpop.f32.mrb[5].mxu1 }
 0x136   : > { %v2824_v16 = vpop.f32.mrb[6].mxu1 }
 0x137   : > { %v961_v17 = vpop.f32.mrb[7].mxu1 }
 0x13b   : > { %v2955_v18 = vpop.f32.mrb[0].mxu0 }
 0x13c   : > { %v3176_v20 = vadd.f32 %v2955_v18, %v2815_v52  ;;  %v1702_v21 = vpop.f32.mrb[1].mxu0 }
 0x13d   : > { %v3177_v22 = vadd.f32 %v1702_v21, %v931_v54 }
 0x13e   : > { %v1757_v23 = vadd.f32 %v3176_v20, %v2546_v19 }
 0x13f   : > { %v1756_v24 = vadd.f32 %v3177_v22, %v2546_v19  ;;  %v2958_v25 = vpop.f32.mrb[2].mxu0 }
 0x140   : > { %v3178_v26 = vadd.f32 %v2958_v25, %v2818_v60  ;;  %v1712_v27 = vpop.f32.mrb[3].mxu0  ;;  %v1765_v28 = vmax.f32 %v1757_v23, 0.0 }
 0x141   : > { %v1764_v29 = vmax.f32 %v1756_v24, 0.0  ;;  %v3179_v30 = vadd.f32 %v1712_v27, %v941_v6 }
 0x142   : > { %v1759_v31 = vadd.f32 %v3178_v26, %v2546_v19 }
 0x143   : > { %v1758_v32 = vadd.f32 %v3179_v30, %v2546_v19  ;;  %v2961_v33 = vpop.f32.mrb[4].mxu0  ;;  %v1772_v37 = vadd.f32 %v1765_v28, %v1764_v29  ;;  %v2072_v30 = vld [vmem:[%s3896_s5 + $0x8] sm:$0xff] }
 0x144   : > { %v3180_v34 = vadd.f32 %v2961_v33, %v2821_v9  ;;  %v1722_v35 = vpop.f32.mrb[5].mxu0  ;;  %v1767_v41 = vmax.f32 %v1759_v31, 0.0  ;;  %v2073_v33 = vld [vmem:[%s3896_s5 + $0x10] sm:$0xff] }
 0x145   : > { %v1766_v39 = vmax.f32 %v1758_v32, 0.0  ;;  %v3181_v40 = vadd.f32 %v1722_v35, %v951_v13  ;;  %v2075_v35 = vld [vmem:[%s3896_s5 + $0x20] sm:$0xff] }
 0x146   : > { %v1761_v43 = vadd.f32 %v3180_v34, %v2546_v19  ;;  %v2074_v34 = vld [vmem:[%s3896_s5 + $0x18] sm:$0xff] }
 0x147   : > { %v1773_v42 = vadd.f32 %v1772_v37, %v1766_v39  ;;  %v1760_v45 = vadd.f32 %v3181_v40, %v2546_v19  ;;  %v2964_v47 = vpop.f32.mrb[6].mxu0  ;;  %v2076_v40 = vld [vmem:[%s3896_s5 + $0x28] sm:$0xff] }
 0x148   : > { %v3182_v48 = vadd.f32 %v2964_v47, %v2824_v16  ;;  %v1732_v49 = vpop.f32.mrb[7].mxu0  ;;  %v1769_v55 = vmax.f32 %v1761_v43, 0.0  ;;  %v2077_v43 = vld [vmem:[%s3896_s5 + $0x30] sm:$0xff] }
 0x149   : > { %v1768_v50 = vmax.f32 %v1760_v45, 0.0  ;;  %v1774_v51 = vadd.f32 %v1773_v42, %v1767_v41  ;;  %v3183_v53 = vadd.f32 %v1732_v49, %v961_v17  ;;  %v2078_v45 = vld [vmem:[%s3896_s5 + $0x38] sm:$0xff]  ;;  %v2080_v49 = vld [vmem:[%s3896_s5 + $0x48] sm:$0xff] }
 0x14a   : > { %v1763_v58 = vadd.f32 %v3182_v48, %v2546_v19  ;;  %v3156_v47 = vpack.c.bf16 %v2078_v45, %v2077_v43  ;;  %v2079_v48 = vld [vmem:[%s3896_s5 + $0x40] sm:$0xff] }
 0x14b   : > { %v1775_v56 = vadd.f32 %v1774_v51, %v1768_v50  ;;  %v1762_v57 = vadd.f32 %v3183_v53, %v2546_v19  ;;  %v2081_v51 = vld [vmem:[%s3896_s5 + $0x50] sm:$0xff]  ;;  %v2082_v53 = vld [vmem:[%s3896_s5 + $0x58] sm:$0xff] }
 0x14c   : > { %v1771_v62 = vmax.f32 %v1763_v58, 0.0 }
 0x14d   : > { %v1770_v59 = vmax.f32 %v1762_v57, 0.0  ;;  %v1776_v61 = vadd.f32 %v1775_v56, %v1769_v55  ;;  %v2083_v56 = vld [vmem:[%s3896_s5 + $0x60] sm:$0xff]  ;;  %v2084_v57 = vld [vmem:[%s3896_s5 + $0x68] sm:$0xff] }
 0x14e   : > { %v3168_v58 = vpack.c.bf16 %v2084_v57, %v2083_v56 }
 0x14f   : > { %v1777_v63 = vadd.f32 %v1776_v61, %v1770_v59  ;;  %v2086_v61 = vld [vmem:[%s3896_s5 + $0x78] sm:$0xff] }
 0x151   : > { %v1778_v0 = vadd.f32 %v1777_v63, %v1771_v62 }
 0x153   : > { %1779 = vadd.xlane.f32.xlu0 %v1778_v0 }
 0x1e0   : > { %v1780_v1 = vpop.xlane.xlu0 %1779 }
 0x1e1   : > { %v1781_v2 = vrot.slane %v1780_v1, 4 }
 0x1e3   : > { %v1782_v4 = vadd.f32 %v1781_v2, %v1780_v1  ;;  %v1838_v1 = vlaneseq }
 0x1e5   : > { %v1783_v5 = vrot.slane %v1782_v4, 2  ;;  %v1839_v2 = vshrl.u32 %v1838_v1, 7 }
 0x1e7   : > { %v1784_v8 = vadd.f32 %v1783_v5, %v1782_v4  ;;  %v3332_v4 = vmov 1983009808  }
 0x1e8   : > { %v1876_v5 = vunpack.c.l.s4 %v3332_v4 }
 0x1e9   : > { %v1785_v10 = vrot.slane %v1784_v8, 1 }
 0x1eb   : > { %v1786_v11 = vadd.f32 %v1785_v10, %v1784_v8  ;;  %v1834_v8 = vld [vmem:[%s364_s18] sm:$0x1]  ;;  %v1840_v10 = vsub.s32 0, %v1839_v2 }
 0x1ed   : > { %3243 = vpush %v1786_v11 }
 0x21e   : > { %s3244_s22 = spop %3243 }
 0x21f   : > { %s3704_s23 = smul.f32 0.00012207031, %s3244_s22  ;;  %s2359_s22 = sshll.u32 %s3910_s24, 2 }
 0x220   : > { %s374_s9 = sadd.s32 %s2360_s8, %s2359_s22 }
 0x221   : > { %v1791_v12 = vstv %s3704_s23  ;;  %s1824_s10 = smul.f32 %s3704_s23, %s3704_s23 }
 0x222   : > { %v3707_v14 = vsub.f32 %v1764_v29, %v1791_v12  ;;  %v3709_v15 = vsub.f32 %v1765_v28, %v1791_v12  ;;  %v3711_v36 = vsub.f32 %v1766_v39, %v1791_v12  ;;  %v3713_v3 = vsub.f32 %v1767_v41, %v1791_v12  ;;  %v2071_v29 = vld [vmem:[%s3896_s5] sm:$0xff] }
 0x223   : > { %v3719_v44 = vsub.f32 %v1768_v50, %v1791_v12  ;;  %v3723_v54 = vsub.f32 %v1769_v55, %v1791_v12  ;;  %v3727_v9 = vsub.f32 %v1770_v59, %v1791_v12  ;;  %v3731_v17 = vsub.f32 %v1771_v62, %v1791_v12  ;;  %v2085_v59 = vld [vmem:[%s3896_s5 + $0x70] sm:$0xff]  ;;  %s1825_s11 = smul.f32 0.0, %s1824_s10  ;;  %s2361_s10 = sshll.u32 %s374_s9, 2 }
 0x224   : > { %v1800_v7 = vmul.f32 %v3707_v14, %v3707_v14  ;;  %v1801_v38 = vmul.f32 %v3709_v15, %v3709_v15  ;;  %v1802_v46 = vmul.f32 %v3711_v36, %v3711_v36  ;;  %v1803_v60 = vmul.f32 %v3713_v3, %v3713_v3 }
 0x225   : > { %v1804_v13 = vmul.f32 %v3719_v44, %v3719_v44  ;;  %v1805_v18 = vmul.f32 %v3723_v54, %v3723_v54  ;;  %v1806_v20 = vmul.f32 %v3727_v9, %v3727_v9  ;;  %v1807_v22 = vmul.f32 %v3731_v17, %v3731_v17 }
 0x226   : > { %v1808_v52 = vadd.f32 %v1801_v38, %v1800_v7  ;;  %v3144_v31 = vpack.c.bf16 %v2072_v30, %v2071_v29  ;;  %v3148_v39 = vpack.c.bf16 %v2074_v34, %v2073_v33  ;;  %v3152_v41 = vpack.c.bf16 %v2076_v40, %v2075_v35 }
 0x227   : > { %v3160_v50 = vpack.c.bf16 %v2080_v49, %v2079_v48  ;;  %v3164_v55 = vpack.c.bf16 %v2082_v53, %v2081_v51  ;;  %v3172_v62 = vpack.c.bf16 %v2086_v61, %v2085_v59  ;;  %v1877_v12 = vunpack.c.0.s8 %v1876_v5 }
 0x228   : > { %v1809_v6 = vadd.f32 %v1808_v52, %v1802_v46  ;;  %3145 = vmatprep.subr.bf16.mxu1 %v3144_v31  ;;  %v2547_v52 = vld [vmem:[%s367_s21] ss:$0 sm:$0xff] }
 0x229   : > { %3147 = vmatpush3.bf16.msra.mxu1 %v3144_v31  ;;  %v3797_v46 = vsub.s32 %v1877_v12, %v1839_v2 }
 0x22a   : > { %v1810_v16 = vadd.f32 %v1809_v6, %v1803_v60  ;;  %3149 = vmatprep.subr.bf16.mxu1 %v3148_v39 }
 0x22c   : > { %v1811_v19 = vadd.f32 %v1810_v16, %v1804_v13 }
 0x22d   : > { %3151 = vmatpush3.bf16.msra.mxu1 %v3148_v39 }
 0x22e   : > { %v1812_v21 = vadd.f32 %v1811_v19, %v1805_v18  ;;  %3153 = vmatprep.subr.bf16.mxu1 %v3152_v41 }
 0x230   : > { %v1813_v23 = vadd.f32 %v1812_v21, %v1806_v20 }
 0x231   : > { %3155 = vmatpush3.bf16.msra.mxu1 %v3152_v41 }
 0x232   : > { %v1814_v24 = vadd.f32 %v1813_v23, %v1807_v22  ;;  %3157 = vmatprep.subr.bf16.mxu1 %v3156_v47 }
 0x234   : > { %1815 = vadd.xlane.f32.xlu0 %v1814_v24 }
 0x235   : > { %3159 = vmatpush3.bf16.msra.mxu1 %v3156_v47 }
 0x236   : > { %3161 = vmatprep.subr.bf16.mxu1 %v3160_v50 }
 0x239   : > { %3163 = vmatpush3.bf16.msra.mxu1 %v3160_v50 }
 0x23a   : > { %3165 = vmatprep.subr.bf16.mxu1 %v3164_v55 }
 0x23d   : > { %3167 = vmatpush3.bf16.msra.mxu1 %v3164_v55 }
 0x23e   : > { %3169 = vmatprep.subr.bf16.mxu1 %v3168_v58 }
 0x241   : > { %3171 = vmatpush3.bf16.msra.mxu1 %v3168_v58 }
 0x242   : > { %3173 = vmatprep.subr.bf16.mxu1 %v3172_v62 }
 0x245   : > { %3175 = vmatpush3.bf16.msra.mxu1 %v3172_v62 }
 0x2c1   : > { %v1816_v25 = vpop.xlane.xlu0 %1815 }
 0x2c2   : > { %v1817_v26 = vrot.slane %v1816_v25, 4 }
 0x2c4   : > { %v1818_v27 = vadd.f32 %v1817_v26, %v1816_v25 }
 0x2c6   : > { %v1819_v28 = vrot.slane %v1818_v27, 2 }
 0x2c8   : > { %v1820_v32 = vadd.f32 %v1819_v28, %v1818_v27 }
 0x2ca   : > { %v1821_v37 = vrot.slane %v1820_v32, 1 }
 0x2cc   : > { %v1822_v42 = vadd.f32 %v1821_v37, %v1820_v32 }
 0x2ce   : > { %3245 = vpush %v1822_v42 }
 0x2ff   : > { %s3246_s12 = spop %3245 }
 0x300   : > { %s1826_s13 = sadd.f32 %s3246_s12, %s1825_s11 }
 0x302   : > { %s1829_s14 = smul.f32 0.00012207031, %s1826_s13 }
 0x304   : > { %s1830_s15 = sadd.f32 1e-05, %s1829_s14 }
 0x306   : > { %v1831_v63 = vstv %s1830_s15  ;;  %s376_s15 = scalar_lea.vmem %s3898_s7, %s2361_s10 }
 0x307   : > { %3290 = vrsqrt.f32 %v1831_v63 }
 0x311   : > { %v3291_v0 = vpop.eup %3290 }
 0x312   : > { %3247 = vpush %v3291_v0 }
 0x343   : > { %s3248_s23 = spop %3247 }
 0x344   : > { %v1835_v11 = vstv %s3248_s23 }
 0x345   : > { %v1836_v7 = vmul.f32 %v1835_v11, %v1834_v8 }
 0x347   : > { %v1841_v38 = vrot.slane %v1836_v7, %v1840_v10 }
 0x349   : > { %v1847_v60 = vmul.f32 %v1841_v38, %v3719_v44  ;;  %v1848_v6 = vmul.f32 %v1841_v38, %v3723_v54  ;;  %v1843_v13 = vmul.f32 %v1841_v38, %v3707_v14  ;;  %v1844_v16 = vmul.f32 %v1841_v38, %v3709_v15 }
 0x34a   : > { %v1845_v18 = vmul.f32 %v1841_v38, %v3711_v36  ;;  %v1846_v19 = vmul.f32 %v1841_v38, %v3713_v3  ;;  %v1849_v20 = vmul.f32 %v1841_v38, %v3727_v9  ;;  %v1850_v21 = vmul.f32 %v1841_v38, %v3731_v17 }
 0x34b   : > { %v1858_v22 = vadd.f32 %v2547_v52, %v1843_v13  ;;  %v1859_v23 = vadd.f32 %v2547_v52, %v1844_v16  ;;  %v1862_v24 = vadd.f32 %v2547_v52, %v1847_v60  ;;  %v1863_v25 = vadd.f32 %v2547_v52, %v1848_v6 }
 0x34c   : > { %v1860_v26 = vadd.f32 %v2547_v52, %v1845_v18  ;;  %v1861_v44 = vadd.f32 %v2547_v52, %v1846_v19  ;;  %v1864_v27 = vadd.f32 %v2547_v52, %v1849_v20  ;;  %v1865_v54 = vadd.f32 %v2547_v52, %v1850_v21 }
 0x34d   : > { %v1866_v28 = vmax.f32 %v1858_v22, %v1859_v23  ;;  %v1868_v14 = vmax.f32 %v1862_v24, %v1863_v25 }
 0x34e   : > { %v1867_v29 = vmax.f32 %v1860_v26, %v1861_v44  ;;  %v3807_v15 = vmax.f32 %v1864_v27, %v1865_v54 }
 0x34f   : > { %v1874_v36 = vcombine.high %v1866_v28, %v1866_v28  ;;  %v1881_v3 = vrot.slane %v1866_v28, %v3797_v46  ;;  %v1908_v9 = vcombine.high %v1868_v14, %v1868_v14  ;;  %v3811_v17 = vrot.slane %v1868_v14, %v3797_v46 }
 0x350   : > { %v1891_v30 = vcombine.high %v1867_v29, %v1867_v29  ;;  %v1898_v31 = vrot.slane %v1867_v29, %v3797_v46  ;;  %v1925_v32 = vcombine.high %v3807_v15, %v3807_v15  ;;  %v3818_v33 = vrot.slane %v3807_v15, %v3797_v46 }
 0x351   : > { %v1888_v34 = vrot.slane %v1874_v36, %v3797_v46  ;;  %v1889_v35 = vcombine.high %v1881_v3, %v1881_v3  ;;  %v1959_v37 = vsel %vm1958_vm1, %v1881_v3, -inf  ;;  %v3823_v39 = vrot.slane %v1908_v9, %v3797_v46 }
 0x352   : > { %v1905_v40 = vrot.slane %v1891_v30, %v3797_v46  ;;  %v1906_v41 = vcombine.high %v1898_v31, %v1898_v31  ;;  %v1960_v42 = vrot.slane %v1959_v37, 4  ;;  %v1987_v43 = vsel %vm1958_vm1, %v1898_v31, -inf }
 0x353   : > { %v1890_v45 = vcombine.high %v1888_v34, %v1888_v34  ;;  %v1966_v47 = vsel %vm1958_vm1, %v1889_v35, -inf  ;;  %v1973_v48 = vsel %vm1958_vm1, %v1888_v34, -inf  ;;  %v1988_v49 = vrot.slane %v1987_v43, 4 }
 0x354   : > { %v1907_v50 = vcombine.high %v1905_v40, %v1905_v40  ;;  %v1961_v51 = vmax.f32 %v1959_v37, %v1960_v42  ;;  %v1967_v53 = vrot.slane %v1966_v47, 4  ;;  %v1974_v55 = vrot.slane %v1973_v48, 4 }
 0x355   : > { %v1980_v56 = vsel %vm1958_vm1, %v1890_v45, -inf  ;;  %v1989_v57 = vmax.f32 %v1987_v43, %v1988_v49  ;;  %v1994_v58 = vsel %vm1958_vm1, %v1906_v41, -inf  ;;  %v2001_v59 = vsel %vm1958_vm1, %v1905_v40, -inf }
 0x356   : > { %v1962_v61 = vrot.slane %v1961_v51, 2  ;;  %v1968_v62 = vmax.f32 %v1966_v47, %v1967_v53  ;;  %v1975_v63 = vmax.f32 %v1973_v48, %v1974_v55  ;;  %v1981_v0 = vrot.slane %v1980_v56, 4 }
 0x357   : > { %v1990_v1 = vrot.slane %v1989_v57, 2  ;;  %v1995_v2 = vrot.slane %v1994_v58, 4  ;;  %v2002_v4 = vrot.slane %v2001_v59, 4  ;;  %v2008_v5 = vsel %vm1958_vm1, %v1907_v50, -inf }
 0x358   : > { %v1963_v8 = vmax.f32 %v1961_v51, %v1962_v61  ;;  %v1969_v10 = vrot.slane %v1968_v62, 2  ;;  %v1976_v11 = vrot.slane %v1975_v63, 2  ;;  %v1982_v12 = vmax.f32 %v1980_v56, %v1981_v0 }
 0x359   : > { %v1991_v7 = vmax.f32 %v1989_v57, %v1990_v1  ;;  %v1996_v38 = vmax.f32 %v1994_v58, %v1995_v2  ;;  %v2003_v52 = vmax.f32 %v2001_v59, %v2002_v4  ;;  %v2009_v60 = vrot.slane %v2008_v5, 4 }
 0x35a   : > { %v1964_v6 = vrot.slane %v1963_v8, 1  ;;  %v1970_v13 = vmax.f32 %v1968_v62, %v1969_v10  ;;  %v1977_v16 = vmax.f32 %v1975_v63, %v1976_v11  ;;  %v1983_v18 = vrot.slane %v1982_v12, 2 }
 0x35b   : > { %v1992_v19 = vrot.slane %v1991_v7, 1  ;;  %v1997_v20 = vrot.slane %v1996_v38, 2  ;;  %v2004_v21 = vrot.slane %v2003_v52, 2  ;;  %v2010_v22 = vmax.f32 %v2008_v5, %v2009_v60 }
 0x35c   : > { %v1965_v23 = vmax.f32 %v1963_v8, %v1964_v6  ;;  %v1971_v24 = vrot.slane %v1970_v13, 1  ;;  %v1978_v25 = vrot.slane %v1977_v16, 1  ;;  %v1984_v26 = vmax.f32 %v1982_v12, %v1983_v18 }
 0x35d   : > { %v1993_v44 = vmax.f32 %v1991_v7, %v1992_v19  ;;  %v1998_v27 = vmax.f32 %v1996_v38, %v1997_v20  ;;  %v2005_v54 = vmax.f32 %v2003_v52, %v2004_v21  ;;  %v2011_v28 = vrot.slane %v2010_v22, 2 }
 0x35e   : > { %v1972_v14 = vmax.f32 %v1970_v13, %v1971_v24  ;;  %v1979_v29 = vmax.f32 %v1977_v16, %v1978_v25  ;;  %v1985_v36 = vrot.slane %v1984_v26, 1  ;;  %v1923_v3 = vcombine.high %v3811_v17, %v3811_v17 }
 0x35f   : > { %v1999_v9 = vrot.slane %v1998_v27, 1  ;;  %v2006_v30 = vrot.slane %v2005_v54, 1  ;;  %v2012_v31 = vmax.f32 %v2010_v22, %v2011_v28  ;;  %v1924_v34 = vcombine.high %v3823_v39, %v3823_v39 }
 0x360   : > { %v1986_v35 = vmax.f32 %v1984_v26, %v1985_v36  ;;  %v2111_v37 = vsel %vm2110_vm2, %v1972_v14, %v1965_v23  ;;  %v1939_v40 = vrot.slane %v1925_v32, %v3797_v46  ;;  %v1940_v41 = vcombine.high %v3818_v33, %v3818_v33 }
 0x361   : > { %v2000_v42 = vmax.f32 %v1998_v27, %v1999_v9  ;;  %v2007_v43 = vmax.f32 %v2005_v54, %v2006_v30  ;;  %v2013_v45 = vrot.slane %v2012_v31, 1  ;;  %v2113_v47 = vsel %vm2112_vm3, %v1979_v29, %v2111_v37 }
 0x362   : > { %v2115_v48 = vsel %vm2114_vm4, %v1986_v35, %v2113_v47  ;;  %v1941_v49 = vcombine.high %v1939_v40, %v1939_v40  ;;  %v2015_v50 = vsel %vm1958_vm1, %v3811_v17, -inf  ;;  %v2022_v51 = vsel %vm1958_vm1, %v1923_v3, -inf }
 0x363   : > { %v2014_v53 = vmax.f32 %v2012_v31, %v2013_v45  ;;  %v2117_v15 = vsel %vm2116_vm5, %v1993_v44, %v2115_v48  ;;  %v2016_v46 = vrot.slane %v2015_v50, 4  ;;  %v2023_v32 = vrot.slane %v2022_v51, 4 }
 0x364   : > { %v2119_v55 = vsel %vm2118_vm6, %v2000_v42, %v2117_v15  ;;  %v2029_v56 = vsel %vm1958_vm1, %v3823_v39, -inf  ;;  %v2036_v57 = vsel %vm1958_vm1, %v1924_v34, -inf  ;;  %v2043_v58 = vsel %vm1958_vm1, %v3818_v33, -inf }
 0x365   : > { %v2121_v59 = vsel %vm2120_vm7, %v2007_v43, %v2119_v55  ;;  %v2017_v17 = vmax.f32 %v2015_v50, %v2016_v46  ;;  %v2024_v61 = vmax.f32 %v2022_v51, %v2023_v32  ;;  %v2030_v62 = vrot.slane %v2029_v56, 4  ;;  %v2548_v46 = vld [vmem:[%s3897_s6] ss:$0 sm:$0xff] }
 0x366   : > { %v2123_v63 = vsel %vm2122_vm8, %v2014_v53, %v2121_v59  ;;  %v2037_v0 = vrot.slane %v2036_v57, 4  ;;  %v2044_v1 = vrot.slane %v2043_v58, 4  ;;  %v2050_v2 = vsel %vm1958_vm1, %v1940_v41, -inf }
 0x367   : > { %2997 = vmatprep.mubr.f32.mxu1 %v2123_v63  ;;  %v2018_v4 = vrot.slane %v2017_v17, 2  ;;  %v2025_v5 = vrot.slane %v2024_v61, 2  ;;  %v2031_v39 = vmax.f32 %v2029_v56, %v2030_v62  ;;  %v2051_v8 = vrot.slane %v2050_v2, 4 }
 0x368   : > { %v2038_v10 = vmax.f32 %v2036_v57, %v2037_v0  ;;  %v2045_v11 = vmax.f32 %v2043_v58, %v2044_v1  ;;  %v2057_v33 = vsel %vm1958_vm1, %v1939_v40, -inf  ;;  %v2064_v12 = vsel %vm1958_vm1, %v1941_v49, -inf }
 0x369   : > { %v2019_v7 = vmax.f32 %v2017_v17, %v2018_v4  ;;  %v2026_v38 = vmax.f32 %v2024_v61, %v2025_v5  ;;  %v2032_v52 = vrot.slane %v2031_v39, 2  ;;  %v2052_v60 = vmax.f32 %v2050_v2, %v2051_v8 }
 0x36a   : > { %v2039_v6 = vrot.slane %v2038_v10, 2  ;;  %v2046_v13 = vrot.slane %v2045_v11, 2  ;;  %v2058_v16 = vrot.slane %v2057_v33, 4  ;;  %v2065_v18 = vrot.slane %v2064_v12, 4 }
 0x36b   : > { %v2020_v19 = vrot.slane %v2019_v7, 1  ;;  %v2027_v20 = vrot.slane %v2026_v38, 1  ;;  %v2033_v21 = vmax.f32 %v2031_v39, %v2032_v52  ;;  %v2053_v22 = vrot.slane %v2052_v60, 2 }
 0x36c   : > { %v2040_v23 = vmax.f32 %v2038_v10, %v2039_v6  ;;  %v2047_v24 = vmax.f32 %v2045_v11, %v2046_v13  ;;  %v2059_v25 = vmax.f32 %v2057_v33, %v2058_v16  ;;  %v2066_v26 = vmax.f32 %v2064_v12, %v2065_v18 }
 0x36d   : > { %v2021_v44 = vmax.f32 %v2019_v7, %v2020_v19  ;;  %v2028_v27 = vmax.f32 %v2026_v38, %v2027_v20  ;;  %v2034_v54 = vrot.slane %v2033_v21, 1  ;;  %v2054_v28 = vmax.f32 %v2052_v60, %v2053_v22 }
 0x36e   : > { %v2041_v14 = vrot.slane %v2040_v23, 1  ;;  %v2048_v29 = vrot.slane %v2047_v24, 1  ;;  %v2060_v36 = vrot.slane %v2059_v25, 2  ;;  %v2067_v3 = vrot.slane %v2066_v26, 2 }
 0x36f   : > { %v2035_v9 = vmax.f32 %v2033_v21, %v2034_v54  ;;  %v2055_v30 = vrot.slane %v2054_v28, 1  ;;  %v2124_v31 = vsel %vm2110_vm2, %v2028_v27, %v2021_v44 }
 0x370   : > { %v2042_v34 = vmax.f32 %v2040_v23, %v2041_v14  ;;  %v2061_v35 = vmax.f32 %v2059_v25, %v2060_v36  ;;  %v2068_v37 = vmax.f32 %v2066_v26, %v2067_v3  ;;  %v2049_v40 = vmax.f32 %v2047_v24, %v2048_v29 }
 0x371   : > { %v2125_v41 = vsel %vm2112_vm3, %v2035_v9, %v2124_v31  ;;  %v2056_v42 = vmax.f32 %v2054_v28, %v2055_v30 }
 0x372   : > { %v2062_v43 = vrot.slane %v2061_v35, 1  ;;  %v2069_v45 = vrot.slane %v2068_v37, 1  ;;  %v2126_v47 = vsel %vm2114_vm4, %v2042_v34, %v2125_v41 }
 0x373   : > { %v2127_v48 = vsel %vm2116_vm5, %v2049_v40, %v2126_v47 }
 0x374   : > { %v2063_v49 = vmax.f32 %v2061_v35, %v2062_v43  ;;  %v2128_v50 = vsel %vm2118_vm6, %v2056_v42, %v2127_v48  ;;  %v2070_v51 = vmax.f32 %v2068_v37, %v2069_v45 }
 0x376   : > { %v2129_v53 = vsel %vm2120_vm7, %v2063_v49, %v2128_v50 }
 0x377   : > { %v2130_v15 = vsel %vm2122_vm8, %v2070_v51, %v2129_v53 }
 0x378   : > { %2998 = vmatmul.mubr.f32.vlgmr.msra.gmra.mrb[8].mxu1 %v2130_v15 }
 0x44b   : > { %v2999_v32 = vpop.f32.mrb[8].mxu1 }
 0x44c   : > { %v2205_v55 = vadd.f32 %v2999_v32, %v2548_v46  ;;  %v2199_v56 = vpop.f32.mrb[9].mxu1 }
 0x44d   : > { %v2200_v57 = vadd.f32 %v2548_v46, %v2199_v56 }
 0x44e   : > { %v2211_v58 = vcombine.high %v2205_v55, %v2205_v55  ;;  %2216 = vst [vmem:[%s376_s15 + $0x8] sm:$0xf] %v2205_v55 }
 0x44f   : > { %v2210_v59 = vcombine.high %v2200_v57, %v2200_v57  ;;  %2214 = vst [vmem:[%s376_s15] sm:$0xf] %v2200_v57 }
 0x450   : > { %2217 = vst [vmem:[%s376_s15 + $0xc] sm:$0xf] %v2211_v58 }
 0x451   : > { %2215 = vst [vmem:[%s376_s15 + $0x4] sm:$0xf] %v2210_v59 }
 0x452 PF: > { %s17_s28 = sadd.s32 1, %s3330_s28   ;;  %s3899_s24 = smov %s3322_s26 }
 0x453   : > { %p14_p7 = scmp.ge.s32.totalorder %s17_s28, 6   ;;  %s3900_s25 = smov %s3326_s27 }
 0x454   : > { %s3901_s26 = smov %s3904_s29  ;;  %s3902_s27 = smov %s3908_s30 }
 0x455   :  { %16 = sbr.rel (!%p14_p7) target bundleno = 3 (0x3), region = 100 }

// kernel: encoder_forward_pallas.2
= control target key start
LH: loop header
LB: loop body
LE: loop exit
PB: predicated region body
PF: predicated region fallthrough
CT: control target
= control target key end

     0   :  { %s7341_s24 = smov 0   ;;  %s7343_s25 = smov 0   ;;  %s9587_s0 = inlined_call_operand.vmem [shape: f32[2,2,18,18,32], index: 0, kind: input, shape index: {}]   ;;  %s9588_s1 = inlined_call_operand.vmem [shape: f32[2,3,3,32,64], index: 1, kind: input, shape index: {}]   ;;  %s9589_s2 = inlined_call_operand.vmem [shape: f32[2,1,64], index: 2, kind: input, shape index: {}]   ;;  %s9590_s3 = inlined_call_operand.vmem [shape: f32[2,1,64], index: 3, kind: input, shape index: {}]   ;;  %s9591_s4 = inlined_call_operand.vmem [shape: f32[2,1,64], index: 4, kind: input, shape index: {}]   ;;  %s9592_s5 = inlined_call_operand.vmem [shape: f32[64,64], index: 5, kind: input, shape index: {}]   ;;  %s9593_s6 = inlined_call_operand.vmem [shape: f32[1,64], index: 6, kind: input, shape index: {}]   ;;  %s9594_s7 = inlined_call_operand.vmem [shape: f32[2,2,8,8,64], index: 7, kind: output, shape index: {}]  }
   0x1   :  { %s7345_s26 = smov 0   ;;  %s7347_s27 = smov 0  }
   0x2   :  { %s7349_s28 = smov 0  }
   0x3 LB: > { %s26_s29 = sadd.s32 1, %s7290_s26  ;;  %s29_s30 = sadd.s32 1, %s7294_s27  ;;  %s7298_s28 = sphi %s7349_s28, %s17_s28   ;;  %s7294_s27 = sphi %s7347_s27, %s9815_s27   ;;  %s7290_s26 = sphi %s7345_s26, %s9814_s26   ;;  %s7286_s25 = sphi %s7343_s25, %s9813_s25   ;;  %s7282_s24 = sphi %s7341_s24, %s9812_s24  }
   0x4   : > { %p27_p0 = scmp.ge.s32.totalorder %s26_s29, 2  ;;  %p5457_p1 = scmp.ge.s32.totalorder %s7298_s28, 1 }
   0x5   : > { %p291_p2 = scmp.lt.s32.totalorder %s7298_s28, 5 }
   0x6   : > { %s9817_s29 = smov (%p27_p0, %s26_s29), 0  ;;  %s9819_s30 = smov (!%p27_p0, %s29_s30), %s7294_s27 }
   0x7   : > { %p292_p3 = pnand %p5457_p1, %p291_p2  ;;  %p31_p4 = scmp.ge.s32.totalorder %s9819_s30, 2 }
   0x9   : > { %s9821_s30 = smov (%p31_p4, %s9819_s30), 0  ;;  %295 = sbr.rel (%p292_p3) target bundleno = 1500 (0x5dc), region = 48 }
  0x10   : > { %p345_p5 = scmp.lt.s32.totalorder %s7286_s25, 1  ;;  %p347_p6 = scmp.lt.s32.totalorder %s7282_s24, 1  ;;  %vm450_vm0 = vcmask 261120   ;;  %vm3896_vm1 = vcmask 523264   ;;  %vm4599_vm2 = vcmask 517120   ;;  %vm5127_vm3 = vcmask 1041409  }
  0x11   : > { %vm5129_vm4 = vcmask 1042434   ;;  %vm5131_vm5 = vcmask 1043459   ;;  %vm5133_vm6 = vcmask 1044484   ;;  %vm5135_vm7 = vcmask 1045509  }
  0x12   : > { %s9823_s25 = smov (!%p345_p5, %s7286_s25), 1  ;;  %s9825_s24 = smov (!%p347_p6, %s7282_s24), 1  ;;  %vm5137_vm8 = vcmask 1046534   ;;  %vm5139_vm9 = vcmask 1047559  }
  0x13   : > { %s7209_s8 = smul.u32 108, %s9823_s25  ;;  %s361_s21 = scalar_lea.vmem %s9589_s2, %s9825_s24 }
  0x14   : > { %s7208_s9 = smul.u32 54, %s9825_s24  ;;  %s364_s16 = scalar_lea.vmem %s9590_s3, %s9825_s24 }
  0x15   : > { %s7210_s10 = smul.u32 288, %s9825_s24  ;;  %s367_s20 = scalar_lea.vmem %s9591_s4, %s9825_s24 }
  0x16   : > { %s351_s11 = sadd.s32 %s7209_s8, %s7208_s9 }
  0x17   : > { %s5458_s12 = sshll.u32 %s351_s11, 3  ;;  %s7381_s15 = scalar_lea.vmem %s9588_s1, %s7210_s10 }
  0x18   : > { %s7386_s18 = scalar_lea.vmem %s9587_s0, %s5458_s12  ;;  %v5463_v0 = vld [vmem:[%s7381_s15 + $0x20] sm:$0xff]  ;;  %v5464_v1 = vld [vmem:[%s7381_s15 + $0x28] sm:$0xff]  ;;  %v5465_v5 = vld [vmem:[%s7381_s15 + $0x30] sm:$0xff] }
  0x19   : > { %v5667_v2 = vld [vmem:[%s7381_s15 + $0x80] sm:$0xff]  ;;  %v6860_v3 = vpack.c.bf16 %v5464_v1, %v5463_v0  ;;  %v5668_v4 = vld [vmem:[%s7381_s15 + $0x88] sm:$0xff]  ;;  %v5466_v6 = vld [vmem:[%s7381_s15 + $0x38] sm:$0xff] }
  0x1a   : > { %v7394_v7 = vpack.c.bf16 %v5668_v4, %v5667_v2  ;;  %v6864_v8 = vpack.c.bf16 %v5466_v6, %v5465_v5  ;;  %v5669_v9 = vld [vmem:[%s7381_s15 + $0x90] sm:$0xff]  ;;  %v5670_v10 = vld [vmem:[%s7381_s15 + $0x98] sm:$0xff]  ;;  %v413_v11 = vld [vmem:[%s7386_s18 + $0x1] sm:$0xff] }
  0x1b   : > { %6861 = vmatprep.subr.bf16.mxu1 %v6860_v3  ;;  %v7399_v12 = vpack.c.bf16 %v5670_v10, %v5669_v9  ;;  %6336 = vmatprep.mubr.msk.f32.mxu1 %vm450_vm0, %v413_v11  ;;  %v5635_v13 = vld [vmem:[%s7386_s18 + $0x19] sm:$0xff]  ;;  %v5736_v15 = vld [vmem:[%s7381_s15 + $0xa8] sm:$0xff]  ;;  %v5737_v21 = vld [vmem:[%s7381_s15 + $0xb0] sm:$0xff] }
  0x1c   : > { %6893 = vmatprep.subr.bf16.mxu0 %v7394_v7  ;;  %6863 = vmatpush3.bf16.msra.mxu1 %v6860_v3  ;;  %v5735_v14 = vld [vmem:[%s7381_s15 + $0xa0] sm:$0xff]  ;;  %v410_v18 = vld [vmem:[%s7381_s15 + $0x8] sm:$0xff]  ;;  %v5738_v23 = vld [vmem:[%s7381_s15 + $0xb8] sm:$0xff] }
  0x1d   : > { %9673 = vst [vmem:[#allocation3_spill] sm:$0xff] %v7399_v12  ;;  %6895 = vmatpush3.bf16.msra.mxu0 %v7394_v7  ;;  %6865 = vmatprep.subr.bf16.mxu1 %v6864_v8  ;;  %v6900_v16 = vpack.c.bf16 %v5736_v15, %v5735_v14  ;;  %v409_v17 = vld [vmem:[%s7381_s15] sm:$0xff]  ;;  %v414_v19 = vld [vmem:[%s7386_s18 + $0x9] sm:$0xff]  ;;  %v7417_v24 = vld [vmem:[%s7386_s18 + $0x31] sm:$0xff]  ;;  %v6904_v25 = vpack.c.bf16 %v5738_v23, %v5737_v21 }
  0x1e   : > { %6897 = vmatprep.subr.bf16.mxu0 %v7399_v12  ;;  %6560 = vmatprep.mubr.msk.f32.mxu0 %vm450_vm0, %v5635_v13  ;;  %v6868_v20 = vpack.c.bf16 %v410_v18, %v409_v17  ;;  %v5636_v22 = vld [vmem:[%s7386_s18 + $0x21] sm:$0xff]  ;;  %v7426_v27 = vld [vmem:[%s7386_s18 + $0x39] sm:$0xff]  ;;  %v7430_v29 = vld [vmem:[%s7386_s18 + $0x49] sm:$0xff] }
  0x1f   : > { %v5803_v26 = vld [vmem:[%s7381_s15 + $0xc0] sm:$0xff]  ;;  %v5804_v28 = vld [vmem:[%s7381_s15 + $0xc8] sm:$0xff]  ;;  %v411_v31 = vld [vmem:[%s7381_s15 + $0x10] sm:$0xff] }
  0x20   : > { %6867 = vmatpush3.bf16.msra.mxu1 %v6864_v8  ;;  %v7432_v30 = vpack.c.bf16 %v5804_v28, %v5803_v26  ;;  %v412_v32 = vld [vmem:[%s7381_s15 + $0x18] sm:$0xff]  ;;  %v7447_v35 = vld [vmem:[%s7386_s18 + $0x61] sm:$0xff]  ;;  %v7459_v36 = vld [vmem:[%s7386_s18 + $0x69] sm:$0xff] }
  0x21   : > { %6899 = vmatpush3.bf16.msra.mxu0 %v7399_v12  ;;  %6869 = vmatprep.subr.bf16.mxu1 %v6868_v20  ;;  %v7444_v33 = vld [vmem:[%s7386_s18 + $0x51] sm:$0xff]  ;;  %v6872_v34 = vpack.c.bf16 %v412_v32, %v411_v31  ;;  %v7462_v37 = vld [vmem:[%s7386_s18 + $0x79] sm:$0xff]  ;;  %v7473_v38 = vld [vmem:[%s7386_s18 + $0x81] sm:$0xff] }
  0x22   : > { %6901 = vmatprep.subr.bf16.mxu0 %v6900_v16  ;;  %v7476_v39 = vld [vmem:[%s7386_s18 + $0x91] sm:$0xff]  ;;  %v5531_v40 = vld [vmem:[%s7381_s15 + $0x40] sm:$0xff]  ;;  %v5532_v41 = vld [vmem:[%s7381_s15 + $0x48] sm:$0xff] }
  0x23   : > { %6337 = vmatmul.mubr.msk.f32.vlgmr.msra.gmra.mrb[0].mxu1 %vm450_vm0, %v414_v19  ;;  %v7489_v42 = vld [vmem:[%s7386_s18 + $0x99] sm:$0xff]  ;;  %v7491_v43 = vpack.c.bf16 %v5532_v41, %v5531_v40  ;;  %v7494_v44 = vld [vmem:[%s7386_s18 + $0xa9] sm:$0xff]  ;;  %v7506_v45 = vld [vmem:[%s7386_s18 + $0xb1] sm:$0xff] }
  0x24   : > { %6561 = vmatmul.mubr.msk.f32.vlgmr.msra.gmra.mrb[0].mxu0 %vm450_vm0, %v5636_v22  ;;  %6339 = vmatprep.mubr.msk.f32.mxu1 %vm450_vm0, %v5635_v13  ;;  %9674 = vst [vmem:[#allocation4_spill] sm:$0xff] %v7489_v42  ;;  %9675 = vst [vmem:[#allocation5_spill] sm:$0xff] %v7494_v44  ;;  %v7509_v46 = vld [vmem:[%s7386_s18 + $0xc1] sm:$0xff]  ;;  %v7520_v47 = vld [vmem:[%s7386_s18 + $0xc9] sm:$0xff] }
  0x25   : > { %6903 = vmatpush3.bf16.msra.mxu0 %v6900_v16  ;;  %6563 = vmatprep.mubr.msk.f32.mxu0 %vm450_vm0, %v7417_v24  ;;  %9676 = vst [vmem:[#allocation6_spill] sm:$0xff] %v7506_v45  ;;  %9677 = vst [vmem:[#allocation7_spill] sm:$0xff] %v7509_v46  ;;  %v7523_v48 = vld [vmem:[%s7386_s18 + $0xd9] sm:$0xff]  ;;  %v7534_v49 = vld [vmem:[%s7386_s18 + $0xe1] sm:$0xff] }
  0x26   : > { %6871 = vmatpush3.bf16.msra.mxu1 %v6868_v20  ;;  %6905 = vmatprep.subr.bf16.mxu0 %v6904_v25  ;;  %9678 = vst [vmem:[#allocation8_spill] sm:$0xff] %v7520_v47  ;;  %9679 = vst [vmem:[#allocation9_spill] sm:$0xff] %v7523_v48  ;;  %v7537_v50 = vld [vmem:[%s7386_s18 + $0xf1] sm:$0xff]  ;;  %v7548_v51 = vld [vmem:[%s7386_s18 + $0xf9] sm:$0xff] }
  0x27   : > { %6340 = vmatmul.mubr.msk.f32.gmra.mrb[2].mxu1 %vm450_vm0, %v5636_v22  ;;  %6873 = vmatprep.subr.bf16.mxu1 %v6872_v34  ;;  %9680 = vst [vmem:[#allocation10_spill] sm:$0xff] %v7534_v49  ;;  %9681 = vst [vmem:[#allocation11_spill] sm:$0xff] %v7537_v50  ;;  %v7551_v52 = vld [vmem:[%s7386_s18 + $0x1a] sm:$0xff]  ;;  %v5805_v53 = vld [vmem:[%s7381_s15 + $0xd0] sm:$0xff] }
  0x28   : > { %6564 = vmatmul.mubr.msk.f32.gmra.mrb[2].mxu0 %vm450_vm0, %v7426_v27  ;;  %6342 = vmatprep.mubr.msk.f32.mxu1 %vm450_vm0, %v7417_v24  ;;  %9682 = vst [vmem:[#allocation12_spill] sm:$0xff] %v7548_v51  ;;  %v5806_v54 = vld [vmem:[%s7381_s15 + $0xd8] sm:$0xff]  ;;  %v7564_v55 = vld [vmem:[%s7386_s18 + $0x22] sm:$0xff]  ;;  %v7593_v0 = vld [vmem:[%s7386_s18 + $0x4a] sm:$0xff] }
  0x29   : > { %6566 = vmatprep.mubr.msk.f32.mxu0 %vm450_vm0, %v7430_v29  ;;  %6907 = vmatpush3.bf16.msra.mxu0 %v6904_v25  ;;  %v7567_v56 = vld [vmem:[%s7386_s18 + $0x109] sm:$0xff]  ;;  %v7570_v57 = vld [vmem:[%s7386_s18 + $0x32] sm:$0xff]  ;;  %v6912_v58 = vpack.c.bf16 %v5806_v54, %v5805_v53  ;;  %v5871_v59 = vld [vmem:[%s7381_s15 + $0xe0] sm:$0xff] }
  0x2a   : > { %6909 = vmatprep.subr.bf16.mxu0 %v7432_v30  ;;  %6875 = vmatpush3.bf16.msra.mxu1 %v6872_v34  ;;  %9683 = vst [vmem:[#allocation13_spill] sm:$0xff] %v7567_v56  ;;  %v5872_v60 = vld [vmem:[%s7381_s15 + $0xe8] sm:$0xff]  ;;  %v7581_v61 = vld [vmem:[%s7386_s18 + $0x111] sm:$0xff]  ;;  %v7587_v62 = vld [vmem:[%s7386_s18 + $0x3a] sm:$0xff] }
  0x2b   : > { %6343 = vmatmul.mubr.msk.f32.gmra.mrb[4].mxu1 %vm450_vm0, %v7426_v27  ;;  %6877 = vmatprep.subr.bf16.mxu1 %v7491_v43  ;;  %9684 = vst [vmem:[#allocation14_spill] sm:$0xff] %v7581_v61  ;;  %v7590_v63 = vld [vmem:[%s7386_s18 + $0x121] sm:$0xff]  ;;  %v7595_v1 = vpack.c.bf16 %v5872_v60, %v5871_v59  ;;  %v7604_v2 = vld [vmem:[%s7386_s18 + $0x129] sm:$0xff]  ;;  %v7609_v3 = vld [vmem:[%s7386_s18 + $0x52] sm:$0xff] }
  0x2c   : > { %6567 = vmatmul.mubr.msk.f32.gmra.mrb[4].mxu0 %vm450_vm0, %v7444_v33  ;;  %6345 = vmatprep.mubr.msk.f32.mxu1 %vm450_vm0, %v7430_v29  ;;  %9685 = vst [vmem:[#allocation15_spill] sm:$0xff] %v7590_v63  ;;  %9686 = vst [vmem:[#allocation16_spill] sm:$0xff] %v7604_v2  ;;  %v7612_v4 = vld [vmem:[%s7386_s18 + $0x139] sm:$0xff]  ;;  %v7615_v5 = vld [vmem:[%s7386_s18 + $0x62] sm:$0xff] }
  0x2d   : > { %6569 = vmatprep.mubr.msk.f32.mxu0 %vm450_vm0, %v7447_v35  ;;  %9687 = vst [vmem:[#allocation17_spill] sm:$0xff] %v7612_v4  ;;  %v7625_v6 = vld [vmem:[%s7386_s18 + $0x141] sm:$0xff]  ;;  %v7630_v8 = vld [vmem:[%s7386_s18 + $0x6a] sm:$0xff]  ;;  %v7645_v11 = vld [vmem:[%s7386_s18 + $0x159] sm:$0xff] }
  0x2e   : > { %9688 = vst [vmem:[#allocation18_spill] sm:$0xff] %v7625_v6  ;;  %v7633_v9 = vld [vmem:[%s7386_s18 + $0x151] sm:$0xff]  ;;  %v7636_v10 = vld [vmem:[%s7386_s18 + $0x7a] sm:$0xff]  ;;  %9690 = vst [vmem:[#allocation20_spill] sm:$0xff] %v7645_v11 }
  0x2f   : > { %6346 = vmatmul.mubr.msk.f32.gmra.mrb[6].mxu1 %vm450_vm0, %v7444_v33  ;;  %9689 = vst [vmem:[#allocation19_spill] sm:$0xff] %v7633_v9  ;;  %v7650_v13 = vld [vmem:[%s7386_s18 + $0x82] sm:$0xff]  ;;  %v7656_v15 = vld [vmem:[%s7386_s18 + $0x92] sm:$0xff]  ;;  %v7670_v17 = vld [vmem:[%s7386_s18 + $0x9a] sm:$0xff] }
  0x30   : > { %6570 = vmatmul.mubr.msk.f32.gmra.mrb[6].mxu0 %vm450_vm0, %v7459_v36  ;;  %6348 = vmatprep.mubr.msk.f32.mxu1 %vm450_vm0, %v7447_v35  ;;  %v7653_v14 = vld [vmem:[%s7386_s18 + $0x169] sm:$0xff]  ;;  %v7665_v16 = vld [vmem:[%s7386_s18 + $0x171] sm:$0xff]  ;;  %v377_v18 = vld [vmem:[%s7386_s18] sm:$0xff] }
  0x31   : > { %6572 = vmatprep.mubr.msk.f32.mxu0 %vm450_vm0, %v7462_v37  ;;  %9691 = vst [vmem:[#allocation21_spill] sm:$0xff] %v7653_v14  ;;  %9692 = vst [vmem:[#allocation22_spill] sm:$0xff] %v7665_v16  ;;  %v7674_v19 = vld [vmem:[%s7386_s18 + $0xaa] sm:$0xff]  ;;  %v5534_v21 = vld [vmem:[%s7381_s15 + $0x58] sm:$0xff] }
  0x32   : > { %v5533_v20 = vld [vmem:[%s7381_s15 + $0x50] sm:$0xff]  ;;  %v378_v22 = vld [vmem:[%s7386_s18 + $0x8] sm:$0xff]  ;;  %v7690_v25 = vld [vmem:[%s7386_s18 + $0x18] sm:$0xff] }
  0x33   : > { %6349 = vmatmul.mubr.msk.f32.gmra.mrb[8].mxu1 %vm450_vm0, %v7459_v36  ;;  %v7687_v23 = vld [vmem:[%s7386_s18 + $0xb2] sm:$0xff]  ;;  %9693 = vst [vmem:[#allocation23_spill] sm:$0xff] %v7690_v25  ;;  %v7693_v26 = vld [vmem:[%s7386_s18 + $0xc2] sm:$0xff]  ;;  %v6880_v28 = vpack.c.bf16 %v5534_v21, %v5533_v20  ;;  %v7708_v34 = vld [vmem:[%s7386_s18 + $0xca] sm:$0xff] }
  0x34   : > { %6573 = vmatmul.mubr.msk.f32.gmra.mrb[8].mxu0 %vm450_vm0, %v7473_v38  ;;  %6351 = vmatprep.mubr.msk.f32.mxu1 %vm450_vm0, %v7462_v37  ;;  %v5600_v31 = vld [vmem:[%s7381_s15 + $0x68] sm:$0xff]  ;;  %v7703_v32 = vld [vmem:[%s7386_s18 + $0x20] sm:$0xff]  ;;  %v7711_v40 = vld [vmem:[%s7386_s18 + $0x30] sm:$0xff] }
  0x35   : > { %6575 = vmatprep.mubr.msk.f32.mxu0 %vm450_vm0, %v7476_v39  ;;  %9694 = vst [vmem:[#allocation24_spill] sm:$0xff] %v7703_v32  ;;  %v7715_v41 = vld [vmem:[%s7386_s18 + $0xda] sm:$0xff]  ;;  %v7737_v59 = vld [vmem:[%s7386_s18 + $0xf2] sm:$0xff]  ;;  %v7758_v21 = vld [vmem:[%s7386_s18 + $0x10a] sm:$0xff] }
  0x36   : > { %v7726_v54 = vld [vmem:[%s7386_s18 + $0x38] sm:$0xff]  ;;  %v7747_v60 = vld [vmem:[%s7386_s18 + $0x50] sm:$0xff]  ;;  %v7755_v20 = vld [vmem:[%s7386_s18 + $0x60] sm:$0xff] }
  0x37   : > { %6352 = vmatmul.mubr.msk.f32.gmra.mrb[10].mxu1 %vm450_vm0, %v7473_v38  ;;  %9696 = vst [vmem:[#allocation26_spill] sm:$0xff] %v7747_v60  ;;  %9697 = vst [vmem:[#allocation27_spill] sm:$0xff] %v7755_v20  ;;  %v7852_v12 = vld [vmem:[%s7386_s18 + $0x172] sm:$0xff] }
  0x38   : > { %6576 = vmatmul.mubr.msk.f32.gmra.mrb[10].mxu0 %vm450_vm0, %v7489_v42  ;;  %6354 = vmatprep.mubr.msk.f32.mxu1 %vm450_vm0, %v7476_v39  ;;  %9705 = vst [vmem:[#allocation35_spill] sm:$0xff] %v7852_v12 }
  0x39   : > { %6578 = vmatprep.mubr.msk.f32.mxu0 %vm450_vm0, %v7494_v44 }
  0x3b   : > { %6355 = vmatmul.mubr.msk.f32.gmra.mrb[12].mxu1 %vm450_vm0, %v7489_v42  ;;  %v5939_v42 = vld [vmem:[%s7381_s15 + $0x100] sm:$0xff] }
  0x3c   : > { %6579 = vmatmul.mubr.msk.f32.gmra.mrb[12].mxu0 %vm450_vm0, %v7506_v45  ;;  %6357 = vmatprep.mubr.msk.f32.mxu1 %vm450_vm0, %v7494_v44  ;;  %v7886_v44 = vld [vmem:[%s7386_s18 + $0xf8] sm:$0xff] }
  0x3d   : > { %6581 = vmatprep.mubr.msk.f32.mxu0 %vm450_vm0, %v7509_v46 }
  0x3f   : > { %6358 = vmatmul.mubr.msk.f32.gmra.mrb[14].mxu1 %vm450_vm0, %v7506_v45  ;;  %v5873_v45 = vld [vmem:[%s7381_s15 + $0xf0] sm:$0xff] }
  0x40   : > { %6582 = vmatmul.mubr.msk.f32.gmra.mrb[14].mxu0 %vm450_vm0, %v7520_v47  ;;  %6360 = vmatprep.mubr.msk.f32.mxu1 %vm450_vm0, %v7509_v46  ;;  %v7872_v46 = vld [vmem:[%s7386_s18 + $0x18a] sm:$0xff] }
  0x41   : > { %6584 = vmatprep.mubr.msk.f32.mxu0 %vm450_vm0, %v7523_v48  ;;  %9707 = vst [vmem:[#allocation37_spill] sm:$0xff] %v7872_v46 }
  0x43   : > { %6361 = vmatmul.mubr.msk.f32.gmra.mrb[16].mxu1 %vm450_vm0, %v7520_v47  ;;  %v7858_v47 = vld [vmem:[%s7386_s18 + $0x182] sm:$0xff] }
  0x44   : > { %6585 = vmatmul.mubr.msk.f32.gmra.mrb[16].mxu0 %vm450_vm0, %v7534_v49  ;;  %6363 = vmatprep.mubr.msk.f32.mxu1 %vm450_vm0, %v7523_v48  ;;  %v7855_v48 = vld [vmem:[%s7386_s18 + $0xd8] sm:$0xff]  ;;  %9706 = vst [vmem:[#allocation36_spill] sm:$0xff] %v7858_v47 }
  0x45   : > { %6587 = vmatprep.mubr.msk.f32.mxu0 %vm450_vm0, %v7537_v50 }
  0x47   : > { %6364 = vmatmul.mubr.msk.f32.gmra.mrb[18].mxu1 %vm450_vm0, %v7534_v49  ;;  %v7847_v49 = vld [vmem:[%s7386_s18 + $0xc8] sm:$0xff] }
  0x48   : > { %6588 = vmatmul.mubr.msk.f32.gmra.mrb[18].mxu0 %vm450_vm0, %v7548_v51  ;;  %6366 = vmatprep.mubr.msk.f32.mxu1 %vm450_vm0, %v7537_v50  ;;  %v7838_v50 = vld [vmem:[%s7386_s18 + $0x16a] sm:$0xff] }
  0x49   : > { %6616 = vmatprep.mubr.msk.f32.mxu0 %vm450_vm0, %v7551_v52  ;;  %9704 = vst [vmem:[#allocation34_spill] sm:$0xff] %v7838_v50 }
  0x4b   : > { %6367 = vmatmul.mubr.msk.f32.gmra.mrb[20].mxu1 %vm450_vm0, %v7548_v51  ;;  %v7835_v51 = vld [vmem:[%s7386_s18 + $0xc0] sm:$0xff] }
  0x4c   : > { %6617 = vmatmul.mubr.msk.f32.vlgmr.msra.gmra.mrb[0].mxu0 %vm450_vm0, %v7564_v55  ;;  %6369 = vmatprep.mubr.msk.f32.mxu1 %vm450_vm0, %v7567_v56  ;;  %v7832_v56 = vld [vmem:[%s7386_s18 + $0x15a] sm:$0xff] }
  0x4d   : > { %6911 = vmatpush3.bf16.msra.mxu0 %v7432_v30  ;;  %6619 = vmatprep.mubr.msk.f32.mxu0 %vm450_vm0, %v7570_v57  ;;  %v5599_v30 = vld [vmem:[%s7381_s15 + $0x60] sm:$0xff]  ;;  %9703 = vst [vmem:[#allocation33_spill] sm:$0xff] %v7832_v56 }
  0x4e   : > { %6913 = vmatprep.subr.bf16.mxu0 %v6912_v58  ;;  %v7717_v53 = vpack.c.bf16 %v5600_v31, %v5599_v30  ;;  %v7775_v30 = vld [vmem:[%s7386_s18 + $0x78] sm:$0xff]  ;;  %v7778_v31 = vld [vmem:[%s7386_s18 + $0x122] sm:$0xff] }
  0x4f   : > { %6370 = vmatmul.mubr.msk.f32.gmra.mrb[22].mxu1 %vm450_vm0, %v7581_v61  ;;  %9699 = vst [vmem:[#allocation29_spill] sm:$0xff] %v7775_v30  ;;  %v7827_v61 = vld [vmem:[%s7386_s18 + $0xb0] sm:$0xff] }
  0x50   : > { %6620 = vmatmul.mubr.msk.f32.gmra.mrb[2].mxu0 %vm450_vm0, %v7587_v62  ;;  %6372 = vmatprep.mubr.msk.f32.mxu1 %vm450_vm0, %v7590_v63  ;;  %v7818_v63 = vld [vmem:[%s7386_s18 + $0x152] sm:$0xff] }
  0x51   : > { %6622 = vmatprep.mubr.msk.f32.mxu0 %vm450_vm0, %v7593_v0  ;;  %6915 = vmatpush3.bf16.msra.mxu0 %v6912_v58  ;;  %v7734_v58 = vld [vmem:[%s7386_s18 + $0x48] sm:$0xff] }
  0x52   : > { %6917 = vmatprep.subr.bf16.mxu0 %v7595_v1  ;;  %9695 = vst [vmem:[#allocation25_spill] sm:$0xff] %v7734_v58 }
  0x53   : > { %6373 = vmatmul.mubr.msk.f32.gmra.mrb[24].mxu1 %vm450_vm0, %v7604_v2  ;;  %v7815_v2 = vld [vmem:[%s7386_s18 + $0xa8] sm:$0xff] }
  0x54   : > { %6623 = vmatmul.mubr.msk.f32.gmra.mrb[4].mxu0 %vm450_vm0, %v7609_v3  ;;  %6375 = vmatprep.mubr.msk.f32.mxu1 %vm450_vm0, %v7612_v4  ;;  %v7812_v4 = vld [vmem:[%s7386_s18 + $0x142] sm:$0xff] }
  0x55   : > { %6625 = vmatprep.mubr.msk.f32.mxu0 %vm450_vm0, %v7615_v5 }
  0x57   : > { %6376 = vmatmul.mubr.msk.f32.gmra.mrb[26].mxu1 %vm450_vm0, %v7625_v6  ;;  %v7807_v6 = vld [vmem:[%s7386_s18 + $0x98] sm:$0xff] }
  0x58   : > { %6626 = vmatmul.mubr.msk.f32.gmra.mrb[6].mxu0 %vm450_vm0, %v7630_v8  ;;  %6378 = vmatprep.mubr.msk.f32.mxu1 %vm450_vm0, %v7633_v9  ;;  %v7798_v9 = vld [vmem:[%s7386_s18 + $0x13a] sm:$0xff]  ;;  %9702 = vst [vmem:[#allocation32_spill] sm:$0xff] %v7807_v6 }
  0x59   : > { %6628 = vmatprep.mubr.msk.f32.mxu0 %vm450_vm0, %v7636_v10 }
  0x5b   : > { %6379 = vmatmul.mubr.msk.f32.gmra.mrb[28].mxu1 %vm450_vm0, %v7645_v11  ;;  %v7795_v11 = vld [vmem:[%s7386_s18 + $0x90] sm:$0xff] }
  0x5c   : > { %6629 = vmatmul.mubr.msk.f32.gmra.mrb[8].mxu0 %vm450_vm0, %v7650_v13  ;;  %6381 = vmatprep.mubr.msk.f32.mxu1 %vm450_vm0, %v7653_v14  ;;  %v7792_v14 = vld [vmem:[%s7386_s18 + $0x12a] sm:$0xff]  ;;  %9701 = vst [vmem:[#allocation31_spill] sm:$0xff] %v7795_v11 }
  0x5d   : > { %6631 = vmatprep.mubr.msk.f32.mxu0 %vm450_vm0, %v7656_v15 }
  0x5f   : > { %6382 = vmatmul.mubr.msk.f32.gmra.mrb[30].mxu1 %vm450_vm0, %v7665_v16  ;;  %v7787_v16 = vld [vmem:[%s7386_s18 + $0x80] sm:$0xff] }
  0x60   : > { %6632 = vmatmul.mubr.msk.f32.gmra.mrb[10].mxu0 %vm450_vm0, %v7670_v17  ;;  %6392 = vmatprep.mubr.msk.f32.mxu1 %vm450_vm0, %v377_v18  ;;  %v7752_v18 = vld [vmem:[%s7386_s18 + $0xfa] sm:$0xff]  ;;  %9700 = vst [vmem:[#allocation30_spill] sm:$0xff] %v7787_v16 }
  0x61   : > { %6634 = vmatprep.mubr.msk.f32.mxu0 %vm450_vm0, %v7674_v19 }
  0x63   : > { %6393 = vmatmul.mubr.msk.f32.vlgmr.msra.gmra.mrb[0].mxu1 %vm450_vm0, %v378_v22  ;;  %v7767_v22 = vld [vmem:[%s7386_s18 + $0x68] sm:$0xff] }
  0x64   : > { %6635 = vmatmul.mubr.msk.f32.gmra.mrb[12].mxu0 %vm450_vm0, %v7687_v23  ;;  %6395 = vmatprep.mubr.msk.f32.mxu1 %vm450_vm0, %v7690_v25  ;;  %9698 = vst [vmem:[#allocation28_spill] sm:$0xff] %v7767_v22  ;;  %v7875_v25 = vld [vmem:[%s7386_s18 + $0xf0] sm:$0xff] }
  0x65   : > { %6637 = vmatprep.mubr.msk.f32.mxu0 %vm450_vm0, %v7693_v26  ;;  %6879 = vmatpush3.bf16.msra.mxu1 %v7491_v43  ;;  %v7731_v43 = vld [vmem:[%s7386_s18 + $0xe2] sm:$0xff] }
  0x66   : > { %6881 = vmatprep.subr.bf16.mxu1 %v6880_v28 }
  0x67   : > { %6396 = vmatmul.mubr.msk.f32.gmra.mrb[2].mxu1 %vm450_vm0, %v7703_v32  ;;  %v7867_v32 = vld [vmem:[%s7386_s18 + $0xe0] sm:$0xff] }
  0x68   : > { %6638 = vmatmul.mubr.msk.f32.gmra.mrb[14].mxu0 %vm450_vm0, %v7708_v34  ;;  %6398 = vmatprep.mubr.msk.f32.mxu1 %vm450_vm0, %v7711_v40 }
  0x69   : > { %6640 = vmatprep.mubr.msk.f32.mxu0 %vm450_vm0, %v7715_v41  ;;  %6883 = vmatpush3.bf16.msra.mxu1 %v6880_v28  ;;  %v7772_v28 = vld [vmem:[%s7386_s18 + $0x112] sm:$0xff] }
  0x6a   : > { %6885 = vmatprep.subr.bf16.mxu1 %v7717_v53 }
  0x6b   : > { %6399 = vmatmul.mubr.msk.f32.gmra.mrb[4].mxu1 %vm450_vm0, %v7726_v54 }
  0x6c   : > { %6641 = vmatmul.mubr.msk.f32.gmra.mrb[16].mxu0 %vm450_vm0, %v7731_v43  ;;  %6401 = vmatprep.mubr.msk.f32.mxu1 %vm450_vm0, %v7734_v58 }
  0x6d   : > { %6643 = vmatprep.mubr.msk.f32.mxu0 %vm450_vm0, %v7737_v59 }
  0x6f   : > { %6402 = vmatmul.mubr.msk.f32.gmra.mrb[6].mxu1 %vm450_vm0, %v7747_v60 }
  0x70   : > { %6644 = vmatmul.mubr.msk.f32.gmra.mrb[18].mxu0 %vm450_vm0, %v7752_v18  ;;  %6404 = vmatprep.mubr.msk.f32.mxu1 %vm450_vm0, %v7755_v20 }
  0x71   : > { %6646 = vmatprep.mubr.msk.f32.mxu0 %vm450_vm0, %v7758_v21 }
  0x73   : > { %6405 = vmatmul.mubr.msk.f32.gmra.mrb[8].mxu1 %vm450_vm0, %v7767_v22 }
  0x74   : > { %6647 = vmatmul.mubr.msk.f32.gmra.mrb[20].mxu0 %vm450_vm0, %v7772_v28  ;;  %6407 = vmatprep.mubr.msk.f32.mxu1 %vm450_vm0, %v7775_v30 }
  0x75   : > { %6649 = vmatprep.mubr.msk.f32.mxu0 %vm450_vm0, %v7778_v31 }
  0x77   : > { %6408 = vmatmul.mubr.msk.f32.gmra.mrb[10].mxu1 %vm450_vm0, %v7787_v16 }
  0x78   : > { %6650 = vmatmul.mubr.msk.f32.gmra.mrb[22].mxu0 %vm450_vm0, %v7792_v14  ;;  %6410 = vmatprep.mubr.msk.f32.mxu1 %vm450_vm0, %v7795_v11 }
  0x79   : > { %6652 = vmatprep.mubr.msk.f32.mxu0 %vm450_vm0, %v7798_v9 }
  0x7b   : > { %6411 = vmatmul.mubr.msk.f32.gmra.mrb[12].mxu1 %vm450_vm0, %v7807_v6 }
  0x7c   : > { %6653 = vmatmul.mubr.msk.f32.gmra.mrb[24].mxu0 %vm450_vm0, %v7812_v4  ;;  %6413 = vmatprep.mubr.msk.f32.mxu1 %vm450_vm0, %v7815_v2 }
  0x7d   : > { %6655 = vmatprep.mubr.msk.f32.mxu0 %vm450_vm0, %v7818_v63 }
  0x7f   : > { %6414 = vmatmul.mubr.msk.f32.gmra.mrb[14].mxu1 %vm450_vm0, %v7827_v61 }
  0x80   : > { %6656 = vmatmul.mubr.msk.f32.gmra.mrb[26].mxu0 %vm450_vm0, %v7832_v56  ;;  %6416 = vmatprep.mubr.msk.f32.mxu1 %vm450_vm0, %v7835_v51  ;;  %v5940_v56 = vld [vmem:[%s7381_s15 + $0x108] sm:$0xff] }
  0x81   : > { %6658 = vmatprep.mubr.msk.f32.mxu0 %vm450_vm0, %v7838_v50 }
  0x83   : > { %6417 = vmatmul.mubr.msk.f32.gmra.mrb[16].mxu1 %vm450_vm0, %v7847_v49 }
  0x84   : > { %6659 = vmatmul.mubr.msk.f32.gmra.mrb[28].mxu0 %vm450_vm0, %v7852_v12  ;;  %6419 = vmatprep.mubr.msk.f32.mxu1 %vm450_vm0, %v7855_v48  ;;  %v5874_v12 = vld [vmem:[%s7381_s15 + $0xf8] sm:$0xff] }
  0x85   : > { %6661 = vmatprep.mubr.msk.f32.mxu0 %vm450_vm0, %v7858_v47  ;;  %v7891_v47 = vld [vmem:[%s7386_s18 + $0x108] sm:$0xff]  ;;  %v6920_v50 = vpack.c.bf16 %v5874_v12, %v5873_v45  ;;  %v7908_v12 = vld [vmem:[%s7386_s18 + $0x120] sm:$0xff]  ;;  %v7910_v45 = vpack.c.bf16 %v5940_v56, %v5939_v42  ;;  %v7948_v56 = vld [vmem:[%s7386_s18 + $0x158] sm:$0xff] }
  0x86   : > { %v7934_v42 = vld [vmem:[%s7386_s18 + $0x140] sm:$0xff] }
  0x87   : > { %6420 = vmatmul.mubr.msk.f32.gmra.mrb[18].mxu1 %vm450_vm0, %v7867_v32 }
  0x88   : > { %6662 = vmatmul.mubr.msk.f32.gmra.mrb[30].mxu0 %vm450_vm0, %v7872_v46  ;;  %6422 = vmatprep.mubr.msk.f32.mxu1 %vm450_vm0, %v7875_v25  ;;  %v7902_v46 = vld [vmem:[%s7386_s18 + $0x110] sm:$0xff] }
  0x89   : > { %6672 = vmatprep.mubr.msk.f32.mxu0 %vm450_vm0, %v7711_v40 }
  0x8b   : > { %6423 = vmatmul.mubr.msk.f32.gmra.mrb[20].mxu1 %vm450_vm0, %v7886_v44 }
  0x8c   : > { %6673 = vmatmul.mubr.msk.f32.vlgmr.msra.gmra.mrb[0].mxu0 %vm450_vm0, %v7726_v54  ;;  %6425 = vmatprep.mubr.msk.f32.mxu1 %vm450_vm0, %v7891_v47 }
  0x8d   : > { %6919 = vmatpush3.bf16.msra.mxu0 %v7595_v1  ;;  %6675 = vmatprep.mubr.msk.f32.mxu0 %vm450_vm0, %v7734_v58  ;;  %v7919_v1 = vld [vmem:[%s7386_s18 + $0x128] sm:$0xff]  ;;  %v7924_v58 = vld [vmem:[%s7386_s18 + $0x138] sm:$0xff] }
  0x8e   : > { %6921 = vmatprep.subr.bf16.mxu0 %v6920_v50 }
  0x8f   : > { %6426 = vmatmul.mubr.msk.f32.gmra.mrb[22].mxu1 %vm450_vm0, %v7902_v46 }
  0x90   : > { %6676 = vmatmul.mubr.msk.f32.gmra.mrb[2].mxu0 %vm450_vm0, %v7747_v60  ;;  %6428 = vmatprep.mubr.msk.f32.mxu1 %vm450_vm0, %v7908_v12 }
  0x91   : > { %6678 = vmatprep.mubr.msk.f32.mxu0 %vm450_vm0, %v7755_v20  ;;  %6923 = vmatpush3.bf16.msra.mxu0 %v6920_v50  ;;  %v7939_v50 = vld [vmem:[%s7386_s18 + $0x150] sm:$0xff]  ;;  %v5602_v20 = vld [vmem:[%s7381_s15 + $0x78] sm:$0xff] }
  0x92   : > { %6925 = vmatprep.subr.bf16.mxu0 %v7910_v45 }
  0x93   : > { %6429 = vmatmul.mubr.msk.f32.gmra.mrb[24].mxu1 %vm450_vm0, %v7919_v1 }
  0x94   : > { %6679 = vmatmul.mubr.msk.f32.gmra.mrb[4].mxu0 %vm450_vm0, %v7767_v22  ;;  %6431 = vmatprep.mubr.msk.f32.mxu1 %vm450_vm0, %v7924_v58  ;;  %v7953_v22 = vld [vmem:[%s7386_s18 + $0x168] sm:$0xff] }
  0x95   : > { %6681 = vmatprep.mubr.msk.f32.mxu0 %vm450_vm0, %v7775_v30  ;;  %v1093_v30 = vld [vmem:[%s7386_s18 + $0x2] sm:$0xff] }
  0x97   : > { %6432 = vmatmul.mubr.msk.f32.gmra.mrb[26].mxu1 %vm450_vm0, %v7934_v42 }
  0x98   : > { %6682 = vmatmul.mubr.msk.f32.gmra.mrb[6].mxu0 %vm450_vm0, %v7787_v16  ;;  %6434 = vmatprep.mubr.msk.f32.mxu1 %vm450_vm0, %v7939_v50  ;;  %v7962_v16 = vld [vmem:[%s7386_s18 + $0x170] sm:$0xff] }
  0x99   : > { %6684 = vmatprep.mubr.msk.f32.mxu0 %vm450_vm0, %v7795_v11  ;;  %v5601_v11 = vld [vmem:[%s7381_s15 + $0x70] sm:$0xff] }
  0x9a   : > { %v6888_v60 = vpack.c.bf16 %v5602_v20, %v5601_v11  ;;  %v5802_v11 = vld [vmem:[%s7386_s18 + $0x1a0] sm:$0xff] }
  0x9b   : > { %6435 = vmatmul.mubr.msk.f32.gmra.mrb[28].mxu1 %vm450_vm0, %v7948_v56 }
  0x9c   : > { %6685 = vmatmul.mubr.msk.f32.gmra.mrb[8].mxu0 %vm450_vm0, %v7807_v6  ;;  %6437 = vmatprep.mubr.msk.f32.mxu1 %vm450_vm0, %v7953_v22  ;;  %v1094_v6 = vld [vmem:[%s7386_s18 + $0xa] sm:$0xff] }
  0x9d   : > { %6687 = vmatprep.mubr.msk.f32.mxu0 %vm450_vm0, %v7815_v2 }
  0x9f   : > { %6438 = vmatmul.mubr.msk.f32.gmra.mrb[30].mxu1 %vm450_vm0, %v7962_v16 }
  0xa0   : > { %6688 = vmatmul.mubr.msk.f32.gmra.mrb[10].mxu0 %vm450_vm0, %v7827_v61  ;;  %6448 = vmatprep.mubr.msk.f32.mxu1 %vm450_vm0, %v1093_v30  ;;  %v9717_v30 = vld [vmem:[#allocation8_spill] sm:$0xff] }
  0xa1   : > { %6690 = vmatprep.mubr.msk.f32.mxu0 %vm450_vm0, %v7835_v51 }
  0xa3   : > { %6449 = vmatmul.mubr.msk.f32.vlgmr.msra.gmra.mrb[0].mxu1 %vm450_vm0, %v1094_v6  ;;  %v5801_v6 = vld [vmem:[%s7386_s18 + $0x198] sm:$0xff] }
  0xa4   : > { %6691 = vmatmul.mubr.msk.f32.gmra.mrb[12].mxu0 %vm450_vm0, %v7847_v49  ;;  %6451 = vmatprep.mubr.msk.f32.mxu1 %vm450_vm0, %v7551_v52  ;;  %v8035_v52 = vld [vmem:[%s7386_s18 + $0x180] sm:$0xff] }
  0xa5   : > { %6693 = vmatprep.mubr.msk.f32.mxu0 %vm450_vm0, %v7855_v48  ;;  %6887 = vmatpush3.bf16.msra.mxu1 %v7717_v53  ;;  %v5941_v53 = vld [vmem:[%s7381_s15 + $0x110] sm:$0xff] }
  0xa6   : > { %6889 = vmatprep.subr.bf16.mxu1 %v6888_v60 }
  0xa7   : > { %6452 = vmatmul.mubr.msk.f32.gmra.mrb[2].mxu1 %vm450_vm0, %v7564_v55  ;;  %v8046_v55 = vld [vmem:[%s7386_s18 + $0x188] sm:$0xff] }
  0xa8   : > { %6694 = vmatmul.mubr.msk.f32.gmra.mrb[14].mxu0 %vm450_vm0, %v7867_v32  ;;  %6454 = vmatprep.mubr.msk.f32.mxu1 %vm450_vm0, %v7570_v57 }
  0xa9   : > { %6696 = vmatprep.mubr.msk.f32.mxu0 %vm450_vm0, %v7875_v25  ;;  %6891 = vmatpush3.bf16.msra.mxu1 %v6888_v60  ;;  %v5942_v60 = vld [vmem:[%s7381_s15 + $0x118] sm:$0xff] }
  0xaa   : > { %6948 = vmatprep.subr.bf16.mxu1 %v7394_v7  ;;  %v6928_v20 = vpack.c.bf16 %v5942_v60, %v5941_v53  ;;  %v9721_v53 = vld [vmem:[#allocation25_spill] sm:$0xff]  ;;  %v9722_v60 = vld [vmem:[#allocation11_spill] sm:$0xff] }
  0xab   : > { %6455 = vmatmul.mubr.msk.f32.gmra.mrb[4].mxu1 %vm450_vm0, %v7587_v62 }
  0xac   : > { %6697 = vmatmul.mubr.msk.f32.gmra.mrb[16].mxu0 %vm450_vm0, %v7886_v44  ;;  %6457 = vmatprep.mubr.msk.f32.mxu1 %vm450_vm0, %v7593_v0 }
  0xad   : > { %6699 = vmatprep.mubr.msk.f32.mxu0 %vm450_vm0, %v7891_v47 }
  0xaf   : > { %6458 = vmatmul.mubr.msk.f32.gmra.mrb[6].mxu1 %vm450_vm0, %v7609_v3 }
  0xb0   : > { %6700 = vmatmul.mubr.msk.f32.gmra.mrb[18].mxu0 %vm450_vm0, %v7902_v46  ;;  %6460 = vmatprep.mubr.msk.f32.mxu1 %vm450_vm0, %v7615_v5 }
  0xb1   : > { %6702 = vmatprep.mubr.msk.f32.mxu0 %vm450_vm0, %v7908_v12 }
  0xb3   : > { %6461 = vmatmul.mubr.msk.f32.gmra.mrb[8].mxu1 %vm450_vm0, %v7630_v8 }
  0xb4   : > { %6703 = vmatmul.mubr.msk.f32.gmra.mrb[20].mxu0 %vm450_vm0, %v7919_v1  ;;  %6463 = vmatprep.mubr.msk.f32.mxu1 %vm450_vm0, %v7636_v10 }
  0xb5   : > { %6705 = vmatprep.mubr.msk.f32.mxu0 %vm450_vm0, %v7924_v58 }
  0xb7   : > { %6464 = vmatmul.mubr.msk.f32.gmra.mrb[10].mxu1 %vm450_vm0, %v7650_v13 }
  0xb8   : > { %6706 = vmatmul.mubr.msk.f32.gmra.mrb[22].mxu0 %vm450_vm0, %v7934_v42  ;;  %6466 = vmatprep.mubr.msk.f32.mxu1 %vm450_vm0, %v7656_v15 }
  0xb9   : > { %6708 = vmatprep.mubr.msk.f32.mxu0 %vm450_vm0, %v7939_v50 }
  0xbb   : > { %6467 = vmatmul.mubr.msk.f32.gmra.mrb[12].mxu1 %vm450_vm0, %v7670_v17 }
  0xbc   : > { %6709 = vmatmul.mubr.msk.f32.gmra.mrb[24].mxu0 %vm450_vm0, %v7948_v56  ;;  %6469 = vmatprep.mubr.msk.f32.mxu1 %vm450_vm0, %v7674_v19 }
  0xbd   : > { %6711 = vmatprep.mubr.msk.f32.mxu0 %vm450_vm0, %v7953_v22 }
  0xbf   : > { %6470 = vmatmul.mubr.msk.f32.gmra.mrb[14].mxu1 %vm450_vm0, %v7687_v23 }
  0xc0   : > { %6712 = vmatmul.mubr.msk.f32.gmra.mrb[26].mxu0 %vm450_vm0, %v7962_v16  ;;  %6472 = vmatprep.mubr.msk.f32.mxu1 %vm450_vm0, %v7693_v26 }
  0xc1   : > { %6714 = vmatprep.mubr.msk.f32.mxu0 %vm450_vm0, %v8035_v52 }
  0xc3   : > { %6473 = vmatmul.mubr.msk.f32.gmra.mrb[16].mxu1 %vm450_vm0, %v7708_v34 }
  0xc4   : > { %6715 = vmatmul.mubr.msk.f32.gmra.mrb[28].mxu0 %vm450_vm0, %v8046_v55  ;;  %6475 = vmatprep.mubr.msk.f32.mxu1 %vm450_vm0, %v7715_v41 }
  0xc5   : > { %6717 = vmatprep.mubr.msk.f32.mxu0 %vm450_vm0, %v5801_v6  ;;  %v9719_v6 = vld [vmem:[#allocation3_spill] sm:$0xff] }
  0xc7   : > { %6476 = vmatmul.mubr.msk.f32.gmra.mrb[18].mxu1 %vm450_vm0, %v7731_v43 }
  0xc8   : > { %6718 = vmatmul.mubr.msk.f32.gmra.mrb[30].mxu0 %vm450_vm0, %v5802_v11  ;;  %6478 = vmatprep.mubr.msk.f32.mxu1 %vm450_vm0, %v7737_v59  ;;  %v9720_v11 = vld [vmem:[#allocation10_spill] sm:$0xff] }
  0xc9   : > { %6728 = vmatprep.mubr.msk.f32.mxu0 %vm450_vm0, %v7417_v24  ;;  %v9708_v24 = vld [vmem:[#allocation33_spill] sm:$0xff] }
  0xcb   : > { %6479 = vmatmul.mubr.msk.f32.gmra.mrb[20].mxu1 %vm450_vm0, %v7752_v18 }
  0xcc   : > { %6729 = vmatmul.mubr.msk.f32.vlgmr.msra.gmra.mrb[0].mxu0 %vm450_vm0, %v7426_v27  ;;  %6481 = vmatprep.mubr.msk.f32.mxu1 %vm450_vm0, %v7758_v21  ;;  %v9709_v27 = vld [vmem:[#allocation4_spill] sm:$0xff] }
  0xcd   : > { %6927 = vmatpush3.bf16.msra.mxu0 %v7910_v45  ;;  %6731 = vmatprep.mubr.msk.f32.mxu0 %vm450_vm0, %v7430_v29  ;;  %v9710_v29 = vld [vmem:[#allocation34_spill] sm:$0xff]  ;;  %v9718_v45 = vld [vmem:[#allocation9_spill] sm:$0xff] }
  0xce   : > { %6929 = vmatprep.subr.bf16.mxu0 %v6928_v20 }
  0xcf   : > { %6482 = vmatmul.mubr.msk.f32.gmra.mrb[22].mxu1 %vm450_vm0, %v7772_v28 }
  0xd0   : > { %6732 = vmatmul.mubr.msk.f32.gmra.mrb[2].mxu0 %vm450_vm0, %v7444_v33  ;;  %6484 = vmatprep.mubr.msk.f32.mxu1 %vm450_vm0, %v7778_v31  ;;  %v9711_v33 = vld [vmem:[#allocation5_spill] sm:$0xff] }
  0xd1   : > { %6734 = vmatprep.mubr.msk.f32.mxu0 %vm450_vm0, %v7447_v35  ;;  %6931 = vmatpush3.bf16.msra.mxu0 %v6928_v20  ;;  %v9712_v35 = vld [vmem:[#allocation35_spill] sm:$0xff] }
  0xd2   : > { %v9725_v20 = vld [vmem:[#allocation27_spill] sm:$0xff] }
  0xd3   : > { %6485 = vmatmul.mubr.msk.f32.gmra.mrb[24].mxu1 %vm450_vm0, %v7792_v14 }
  0xd4   : > { %6735 = vmatmul.mubr.msk.f32.gmra.mrb[4].mxu0 %vm450_vm0, %v7459_v36  ;;  %6487 = vmatprep.mubr.msk.f32.mxu1 %vm450_vm0, %v7798_v9  ;;  %v9713_v36 = vld [vmem:[#allocation6_spill] sm:$0xff] }
  0xd5   : > { %6737 = vmatprep.mubr.msk.f32.mxu0 %vm450_vm0, %v7462_v37  ;;  %v9714_v37 = vld [vmem:[#allocation23_spill] sm:$0xff] }
  0xd7   : > { %6488 = vmatmul.mubr.msk.f32.gmra.mrb[26].mxu1 %vm450_vm0, %v7812_v4 }
  0xd8   : > { %6738 = vmatmul.mubr.msk.f32.gmra.mrb[6].mxu0 %vm450_vm0, %v7473_v38  ;;  %6490 = vmatprep.mubr.msk.f32.mxu1 %vm450_vm0, %v7818_v63  ;;  %v9715_v38 = vld [vmem:[#allocation7_spill] sm:$0xff] }
  0xd9   : > { %6740 = vmatprep.mubr.msk.f32.mxu0 %vm450_vm0, %v7476_v39  ;;  %v9716_v39 = vld [vmem:[#allocation24_spill] sm:$0xff] }
  0xdb   : > { %6491 = vmatmul.mubr.msk.f32.gmra.mrb[28].mxu1 %vm450_vm0, %v9708_v24 }
  0xdc   : > { %6741 = vmatmul.mubr.msk.f32.gmra.mrb[8].mxu0 %vm450_vm0, %v9709_v27  ;;  %6493 = vmatprep.mubr.msk.f32.mxu1 %vm450_vm0, %v9710_v29  ;;  %v9727_v27 = vld [vmem:[#allocation28_spill] sm:$0xff] }
  0xdd   : > { %6743 = vmatprep.mubr.msk.f32.mxu0 %vm450_vm0, %v9711_v33  ;;  %v9728_v33 = vld [vmem:[#allocation14_spill] sm:$0xff] }
  0xdf   : > { %6494 = vmatmul.mubr.msk.f32.gmra.mrb[30].mxu1 %vm450_vm0, %v9712_v35 }
  0xe0   : > { %6744 = vmatmul.mubr.msk.f32.gmra.mrb[10].mxu0 %vm450_vm0, %v9713_v36  ;;  %6504 = vmatprep.mubr.msk.f32.mxu1 %vm450_vm0, %v9714_v37  ;;  %v9729_v36 = vld [vmem:[#allocation29_spill] sm:$0xff]  ;;  %v9730_v37 = vld [vmem:[#allocation15_spill] sm:$0xff] }
  0xe1   : > { %6746 = vmatprep.mubr.msk.f32.mxu0 %vm450_vm0, %v9715_v38  ;;  %v9731_v38 = vld [vmem:[#allocation30_spill] sm:$0xff] }
  0xe3   : > { %6505 = vmatmul.mubr.msk.f32.vlgmr.msra.gmra.mrb[0].mxu1 %vm450_vm0, %v9716_v39  ;;  %v9732_v39 = vld [vmem:[#allocation16_spill] sm:$0xff] }
  0xe4   : > { %6747 = vmatmul.mubr.msk.f32.gmra.mrb[12].mxu0 %vm450_vm0, %v9717_v30  ;;  %6507 = vmatprep.mubr.msk.f32.mxu1 %vm450_vm0, %v7711_v40  ;;  %v9723_v40 = vld [vmem:[#allocation26_spill] sm:$0xff]  ;;  %v9733_v30 = vld [vmem:[#allocation31_spill] sm:$0xff] }
  0xe5   : > { %6749 = vmatprep.mubr.msk.f32.mxu0 %vm450_vm0, %v9718_v45  ;;  %6950 = vmatpush3.bf16.msra.mxu1 %v7394_v7  ;;  %v9724_v7 = vld [vmem:[#allocation12_spill] sm:$0xff]  ;;  %v9734_v45 = vld [vmem:[#allocation17_spill] sm:$0xff] }
  0xe6   : > { %6949 = vmatprep.subr.bf16.mxu1 %v9719_v6 }
  0xe7   : > { %6508 = vmatmul.mubr.msk.f32.gmra.mrb[2].mxu1 %vm450_vm0, %v7726_v54  ;;  %v9726_v54 = vld [vmem:[#allocation13_spill] sm:$0xff] }
  0xe8   : > { %6750 = vmatmul.mubr.msk.f32.gmra.mrb[14].mxu0 %vm450_vm0, %v9720_v11  ;;  %6510 = vmatprep.mubr.msk.f32.mxu1 %vm450_vm0, %v9721_v53  ;;  %v9736_v11 = vld [vmem:[#allocation18_spill] sm:$0xff]  ;;  %v9737_v53 = vld [vmem:[#allocation19_spill] sm:$0xff] }
  0xe9   : > { %6752 = vmatprep.mubr.msk.f32.mxu0 %vm450_vm0, %v9722_v60  ;;  %6951 = vmatpush3.bf16.msra.mxu1 %v9719_v6  ;;  %v9735_v6 = vld [vmem:[#allocation32_spill] sm:$0xff] }
  0xea   : > { %v9738_v60 = vld [vmem:[#allocation20_spill] sm:$0xff] }
  0xeb   : > { %6511 = vmatmul.mubr.msk.f32.gmra.mrb[4].mxu1 %vm450_vm0, %v9723_v40  ;;  %v9739_v40 = vld [vmem:[#allocation21_spill] sm:$0xff] }
  0xec   : > { %6753 = vmatmul.mubr.msk.f32.gmra.mrb[16].mxu0 %vm450_vm0, %v9724_v7  ;;  %6513 = vmatprep.mubr.msk.f32.mxu1 %vm450_vm0, %v9725_v20  ;;  %v5867_v7 = vld [vmem:[%s7386_s18 + $0x181] sm:$0xff]  ;;  %v5869_v20 = vld [vmem:[%s7386_s18 + $0x199] sm:$0xff] }
  0xed   : > { %6755 = vmatprep.mubr.msk.f32.mxu0 %vm450_vm0, %v9726_v54 }
  0xef   : > { %6514 = vmatmul.mubr.msk.f32.gmra.mrb[6].mxu1 %vm450_vm0, %v9727_v27 }
  0xf0   : > { %6756 = vmatmul.mubr.msk.f32.gmra.mrb[18].mxu0 %vm450_vm0, %v9728_v33  ;;  %6516 = vmatprep.mubr.msk.f32.mxu1 %vm450_vm0, %v9729_v36 }
  0xf1   : > { %6758 = vmatprep.mubr.msk.f32.mxu0 %vm450_vm0, %v9730_v37 }
  0xf3   : > { %6517 = vmatmul.mubr.msk.f32.gmra.mrb[8].mxu1 %vm450_vm0, %v9731_v38 }
  0xf4   : > { %6759 = vmatmul.mubr.msk.f32.gmra.mrb[20].mxu0 %vm450_vm0, %v9732_v39  ;;  %6519 = vmatprep.mubr.msk.f32.mxu1 %vm450_vm0, %v9733_v30 }
  0xf5   : > { %6761 = vmatprep.mubr.msk.f32.mxu0 %vm450_vm0, %v9734_v45 }
  0xf7   : > { %6520 = vmatmul.mubr.msk.f32.gmra.mrb[10].mxu1 %vm450_vm0, %v9735_v6 }
  0xf8   : > { %6762 = vmatmul.mubr.msk.f32.gmra.mrb[22].mxu0 %vm450_vm0, %v9736_v11  ;;  %6522 = vmatprep.mubr.msk.f32.mxu1 %vm450_vm0, %v7815_v2  ;;  %v9740_v2 = vld [vmem:[#allocation22_spill] sm:$0xff] }
  0xf9   : > { %6764 = vmatprep.mubr.msk.f32.mxu0 %vm450_vm0, %v9737_v53 }
  0xfb   : > { %6523 = vmatmul.mubr.msk.f32.gmra.mrb[12].mxu1 %vm450_vm0, %v7827_v61  ;;  %v5868_v61 = vld [vmem:[%s7386_s18 + $0x189] sm:$0xff] }
  0xfc   : > { %6765 = vmatmul.mubr.msk.f32.gmra.mrb[24].mxu0 %vm450_vm0, %v9738_v60  ;;  %6525 = vmatprep.mubr.msk.f32.mxu1 %vm450_vm0, %v7835_v51 }
  0xfd   : > { %6767 = vmatprep.mubr.msk.f32.mxu0 %vm450_vm0, %v9739_v40 }
  0xff   : > { %6526 = vmatmul.mubr.msk.f32.gmra.mrb[14].mxu1 %vm450_vm0, %v7847_v49  ;;  %v5870_v49 = vld [vmem:[%s7386_s18 + $0x1a1] sm:$0xff] }
 0x100   : > { %6768 = vmatmul.mubr.msk.f32.gmra.mrb[26].mxu0 %vm450_vm0, %v9740_v2  ;;  %6528 = vmatprep.mubr.msk.f32.mxu1 %vm450_vm0, %v7855_v48  ;;  %v5938_v48 = vld [vmem:[%s7386_s18 + $0x1a2] sm:$0xff] }
 0x101   : > { %6770 = vmatprep.mubr.msk.f32.mxu0 %vm450_vm0, %v5867_v7 }
 0x103   : > { %6529 = vmatmul.mubr.msk.f32.gmra.mrb[16].mxu1 %vm450_vm0, %v7867_v32 }
 0x104   : > { %6771 = vmatmul.mubr.msk.f32.gmra.mrb[28].mxu0 %vm450_vm0, %v5868_v61  ;;  %6531 = vmatprep.mubr.msk.f32.mxu1 %vm450_vm0, %v7875_v25 }
 0x105   : > { %6773 = vmatprep.mubr.msk.f32.mxu0 %vm450_vm0, %v5869_v20 }
 0x107   : > { %6532 = vmatmul.mubr.msk.f32.gmra.mrb[18].mxu1 %vm450_vm0, %v7886_v44  ;;  %v9741_v44 = vld [vmem:[#allocation36_spill] sm:$0xff] }
 0x108   : > { %6774 = vmatmul.mubr.msk.f32.gmra.mrb[30].mxu0 %vm450_vm0, %v5870_v49  ;;  %6534 = vmatprep.mubr.msk.f32.mxu1 %vm450_vm0, %v7891_v47  ;;  %v9742_v47 = vld [vmem:[#allocation37_spill] sm:$0xff] }
 0x109   : > { %6784 = vmatprep.mubr.msk.f32.mxu0 %vm450_vm0, %v7570_v57 }
 0x10b   : > { %6535 = vmatmul.mubr.msk.f32.gmra.mrb[20].mxu1 %vm450_vm0, %v7902_v46  ;;  %v5937_v46 = vld [vmem:[%s7386_s18 + $0x19a] sm:$0xff] }
 0x10c   : > { %6785 = vmatmul.mubr.msk.f32.vlgmr.msra.gmra.mrb[0].mxu0 %vm450_vm0, %v7587_v62  ;;  %6537 = vmatprep.mubr.msk.f32.mxu1 %vm450_vm0, %v7908_v12 }
 0x10d   : > { %6787 = vmatprep.mubr.msk.f32.mxu0 %vm450_vm0, %v7593_v0 }
 0x10f   : > { %6538 = vmatmul.mubr.msk.f32.gmra.mrb[22].mxu1 %vm450_vm0, %v7919_v1 }
 0x110   : > { %6788 = vmatmul.mubr.msk.f32.gmra.mrb[2].mxu0 %vm450_vm0, %v7609_v3  ;;  %6540 = vmatprep.mubr.msk.f32.mxu1 %vm450_vm0, %v7924_v58 }
 0x111   : > { %6790 = vmatprep.mubr.msk.f32.mxu0 %vm450_vm0, %v7615_v5 }
 0x113   : > { %6541 = vmatmul.mubr.msk.f32.gmra.mrb[24].mxu1 %vm450_vm0, %v7934_v42 }
 0x114   : > { %6791 = vmatmul.mubr.msk.f32.gmra.mrb[4].mxu0 %vm450_vm0, %v7630_v8  ;;  %6543 = vmatprep.mubr.msk.f32.mxu1 %vm450_vm0, %v7939_v50 }
 0x115   : > { %6793 = vmatprep.mubr.msk.f32.mxu0 %vm450_vm0, %v7636_v10 }
 0x117   : > { %6544 = vmatmul.mubr.msk.f32.gmra.mrb[26].mxu1 %vm450_vm0, %v7948_v56 }
 0x118   : > { %6794 = vmatmul.mubr.msk.f32.gmra.mrb[6].mxu0 %vm450_vm0, %v7650_v13  ;;  %6546 = vmatprep.mubr.msk.f32.mxu1 %vm450_vm0, %v7953_v22 }
 0x119   : > { %6796 = vmatprep.mubr.msk.f32.mxu0 %vm450_vm0, %v7656_v15 }
 0x11b   : > { %6547 = vmatmul.mubr.msk.f32.gmra.mrb[28].mxu1 %vm450_vm0, %v7962_v16 }
 0x11c   : > { %6797 = vmatmul.mubr.msk.f32.gmra.mrb[8].mxu0 %vm450_vm0, %v7670_v17  ;;  %6549 = vmatprep.mubr.msk.f32.mxu1 %vm450_vm0, %v8035_v52 }
 0x11d   : > { %6799 = vmatprep.mubr.msk.f32.mxu0 %vm450_vm0, %v7674_v19 }
 0x11f   : > { %6550 = vmatmul.mubr.msk.f32.gmra.mrb[30].mxu1 %vm450_vm0, %v8046_v55 }
 0x120   : > { %6800 = vmatmul.mubr.msk.f32.gmra.mrb[10].mxu0 %vm450_vm0, %v7687_v23  ;;  %6590 = vmatprep.mubr.msk.f32.mxu1 %vm450_vm0, %v9726_v54 }
 0x121   : > { %6802 = vmatprep.mubr.msk.f32.mxu0 %vm450_vm0, %v7693_v26 }
 0x123   : > { %6591 = vmatmul.mubr.msk.f32.vlgmr.msra.gmra.mrb[20].mxu1 %vm450_vm0, %v9728_v33 }
 0x124   : > { %6803 = vmatmul.mubr.msk.f32.gmra.mrb[12].mxu0 %vm450_vm0, %v7708_v34  ;;  %6593 = vmatprep.mubr.msk.f32.mxu1 %vm450_vm0, %v9730_v37  ;;  %v8328_v34 = vld [vmem:[%s361_s21] ss:$0 sm:$0xff]  ;;  %s5460_s21 = sshll.u32 %s9825_s24, 3 }
 0x125   : > { %6805 = vmatprep.mubr.msk.f32.mxu0 %vm450_vm0, %v7715_v41 }
 0x127   : > { %6594 = vmatmul.mubr.msk.f32.gmra.mrb[22].mxu1 %vm450_vm0, %v9732_v39 }
 0x128   : > { %6806 = vmatmul.mubr.msk.f32.gmra.mrb[14].mxu0 %vm450_vm0, %v7731_v43  ;;  %6596 = vmatprep.mubr.msk.f32.mxu1 %vm450_vm0, %v9734_v45 }
 0x129   : > { %6808 = vmatprep.mubr.msk.f32.mxu0 %vm450_vm0, %v7737_v59 }
 0x12b   : > { %6597 = vmatmul.mubr.msk.f32.gmra.mrb[24].mxu1 %vm450_vm0, %v9736_v11 }
 0x12c   : > { %6809 = vmatmul.mubr.msk.f32.gmra.mrb[16].mxu0 %vm450_vm0, %v7752_v18  ;;  %6599 = vmatprep.mubr.msk.f32.mxu1 %vm450_vm0, %v9737_v53 }
 0x12d   : > { %6811 = vmatprep.mubr.msk.f32.mxu0 %vm450_vm0, %v7758_v21 }
 0x12f   : > { %6600 = vmatmul.mubr.msk.f32.gmra.mrb[26].mxu1 %vm450_vm0, %v9738_v60 }
 0x130   : > { %6812 = vmatmul.mubr.msk.f32.gmra.mrb[18].mxu0 %vm450_vm0, %v7772_v28  ;;  %6602 = vmatprep.mubr.msk.f32.mxu1 %vm450_vm0, %v9739_v40 }
 0x131   : > { %6814 = vmatprep.mubr.msk.f32.mxu0 %vm450_vm0, %v7778_v31 }
 0x133   : > { %6603 = vmatmul.mubr.msk.f32.gmra.mrb[28].mxu1 %vm450_vm0, %v9740_v2 }
 0x134   : > { %6815 = vmatmul.mubr.msk.f32.gmra.mrb[20].mxu0 %vm450_vm0, %v7792_v14  ;;  %6605 = vmatprep.mubr.msk.f32.mxu1 %vm450_vm0, %v5867_v7 }
 0x135   : > { %6817 = vmatprep.mubr.msk.f32.mxu0 %vm450_vm0, %v7798_v9 }
 0x137   : > { %6606 = vmatmul.mubr.msk.f32.gmra.mrb[30].mxu1 %vm450_vm0, %v5868_v61 }
 0x138   : > { %6818 = vmatmul.mubr.msk.f32.gmra.mrb[22].mxu0 %vm450_vm0, %v7812_v4 }
 0x139   : > { %6820 = vmatprep.mubr.msk.f32.mxu0 %vm450_vm0, %v7818_v63 }
 0x13c   : > { %6821 = vmatmul.mubr.msk.f32.gmra.mrb[24].mxu0 %vm450_vm0, %v9708_v24 }
 0x13d   : > { %6823 = vmatprep.mubr.msk.f32.mxu0 %vm450_vm0, %v9710_v29 }
 0x140   : > { %6824 = vmatmul.mubr.msk.f32.gmra.mrb[26].mxu0 %vm450_vm0, %v9712_v35 }
 0x141   : > { %6826 = vmatprep.mubr.msk.f32.mxu0 %vm450_vm0, %v9741_v44 }
 0x144   : > { %6827 = vmatmul.mubr.msk.f32.gmra.mrb[28].mxu0 %vm450_vm0, %v9742_v47 }
 0x145   : > { %6829 = vmatprep.mubr.msk.f32.mxu0 %vm450_vm0, %v5937_v46 }
 0x148   : > { %6830 = vmatmul.mubr.msk.f32.gmra.mrb[30].mxu0 %vm450_vm0, %v5938_v48 }
 0x1b6   : > { %v6506_v51 = vpop.f32.mrb[0].mxu1 }
 0x1b7   : > { %v1683_v57 = vpop.f32.mrb[1].mxu1 }
 0x1ba   : > { %v6509_v62 = vpop.f32.mrb[2].mxu1 }
 0x1bb   : > { %v1693_v63 = vpop.f32.mrb[3].mxu1 }
 0x1be   : > { %v6512_v0 = vpop.f32.mrb[4].mxu1 }
 0x1bf   : > { %v1703_v3 = vpop.f32.mrb[5].mxu1 }
 0x1c2   : > { %v6515_v4 = vpop.f32.mrb[6].mxu1 }
 0x1c3   : > { %v1713_v5 = vpop.f32.mrb[7].mxu1 }
 0x1c6   : > { %v6518_v8 = vpop.f32.mrb[8].mxu1 }
 0x1c7   : > { %v1723_v9 = vpop.f32.mrb[9].mxu1 }
 0x1ca   : > { %v8304_v10 = vpop.f32.mrb[10].mxu1 }
 0x1cb   : > { %v8306_v13 = vpop.f32.mrb[11].mxu1 }
 0x1ce   : > { %v8308_v14 = vpop.f32.mrb[12].mxu1 }
 0x1cf   : > { %v8310_v15 = vpop.f32.mrb[13].mxu1 }
 0x1d2   : > { %v8312_v16 = vpop.f32.mrb[14].mxu1 }
 0x1d3   : > { %v8314_v17 = vpop.f32.mrb[15].mxu1 }
 0x1d6   : > { %v8316_v19 = vpop.f32.mrb[16].mxu1 }
 0x1d7   : > { %v8318_v23 = vpop.f32.mrb[17].mxu1 }
 0x1da   : > { %v8320_v25 = vpop.f32.mrb[18].mxu1 }
 0x1db   : > { %v8322_v26 = vpop.f32.mrb[19].mxu1 }
 0x1df   : > { %v6786_v32 = vpop.f32.mrb[0].mxu0 }
 0x1e0   : > { %v6952_v41 = vadd.f32 %v6786_v32, %v6506_v51  ;;  %v3634_v43 = vpop.f32.mrb[1].mxu0 }
 0x1e1   : > { %v6953_v58 = vadd.f32 %v3634_v43, %v1683_v57 }
 0x1e2   : > { %v8331_v59 = vadd.f32 %v6952_v41, %v8328_v34 }
 0x1e3   : > { %v8334_v18 = vadd.f32 %v6953_v58, %v8328_v34  ;;  %v6789_v21 = vpop.f32.mrb[2].mxu0 }
 0x1e4   : > { %v3865_v22 = vmax.f32 %v8331_v59, 0.0  ;;  %v6954_v28 = vadd.f32 %v6789_v21, %v6509_v62  ;;  %v3644_v31 = vpop.f32.mrb[3].mxu0 }
 0x1e5   : > { %v3864_v12 = vmax.f32 %v8334_v18, 0.0  ;;  %v6955_v1 = vadd.f32 %v3644_v31, %v1693_v63 }
 0x1e6   : > { %v8339_v42 = vadd.f32 %v6954_v28, %v8328_v34  ;;  %v3898_v50 = vsel %vm3896_vm1, %v3865_v22, 0.0 }
 0x1e7   : > { %v3897_v56 = vsel %vm3896_vm1, %v3864_v12, 0.0  ;;  %v8348_v52 = vadd.f32 %v6955_v1, %v8328_v34  ;;  %v6792_v55 = vpop.f32.mrb[4].mxu0 }
 0x1e8   : > { %v6956_v24 = vadd.f32 %v6792_v55, %v6512_v0  ;;  %v3654_v29 = vpop.f32.mrb[5].mxu0  ;;  %v3867_v35 = vmax.f32 %v8339_v42, 0.0  ;;  %v3899_v33 = vadd.f32 %v3898_v50, %v3897_v56 }
 0x1e9   : > { %v3866_v54 = vmax.f32 %v8348_v52, 0.0  ;;  %v6957_v27 = vadd.f32 %v3654_v29, %v1703_v3 }
 0x1ea   : > { %v8353_v36 = vadd.f32 %v6956_v24, %v8328_v34  ;;  %v3902_v11 = vsel %vm3896_vm1, %v3867_v35, 0.0 }
 0x1eb   : > { %v3900_v37 = vsel %vm3896_vm1, %v3866_v54, 0.0  ;;  %v8359_v38 = vadd.f32 %v6957_v27, %v8328_v34  ;;  %v6795_v39 = vpop.f32.mrb[6].mxu0 }
 0x1ec   : > { %v3901_v30 = vadd.f32 %v3900_v37, %v3899_v33  ;;  %v6958_v45 = vadd.f32 %v6795_v39, %v6515_v4  ;;  %v3664_v6 = vpop.f32.mrb[7].mxu0  ;;  %v3869_v53 = vmax.f32 %v8353_v36, 0.0 }
 0x1ed   : > { %v3868_v60 = vmax.f32 %v8359_v38, 0.0  ;;  %v6959_v40 = vadd.f32 %v3664_v6, %v1713_v5 }
 0x1ee   : > { %v3903_v7 = vadd.f32 %v3902_v11, %v3901_v30  ;;  %v8367_v2 = vadd.f32 %v6958_v45, %v8328_v34  ;;  %v3906_v48 = vsel %vm3896_vm1, %v3869_v53, 0.0 }
 0x1ef   : > { %v3904_v61 = vsel %vm3896_vm1, %v3868_v60, 0.0  ;;  %v8373_v20 = vadd.f32 %v6959_v40, %v8328_v34  ;;  %v6798_v49 = vpop.f32.mrb[8].mxu0 }
 0x1f0   : > { %v3905_v44 = vadd.f32 %v3904_v61, %v3903_v7  ;;  %v6960_v46 = vadd.f32 %v6798_v49, %v6518_v8  ;;  %v3674_v47 = vpop.f32.mrb[9].mxu0  ;;  %v3871_v51 = vmax.f32 %v8367_v2, 0.0 }
 0x1f1   : > { %v3870_v57 = vmax.f32 %v8373_v20, 0.0  ;;  %v6961_v62 = vadd.f32 %v3674_v47, %v1723_v9 }
 0x1f2   : > { %v3907_v63 = vadd.f32 %v3906_v48, %v3905_v44  ;;  %v8381_v0 = vadd.f32 %v6960_v46, %v8328_v34  ;;  %v3910_v9 = vsel %vm3896_vm1, %v3871_v51, 0.0 }
 0x1f3   : > { %v3908_v3 = vsel %vm3896_vm1, %v3870_v57, 0.0  ;;  %v8387_v4 = vadd.f32 %v6961_v62, %v8328_v34  ;;  %v6801_v5 = vpop.f32.mrb[10].mxu0 }
 0x1f4   : > { %v3909_v8 = vadd.f32 %v3908_v3, %v3907_v63  ;;  %v6962_v32 = vadd.f32 %v6801_v5, %v8304_v10  ;;  %v3684_v41 = vpop.f32.mrb[11].mxu0  ;;  %v3873_v43 = vmax.f32 %v8381_v0, 0.0 }
 0x1f5   : > { %v3872_v58 = vmax.f32 %v8387_v4, 0.0  ;;  %v6963_v21 = vadd.f32 %v3684_v41, %v8306_v13 }
 0x1f6   : > { %v3911_v28 = vadd.f32 %v3910_v9, %v3909_v8  ;;  %v8397_v31 = vadd.f32 %v6962_v32, %v8328_v34  ;;  %v6592_v1 = vpop.f32.mrb[20].mxu1  ;;  %v3914_v13 = vsel %vm3896_vm1, %v3873_v43, 0.0 }
 0x1f7   : > { %v3912_v10 = vsel %vm3896_vm1, %v3872_v58, 0.0  ;;  %v8403_v50 = vadd.f32 %v6963_v21, %v8328_v34  ;;  %v6804_v56 = vpop.f32.mrb[12].mxu0  ;;  %v8405_v55 = vpop.f32.mrb[21].mxu1 }
 0x1f8   : > { %v3913_v24 = vadd.f32 %v3912_v10, %v3911_v28  ;;  %v6964_v29 = vadd.f32 %v6804_v56, %v8308_v14  ;;  %v3694_v27 = vpop.f32.mrb[13].mxu0  ;;  %v3875_v33 = vmax.f32 %v8397_v31, 0.0 }
 0x1f9   : > { %v3874_v37 = vmax.f32 %v8403_v50, 0.0  ;;  %v6965_v39 = vadd.f32 %v3694_v27, %v8310_v15 }
 0x1fa   : > { %v3915_v30 = vadd.f32 %v3914_v13, %v3913_v24  ;;  %v8415_v45 = vadd.f32 %v6964_v29, %v8328_v34  ;;  %v6595_v6 = vpop.f32.mrb[22].mxu1  ;;  %v3918_v15 = vsel %vm3896_vm1, %v3875_v33, 0.0 }
 0x1fb   : > { %v3916_v14 = vsel %vm3896_vm1, %v3874_v37, 0.0  ;;  %v8421_v11 = vadd.f32 %v6965_v39, %v8328_v34  ;;  %v6807_v40 = vpop.f32.mrb[14].mxu0  ;;  %v8423_v7 = vpop.f32.mrb[23].mxu1 }
 0x1fc   : > { %v3917_v61 = vadd.f32 %v3916_v14, %v3915_v30  ;;  %v6966_v49 = vadd.f32 %v6807_v40, %v8312_v16  ;;  %v3704_v44 = vpop.f32.mrb[15].mxu0  ;;  %v3877_v46 = vmax.f32 %v8415_v45, 0.0 }
 0x1fd   : > { %v3876_v47 = vmax.f32 %v8421_v11, 0.0  ;;  %v6967_v48 = vadd.f32 %v3704_v44, %v8314_v17 }
 0x1fe   : > { %v3919_v62 = vadd.f32 %v3918_v15, %v3917_v61  ;;  %v8433_v63 = vadd.f32 %v6966_v49, %v8328_v34  ;;  %v6598_v3 = vpop.f32.mrb[24].mxu1  ;;  %v3922_v17 = vsel %vm3896_vm1, %v3877_v46, 0.0 }
 0x1ff   : > { %v3920_v16 = vsel %vm3896_vm1, %v3876_v47, 0.0  ;;  %v8439_v5 = vadd.f32 %v6967_v48, %v8328_v34  ;;  %v6810_v8 = vpop.f32.mrb[16].mxu0  ;;  %v2193_v32 = vpop.f32.mrb[25].mxu1 }
 0x200   : > { %v3921_v41 = vadd.f32 %v3920_v16, %v3919_v62  ;;  %v6968_v9 = vadd.f32 %v6810_v8, %v8316_v19  ;;  %v3714_v21 = vpop.f32.mrb[17].mxu0  ;;  %v9657_v28 = vmax.f32 %v8433_v63, 0.0  ;;  %v9743_v45 = vmax.f32 %v8433_v63, 0.0 }
 0x201   : > { %v3878_v10 = vmax.f32 %v8439_v5, 0.0  ;;  %v6969_v56 = vadd.f32 %v3714_v21, %v8318_v23 }
 0x202   : > { %v3923_v24 = vadd.f32 %v3922_v17, %v3921_v41  ;;  %v8449_v29 = vadd.f32 %v6968_v9, %v8328_v34  ;;  %v6601_v27 = vpop.f32.mrb[26].mxu1  ;;  %v3926_v23 = vsel %vm3896_vm1, %v9657_v28, 0.0 }
 0x203   : > { %v3924_v19 = vsel %vm3896_vm1, %v3878_v10, 0.0  ;;  %v8455_v13 = vadd.f32 %v6969_v56, %v8328_v34  ;;  %v6813_v39 = vpop.f32.mrb[18].mxu0  ;;  %v2203_v30 = vpop.f32.mrb[27].mxu1 }
 0x204   : > { %v3925_v14 = vadd.f32 %v3924_v19, %v3923_v24  ;;  %v6970_v40 = vadd.f32 %v6813_v39, %v8320_v25  ;;  %v3724_v61 = vpop.f32.mrb[19].mxu0  ;;  %v9644_v49 = vmax.f32 %v8449_v29, 0.0  ;;  %v9745_v63 = vmax.f32 %v8449_v29, 0.0 }
 0x205   : > { %v9647_v44 = vmax.f32 %v8455_v13, 0.0  ;;  %v6971_v15 = vadd.f32 %v3724_v61, %v8322_v26  ;;  %v9744_v5 = vmax.f32 %v8455_v13, 0.0 }
 0x206   : > { %v3927_v48 = vadd.f32 %v3926_v23, %v3925_v14  ;;  %v8465_v62 = vadd.f32 %v6970_v40, %v8328_v34  ;;  %v6604_v16 = vpop.f32.mrb[28].mxu1  ;;  %v3930_v26 = vsel %vm3896_vm1, %v9644_v49, 0.0 }
 0x207   : > { %v3928_v25 = vsel %vm3896_vm1, %v9647_v44, 0.0  ;;  %v8471_v8 = vadd.f32 %v6971_v15, %v8328_v34  ;;  %v6816_v41 = vpop.f32.mrb[20].mxu0  ;;  %v2213_v9 = vpop.f32.mrb[29].mxu1 }
 0x208   : > { %v3929_v21 = vadd.f32 %v3928_v25, %v3927_v48  ;;  %v6972_v17 = vadd.f32 %v6816_v41, %v6592_v1  ;;  %v3734_v56 = vpop.f32.mrb[21].mxu0  ;;  %v9646_v24 = vmax.f32 %v8465_v62, 0.0  ;;  %v9747_v29 = vmax.f32 %v8465_v62, 0.0 }
 0x209   : > { %v9645_v19 = vmax.f32 %v8471_v8, 0.0  ;;  %v6973_v39 = vadd.f32 %v3734_v56, %v8405_v55  ;;  %v9746_v13 = vmax.f32 %v8471_v8, 0.0 }
 0x20a   : > { %v3931_v14 = vadd.f32 %v3930_v26, %v3929_v21  ;;  %v8480_v40 = vadd.f32 %v6972_v17, %v8328_v34  ;;  %v6607_v61 = vpop.f32.mrb[30].mxu1  ;;  %v3934_v55 = vsel %vm3896_vm1, %v9646_v24, 0.0 }
 0x20b   : > { %v3932_v1 = vsel %vm3896_vm1, %v9645_v19, 0.0  ;;  %v8486_v23 = vadd.f32 %v6973_v39, %v8328_v34  ;;  %v6819_v15 = vpop.f32.mrb[22].mxu0  ;;  %v2223_v48 = vpop.f32.mrb[31].mxu1 }
 0x20c   : > { %v3933_v25 = vadd.f32 %v3932_v1, %v3931_v14  ;;  %v6974_v41 = vadd.f32 %v6819_v15, %v6595_v6  ;;  %v3744_v49 = vpop.f32.mrb[23].mxu0  ;;  %v9648_v21 = vmax.f32 %v8480_v40, 0.0  ;;  %v9749_v62 = vmax.f32 %v8480_v40, 0.0 }
 0x20d   : > { %v9649_v17 = vmax.f32 %v8486_v23, 0.0  ;;  %v6975_v56 = vadd.f32 %v3744_v49, %v8423_v7  ;;  %v9748_v8 = vmax.f32 %v8486_v23, 0.0 }
 0x20e   : > { %v3935_v26 = vadd.f32 %v3934_v55, %v3933_v25  ;;  %v8495_v19 = vadd.f32 %v6974_v41, %v8328_v34  ;;  %v3938_v44 = vsel %vm3896_vm1, %v9648_v21, 0.0 }
 0x20f   : > { %v3936_v39 = vsel %vm3896_vm1, %v9649_v17, 0.0  ;;  %v8501_v6 = vadd.f32 %v6975_v56, %v8328_v34  ;;  %v6822_v14 = vpop.f32.mrb[24].mxu0 }
 0x210   : > { %v3937_v1 = vadd.f32 %v3936_v39, %v3935_v26  ;;  %v6976_v15 = vadd.f32 %v6822_v14, %v6598_v3  ;;  %v3754_v24 = vpop.f32.mrb[25].mxu0  ;;  %v9650_v7 = vmax.f32 %v8495_v19, 0.0  ;;  %v9751_v40 = vmax.f32 %v8495_v19, 0.0 }
 0x211   : > { %v9651_v49 = vmax.f32 %v8501_v6, 0.0  ;;  %v6977_v25 = vadd.f32 %v3754_v24, %v2193_v32  ;;  %v9750_v23 = vmax.f32 %v8501_v6, 0.0 }
 0x212   : > { %v3939_v41 = vadd.f32 %v3938_v44, %v3937_v1  ;;  %v8509_v55 = vadd.f32 %v6976_v15, %v8328_v34  ;;  %v3942_v17 = vsel %vm3896_vm1, %v9650_v7, 0.0 }
 0x213   : > { %v3940_v56 = vsel %vm3896_vm1, %v9651_v49, 0.0  ;;  %v8515_v3 = vadd.f32 %v6977_v25, %v8328_v34  ;;  %v6825_v26 = vpop.f32.mrb[26].mxu0 }
 0x214   : > { %v3941_v39 = vadd.f32 %v3940_v56, %v3939_v41  ;;  %v6978_v14 = vadd.f32 %v6825_v26, %v6601_v27  ;;  %v3764_v21 = vpop.f32.mrb[27].mxu0  ;;  %v9652_v32 = vmax.f32 %v8509_v55, 0.0  ;;  %v9753_v19 = vmax.f32 %v8509_v55, 0.0 }
 0x215   : > { %v9653_v44 = vmax.f32 %v8515_v3, 0.0  ;;  %v6979_v24 = vadd.f32 %v3764_v21, %v2203_v30  ;;  %v9752_v6 = vmax.f32 %v8515_v3, 0.0 }
 0x216   : > { %v3943_v1 = vadd.f32 %v3942_v17, %v3941_v39  ;;  %v8523_v15 = vadd.f32 %v6978_v14, %v8328_v34  ;;  %v3946_v49 = vsel %vm3896_vm1, %v9652_v32, 0.0 }
 0x217   : > { %v3944_v25 = vsel %vm3896_vm1, %v9653_v44, 0.0  ;;  %v8529_v27 = vadd.f32 %v6979_v24, %v8328_v34  ;;  %v6828_v41 = vpop.f32.mrb[28].mxu0 }
 0x218   : > { %v3945_v56 = vadd.f32 %v3944_v25, %v3943_v1  ;;  %v6980_v26 = vadd.f32 %v6828_v41, %v6604_v16  ;;  %v3774_v7 = vpop.f32.mrb[29].mxu0  ;;  %v9655_v30 = vmax.f32 %v8523_v15, 0.0  ;;  %v9755_v55 = vmax.f32 %v8523_v15, 0.0 }
 0x219   : > { %v9656_v21 = vmax.f32 %v8529_v27, 0.0  ;;  %v6981_v17 = vadd.f32 %v3774_v7, %v2213_v9  ;;  %v9754_v3 = vmax.f32 %v8529_v27, 0.0 }
 0x21a   : > { %v3947_v39 = vadd.f32 %v3946_v49, %v3945_v56  ;;  %v8537_v14 = vadd.f32 %v6980_v26, %v8328_v34  ;;  %v3950_v44 = vsel %vm3896_vm1, %v9655_v30, 0.0 }
 0x21b   : > { %v3948_v24 = vsel %vm3896_vm1, %v9656_v21, 0.0  ;;  %v8543_v16 = vadd.f32 %v6981_v17, %v8328_v34  ;;  %v6831_v1 = vpop.f32.mrb[30].mxu0 }
 0x21c   : > { %v3949_v25 = vadd.f32 %v3948_v24, %v3947_v39  ;;  %v6982_v41 = vadd.f32 %v6831_v1, %v6607_v61  ;;  %v3784_v32 = vpop.f32.mrb[31].mxu0  ;;  %v3893_v9 = vmax.f32 %v8537_v14, 0.0 }
 0x21d   : > { %v9654_v7 = vmax.f32 %v8543_v16, 0.0  ;;  %v6983_v49 = vadd.f32 %v3784_v32, %v2223_v48  ;;  %v9756_v27 = vmax.f32 %v8543_v16, 0.0 }
 0x21e   : > { %v8551_v56 = vadd.f32 %v6982_v41, %v8328_v34  ;;  %v3951_v26 = vadd.f32 %v3950_v44, %v3949_v25  ;;  %v3954_v48 = vsel %vm3896_vm1, %v3893_v9, 0.0 }
 0x21f   : > { %v3952_v17 = vsel %vm3896_vm1, %v9654_v7, 0.0  ;;  %v8557_v61 = vadd.f32 %v6983_v49, %v8328_v34 }
 0x220   : > { %v3953_v39 = vadd.f32 %v3952_v17, %v3951_v26  ;;  %v3895_v1 = vmax.f32 %v8551_v56, 0.0 }
 0x221   : > { %v3894_v24 = vmax.f32 %v8557_v61, 0.0 }
 0x222   : > { %v3955_v32 = vadd.f32 %v3954_v48, %v3953_v39  ;;  %v3958_v34 = vsel %vm3896_vm1, %v3895_v1, 0.0 }
 0x223   : > { %v3956_v44 = vsel %vm3896_vm1, %v3894_v24, 0.0 }
 0x224   : > { %v3957_v25 = vadd.f32 %v3956_v44, %v3955_v32 }
 0x226   : > { %v3959_v41 = vadd.f32 %v3958_v34, %v3957_v25 }
 0x228   : > { %3960 = vadd.xlane.f32.xlu0 %v3959_v41 }
 0x2b5   : > { %v3961_v49 = vpop.xlane.xlu0 %3960 }
 0x2b6   : > { %v3962_v26 = vrot.slane %v3961_v49, 4 }
 0x2b8   : > { %v3963_v17 = vadd.f32 %v3962_v26, %v3961_v49 }
 0x2ba   : > { %v3964_v7 = vrot.slane %v3963_v17, 2 }
 0x2bc   : > { %v3965_v30 = vadd.f32 %v3964_v7, %v3963_v17 }
 0x2be   : > { %v3966_v21 = vrot.slane %v3965_v30, 1 }
 0x2c0   : > { %v3967_v28 = vadd.f32 %v3966_v21, %v3965_v30 }
 0x2c2   : > { %7211 = vpush %v3967_v28 }
 0x2f3   : > { %s7212_s22 = spop %7211 }
 0x2f4   : > { %s8570_s23 = smul.f32 6.1035156e-05, %s7212_s22  ;;  %s5461_s22 = sshll.u32 %s9823_s25, 4 }
 0x2f6   : > { %v8573_v39 = vstv %s8570_s23  ;;  %s4109_s8 = smul.f32 %s8570_s23, %s8570_s23  ;;  %s374_s23 = sadd.s32 %s5461_s22, %s5460_s21 }
 0x2f7   : > { %v8578_v48 = vsub.f32 %v3864_v12, %v8573_v39  ;;  %v8583_v32 = vsub.f32 %v3865_v22, %v8573_v39  ;;  %v8588_v28 = vsub.f32 %v3866_v54, %v8573_v39  ;;  %v8593_v30 = vsub.f32 %v3867_v35, %v8573_v39 }
 0x2f8   : > { %v8602_v59 = vsub.f32 %v3868_v60, %v8573_v39  ;;  %v8609_v42 = vsub.f32 %v3869_v53, %v8573_v39  ;;  %v8618_v38 = vsub.f32 %v3870_v57, %v8573_v39  ;;  %v8626_v7 = vsub.f32 %v3871_v51, %v8573_v39  ;;  %s4110_s9 = smul.f32 0.0, %s4109_s8  ;;  %s5462_s8 = sshll.u32 %s374_s23, 3 }
 0x2f9   : > { %v4005_v18 = vmul.f32 %v8578_v48, %v8578_v48  ;;  %v4006_v12 = vmul.f32 %v8583_v32, %v8583_v32  ;;  %v4007_v22 = vmul.f32 %v8588_v28, %v8588_v28  ;;  %v4008_v52 = vmul.f32 %v8593_v30, %v8593_v30 }
 0x2fa   : > { %v4009_v60 = vmul.f32 %v8602_v59, %v8602_v59  ;;  %v4010_v44 = vmul.f32 %v8609_v42, %v8609_v42  ;;  %v8634_v20 = vsub.f32 %v3872_v58, %v8573_v39  ;;  %v4011_v57 = vmul.f32 %v8618_v38, %v8618_v38 }
 0x2fb   : > { %v4037_v35 = vsel %vm3896_vm1, %v4005_v18, 0.0  ;;  %v4038_v54 = vsel %vm3896_vm1, %v4006_v12, 0.0  ;;  %v4040_v36 = vsel %vm3896_vm1, %v4007_v22, 0.0  ;;  %v4042_v25 = vsel %vm3896_vm1, %v4008_v52, 0.0 }
 0x2fc   : > { %v4039_v21 = vadd.f32 %v4038_v54, %v4037_v35  ;;  %v4044_v41 = vsel %vm3896_vm1, %v4009_v60, 0.0  ;;  %v8642_v2 = vsub.f32 %v3873_v43, %v8573_v39  ;;  %v4012_v51 = vmul.f32 %v8626_v7, %v8626_v7 }
 0x2fd   : > { %v4046_v26 = vsel %vm3896_vm1, %v4010_v44, 0.0  ;;  %v8650_v4 = vsub.f32 %v3874_v37, %v8573_v39  ;;  %v4013_v58 = vmul.f32 %v8634_v20, %v8634_v20  ;;  %v4048_v18 = vsel %vm3896_vm1, %v4011_v57, 0.0 }
 0x2fe   : > { %v4041_v53 = vadd.f32 %v4040_v36, %v4039_v21  ;;  %v8658_v0 = vsub.f32 %v3875_v33, %v8573_v39  ;;  %v4014_v43 = vmul.f32 %v8642_v2, %v8642_v2  ;;  %v4050_v22 = vsel %vm3896_vm1, %v4012_v51, 0.0 }
 0x2ff   : > { %v8666_v50 = vsub.f32 %v3876_v47, %v8573_v39  ;;  %v4015_v37 = vmul.f32 %v8650_v4, %v8650_v4  ;;  %v4052_v35 = vsel %vm3896_vm1, %v4013_v58, 0.0  ;;  %v8674_v31 = vsub.f32 %v3877_v46, %v8573_v39 }
 0x300   : > { %v4043_v34 = vadd.f32 %v4042_v25, %v4041_v53  ;;  %v4016_v33 = vmul.f32 %v8658_v0, %v8658_v0  ;;  %v4054_v21 = vsel %vm3896_vm1, %v4014_v43, 0.0  ;;  %v8682_v11 = vsub.f32 %v3878_v10, %v8573_v39 }
 0x301   : > { %v4017_v47 = vmul.f32 %v8666_v50, %v8666_v50  ;;  %v4056_v36 = vsel %vm3896_vm1, %v4015_v37, 0.0  ;;  %v8690_v46 = vsub.f32 %v9743_v45, %v8573_v39  ;;  %v4018_v44 = vmul.f32 %v8674_v31, %v8674_v31 }
 0x302   : > { %v4045_v49 = vadd.f32 %v4044_v41, %v4043_v34  ;;  %v4058_v25 = vsel %vm3896_vm1, %v4016_v33, 0.0  ;;  %v8698_v10 = vsub.f32 %v9744_v5, %v8573_v39  ;;  %v4019_v57 = vmul.f32 %v8682_v11, %v8682_v11 }
 0x303   : > { %v4060_v41 = vsel %vm3896_vm1, %v4017_v47, 0.0  ;;  %v8706_v51 = vsub.f32 %v9745_v63, %v8573_v39  ;;  %v8730_v33 = vsub.f32 %v9748_v8, %v8573_v39  ;;  %v8802_v15 = vsub.f32 %v3893_v9, %v8573_v39 }
 0x304   : > { %v4047_v17 = vadd.f32 %v4046_v26, %v4045_v49  ;;  %v4020_v26 = vmul.f32 %v8690_v46, %v8690_v46  ;;  %v4064_v43 = vsel %vm3896_vm1, %v4019_v57, 0.0  ;;  %v8810_v16 = vsub.f32 %v3894_v24, %v8573_v39 }
 0x305   : > { %v4022_v37 = vmul.f32 %v8706_v51, %v8706_v51  ;;  %v8818_v14 = vsub.f32 %v3895_v1, %v8573_v39  ;;  %v4034_v9 = vmul.f32 %v8802_v15, %v8802_v15 }
 0x306   : > { %v4049_v12 = vadd.f32 %v4048_v18, %v4047_v17  ;;  %v4062_v17 = vsel %vm3896_vm1, %v4018_v44, 0.0  ;;  %v8714_v18 = vsub.f32 %v9746_v13, %v8573_v39  ;;  %v4035_v61 = vmul.f32 %v8810_v16, %v8810_v16 }
 0x307   : > { %v4070_v45 = vsel %vm3896_vm1, %v4022_v37, 0.0  ;;  %v4094_v56 = vsel %vm3896_vm1, %v4034_v9, 0.0  ;;  %v5055_v9 = vld [vmem:[%s9592_s5 + $0x38] sm:$0xff] }
 0x308   : > { %v4051_v52 = vadd.f32 %v4050_v22, %v4049_v12  ;;  %v4021_v12 = vmul.f32 %v8698_v10, %v8698_v10 }
 0x30a   : > { %v4053_v54 = vadd.f32 %v4052_v35, %v4051_v52  ;;  %v8722_v52 = vsub.f32 %v9747_v29, %v8573_v39  ;;  %v4066_v35 = vsel %vm3896_vm1, %v4020_v26, 0.0 }
 0x30c   : > { %v4055_v60 = vadd.f32 %v4054_v21, %v4053_v54  ;;  %v4023_v21 = vmul.f32 %v8714_v18, %v8714_v18 }
 0x30e   : > { %v4057_v53 = vadd.f32 %v4056_v36, %v4055_v60  ;;  %v4068_v60 = vsel %vm3896_vm1, %v4021_v12, 0.0  ;;  %v8738_v36 = vsub.f32 %v9749_v62, %v8573_v39  ;;  %v4072_v5 = vsel %vm3896_vm1, %v4023_v21, 0.0 }
 0x310   : > { %v4059_v34 = vadd.f32 %v4058_v25, %v4057_v53  ;;  %v4024_v53 = vmul.f32 %v8722_v52, %v8722_v52  ;;  %v8746_v25 = vsub.f32 %v9750_v23, %v8573_v39 }
 0x312   : > { %v4061_v49 = vadd.f32 %v4060_v41, %v4059_v34  ;;  %v4025_v34 = vmul.f32 %v8730_v33, %v8730_v33  ;;  %v8754_v41 = vsub.f32 %v9751_v40, %v8573_v39  ;;  %v4074_v63 = vsel %vm3896_vm1, %v4024_v53, 0.0 }
 0x314   : > { %v4063_v58 = vadd.f32 %v4062_v17, %v4061_v49  ;;  %v4026_v49 = vmul.f32 %v8738_v36, %v8738_v36  ;;  %v8762_v17 = vsub.f32 %v9752_v6, %v8573_v39  ;;  %v4076_v13 = vsel %vm3896_vm1, %v4025_v34, 0.0 }
 0x316   : > { %v4065_v22 = vadd.f32 %v4064_v43, %v4063_v58  ;;  %v4027_v58 = vmul.f32 %v8746_v25, %v8746_v25  ;;  %v8770_v43 = vsub.f32 %v9753_v19, %v8573_v39  ;;  %v4078_v29 = vsel %vm3896_vm1, %v4026_v49, 0.0 }
 0x318   : > { %v4067_v54 = vadd.f32 %v4066_v35, %v4065_v22  ;;  %v4028_v22 = vmul.f32 %v8754_v41, %v8754_v41  ;;  %v8778_v35 = vsub.f32 %v9754_v3, %v8573_v39  ;;  %v4080_v8 = vsel %vm3896_vm1, %v4027_v58, 0.0 }
 0x31a   : > { %v4069_v47 = vadd.f32 %v4068_v60, %v4067_v54  ;;  %v4029_v54 = vmul.f32 %v8762_v17, %v8762_v17  ;;  %v8786_v60 = vsub.f32 %v9755_v55, %v8573_v39  ;;  %v4082_v62 = vsel %vm3896_vm1, %v4028_v22, 0.0 }
 0x31c   : > { %v4071_v44 = vadd.f32 %v4070_v45, %v4069_v47  ;;  %v4030_v47 = vmul.f32 %v8770_v43, %v8770_v43  ;;  %v8794_v45 = vsub.f32 %v9756_v27, %v8573_v39  ;;  %v4084_v23 = vsel %vm3896_vm1, %v4029_v54, 0.0  ;;  %v5048_v27 = vld [vmem:[%s9592_s5] sm:$0xff] }
 0x31d   : > { %v4096_v39 = vsel %vm3896_vm1, %v4035_v61, 0.0 }
 0x31e   : > { %v4073_v57 = vadd.f32 %v4072_v5, %v4071_v44  ;;  %v4031_v44 = vmul.f32 %v8778_v35, %v8778_v35  ;;  %v4032_v5 = vmul.f32 %v8786_v60, %v8786_v60  ;;  %v4033_v49 = vmul.f32 %v8794_v45, %v8794_v45 }
 0x320   : > { %v4075_v26 = vadd.f32 %v4074_v63, %v4073_v57  ;;  %v4086_v57 = vsel %vm3896_vm1, %v4030_v47, 0.0  ;;  %v4088_v63 = vsel %vm3896_vm1, %v4031_v44, 0.0  ;;  %v4090_v6 = vsel %vm3896_vm1, %v4032_v5, 0.0  ;;  %v5049_v44 = vld [vmem:[%s9592_s5 + $0x8] sm:$0xff]  ;;  %v5051_v5 = vld [vmem:[%s9592_s5 + $0x18] sm:$0xff] }
 0x321   : > { %v4092_v24 = vsel %vm3896_vm1, %v4033_v49, 0.0  ;;  %v5053_v49 = vld [vmem:[%s9592_s5 + $0x28] sm:$0xff] }
 0x322   : > { %v4077_v12 = vadd.f32 %v4076_v13, %v4075_v26 }
 0x324   : > { %v4079_v37 = vadd.f32 %v4078_v29, %v4077_v12  ;;  %v4036_v12 = vmul.f32 %v8818_v14, %v8818_v14 }
 0x326   : > { %v4081_v21 = vadd.f32 %v4080_v8, %v4079_v37  ;;  %v4098_v22 = vsel %vm3896_vm1, %v4036_v12, 0.0  ;;  %v4119_v12 = vld [vmem:[%s364_s16] sm:$0x1] }
 0x328   : > { %v4083_v53 = vadd.f32 %v4082_v62, %v4081_v21 }
 0x32a   : > { %v4085_v34 = vadd.f32 %v4084_v23, %v4083_v53  ;;  %v6932_v23 = vpack.c.bf16 %v5049_v44, %v5048_v27  ;;  %v5976_v44 = vld [vmem:[%s367_s20] ss:$0 sm:$0xff] }
 0x32c   : > { %v4087_v40 = vadd.f32 %v4086_v57, %v4085_v34  ;;  %6933 = vmatprep.subr.bf16.mxu1 %v6932_v23  ;;  %v5050_v34 = vld [vmem:[%s9592_s5 + $0x10] sm:$0xff]  ;;  %v5052_v57 = vld [vmem:[%s9592_s5 + $0x20] sm:$0xff] }
 0x32d   : > { %6935 = vmatpush3.bf16.msra.mxu1 %v6932_v23 }
 0x32e   : > { %v4089_v26 = vadd.f32 %v4088_v63, %v4087_v40  ;;  %v6936_v40 = vpack.c.bf16 %v5051_v5, %v5050_v34  ;;  %v6940_v63 = vpack.c.bf16 %v5053_v49, %v5052_v57 }
 0x330   : > { %v4091_v58 = vadd.f32 %v4090_v6, %v4089_v26  ;;  %6937 = vmatprep.subr.bf16.mxu1 %v6936_v40  ;;  %v5054_v26 = vld [vmem:[%s9592_s5 + $0x30] sm:$0xff] }
 0x331   : > { %6939 = vmatpush3.bf16.msra.mxu1 %v6936_v40  ;;  %v6944_v6 = vpack.c.bf16 %v5055_v9, %v5054_v26 }
 0x332   : > { %v4093_v13 = vadd.f32 %v4092_v24, %v4091_v58  ;;  %6941 = vmatprep.subr.bf16.mxu1 %v6940_v63  ;;  %v4123_v58 = vlaneseq  ;;  %v7300_v24 = vmov 1983009808  }
 0x334   : > { %v4095_v1 = vadd.f32 %v4094_v56, %v4093_v13  ;;  %v4124_v61 = vshrl.u32 %v4123_v58, 7  ;;  %v4265_v13 = vunpack.c.l.s4 %v7300_v24 }
 0x335   : > { %6943 = vmatpush3.bf16.msra.mxu1 %v6940_v63 }
 0x336   : > { %v4097_v19 = vadd.f32 %v4096_v39, %v4095_v1  ;;  %6945 = vmatprep.subr.bf16.mxu1 %v6944_v6  ;;  %v4125_v56 = vsub.s32 0, %v4124_v61  ;;  %v4266_v1 = vunpack.c.0.s8 %v4265_v13 }
 0x338   : > { %v4099_v29 = vadd.f32 %v4098_v22, %v4097_v19 }
 0x339   : > { %6947 = vmatpush3.bf16.msra.mxu1 %v6944_v6 }
 0x33a   : > { %4100 = vadd.xlane.f32.xlu0 %v4099_v29  ;;  %v8861_v29 = vsub.s32 %v4266_v1, %v4124_v61 }
 0x3c7   : > { %v4101_v37 = vpop.xlane.xlu0 %4100 }
 0x3c8   : > { %v4102_v3 = vrot.slane %v4101_v37, 4 }
 0x3ca   : > { %v4103_v54 = vadd.f32 %v4102_v3, %v4101_v37 }
 0x3cc   : > { %v4104_v8 = vrot.slane %v4103_v54, 2 }
 0x3ce   : > { %v4105_v21 = vadd.f32 %v4104_v8, %v4103_v54 }
 0x3d0   : > { %v4106_v55 = vrot.slane %v4105_v21, 1 }
 0x3d2   : > { %v4107_v47 = vadd.f32 %v4106_v55, %v4105_v21 }
 0x3d4   : > { %7213 = vpush %v4107_v47 }
 0x405   : > { %s7214_s10 = spop %7213 }
 0x406   : > { %s4111_s11 = sadd.f32 %s7214_s10, %s4110_s9 }
 0x408   : > { %s4114_s12 = smul.f32 6.1035156e-05, %s4111_s11 }
 0x40a   : > { %s4115_s13 = sadd.f32 1e-05, %s4114_s12 }
 0x40c   : > { %v4116_v62 = vstv %s4115_s13  ;;  %s376_s13 = scalar_lea.vmem %s9594_s7, %s5462_s8 }
 0x40d   : > { %7258 = vrsqrt.f32 %v4116_v62 }
 0x417   : > { %v7259_v53 = vpop.eup %7258 }
 0x418   : > { %7215 = vpush %v7259_v53 }
 0x449   : > { %s7216_s17 = spop %7215 }
 0x44a   : > { %v4120_v39 = vstv %s7216_s17 }
 0x44b   : > { %v4121_v19 = vmul.f32 %v4120_v39, %v4119_v12 }
 0x44d   : > { %v4126_v22 = vrot.slane %v4121_v19, %v4125_v56 }
 0x44f   : > { %v4128_v37 = vmul.f32 %v4126_v22, %v8578_v48  ;;  %v4129_v3 = vmul.f32 %v4126_v22, %v8583_v32  ;;  %v4130_v54 = vmul.f32 %v4126_v22, %v8588_v28  ;;  %v4131_v8 = vmul.f32 %v4126_v22, %v8593_v30 }
 0x450   : > { %v4132_v21 = vmul.f32 %v4126_v22, %v8602_v59  ;;  %v4133_v55 = vmul.f32 %v4126_v22, %v8609_v42  ;;  %v4134_v47 = vmul.f32 %v4126_v22, %v8618_v38  ;;  %v4135_v62 = vmul.f32 %v4126_v22, %v8626_v7 }
 0x451   : > { %v4136_v48 = vmul.f32 %v4126_v22, %v8634_v20  ;;  %v4137_v32 = vmul.f32 %v4126_v22, %v8642_v2  ;;  %v4138_v28 = vmul.f32 %v4126_v22, %v8650_v4  ;;  %v4139_v30 = vmul.f32 %v4126_v22, %v8658_v0 }
 0x452   : > { %v4140_v59 = vmul.f32 %v4126_v22, %v8666_v50  ;;  %v4141_v42 = vmul.f32 %v4126_v22, %v8674_v31  ;;  %v4142_v38 = vmul.f32 %v4126_v22, %v8682_v11  ;;  %v4143_v7 = vmul.f32 %v4126_v22, %v8690_v46 }
 0x453   : > { %v4144_v53 = vmul.f32 %v4126_v22, %v8698_v10  ;;  %v4145_v27 = vmul.f32 %v4126_v22, %v8706_v51  ;;  %v4146_v20 = vmul.f32 %v4126_v22, %v8714_v18  ;;  %v4147_v2 = vmul.f32 %v4126_v22, %v8722_v52 }
 0x454   : > { %v4148_v4 = vmul.f32 %v4126_v22, %v8730_v33  ;;  %v4149_v0 = vmul.f32 %v4126_v22, %v8738_v36  ;;  %v4150_v50 = vmul.f32 %v4126_v22, %v8746_v25  ;;  %v4151_v31 = vmul.f32 %v4126_v22, %v8754_v41 }
 0x455   : > { %v4152_v11 = vmul.f32 %v4126_v22, %v8762_v17  ;;  %v4153_v46 = vmul.f32 %v4126_v22, %v8770_v43  ;;  %v4154_v10 = vmul.f32 %v4126_v22, %v8778_v35  ;;  %v4155_v51 = vmul.f32 %v4126_v22, %v8786_v60 }
 0x456   : > { %v4156_v18 = vmul.f32 %v4126_v22, %v8794_v45  ;;  %v4157_v52 = vmul.f32 %v4126_v22, %v8802_v15  ;;  %v4158_v33 = vmul.f32 %v4126_v22, %v8810_v16  ;;  %v4159_v36 = vmul.f32 %v4126_v22, %v8818_v14 }
 0x457   : > { %v4167_v23 = vadd.f32 %v5976_v44, %v4128_v37  ;;  %v4168_v25 = vadd.f32 %v5976_v44, %v4129_v3  ;;  %v4169_v34 = vadd.f32 %v5976_v44, %v4130_v54  ;;  %v4170_v41 = vadd.f32 %v5976_v44, %v4131_v8 }
 0x458   : > { %v4171_v5 = vadd.f32 %v5976_v44, %v4132_v21  ;;  %v4172_v17 = vadd.f32 %v5976_v44, %v4133_v55  ;;  %v4173_v57 = vadd.f32 %v5976_v44, %v4134_v47  ;;  %v4174_v43 = vadd.f32 %v5976_v44, %v4135_v62 }
 0x459   : > { %v4175_v40 = vadd.f32 %v5976_v44, %v4136_v48  ;;  %v4176_v35 = vadd.f32 %v5976_v44, %v4137_v32  ;;  %v4177_v49 = vadd.f32 %v5976_v44, %v4138_v28  ;;  %v4178_v60 = vadd.f32 %v5976_v44, %v4139_v30 }
 0x45a   : > { %v4179_v63 = vadd.f32 %v5976_v44, %v4140_v59  ;;  %v4180_v45 = vadd.f32 %v5976_v44, %v4141_v42  ;;  %v4181_v26 = vadd.f32 %v5976_v44, %v4142_v38  ;;  %v4182_v15 = vadd.f32 %v5976_v44, %v4143_v7 }
 0x45b   : > { %v4183_v9 = vadd.f32 %v5976_v44, %v4144_v53  ;;  %v4184_v16 = vadd.f32 %v5976_v44, %v4145_v27  ;;  %v4185_v6 = vadd.f32 %v5976_v44, %v4146_v20  ;;  %v4186_v14 = vadd.f32 %v5976_v44, %v4147_v2 }
 0x45c   : > { %v4187_v58 = vadd.f32 %v5976_v44, %v4148_v4  ;;  %v4188_v61 = vadd.f32 %v5976_v44, %v4149_v0  ;;  %v4189_v24 = vadd.f32 %v5976_v44, %v4150_v50  ;;  %v4190_v13 = vadd.f32 %v5976_v44, %v4151_v31 }
 0x45d   : > { %v4191_v12 = vadd.f32 %v5976_v44, %v4152_v11  ;;  %v4192_v56 = vadd.f32 %v5976_v44, %v4153_v46  ;;  %v4193_v1 = vadd.f32 %v5976_v44, %v4154_v10  ;;  %v4194_v39 = vadd.f32 %v5976_v44, %v4155_v51 }
 0x45e   : > { %v4195_v19 = vadd.f32 %v5976_v44, %v4156_v18  ;;  %v4196_v22 = vadd.f32 %v5976_v44, %v4157_v52  ;;  %v4197_v37 = vadd.f32 %v5976_v44, %v4158_v33  ;;  %v4198_v3 = vadd.f32 %v5976_v44, %v4159_v36 }
 0x45f   : > { %v4199_v54 = vsel %vm3896_vm1, %v4167_v23, -inf  ;;  %v4200_v8 = vsel %vm3896_vm1, %v4169_v34, -inf  ;;  %v4202_v21 = vsel %vm3896_vm1, %v4168_v25, -inf  ;;  %v4203_v55 = vsel %vm3896_vm1, %v4170_v41, -inf }
 0x460   : > { %v4201_v47 = vmax.f32 %v4199_v54, %v4200_v8  ;;  %v4204_v62 = vmax.f32 %v4202_v21, %v4203_v55  ;;  %v4205_v48 = vsel %vm3896_vm1, %v4171_v5, -inf  ;;  %v4206_v32 = vsel %vm3896_vm1, %v4173_v57, -inf }
 0x461   : > { %v4207_v28 = vmax.f32 %v4205_v48, %v4206_v32  ;;  %v4208_v30 = vsel %vm3896_vm1, %v4172_v17, -inf  ;;  %v4209_v59 = vsel %vm3896_vm1, %v4174_v43, -inf  ;;  %v4211_v42 = vsel %vm3896_vm1, %v4175_v40, -inf }
 0x462   : > { %v4210_v38 = vmax.f32 %v4208_v30, %v4209_v59  ;;  %v4212_v7 = vsel %vm3896_vm1, %v4177_v49, -inf  ;;  %v4214_v53 = vsel %vm3896_vm1, %v4176_v35, -inf  ;;  %v4215_v27 = vsel %vm3896_vm1, %v4178_v60, -inf }
 0x463   : > { %v4213_v20 = vmax.f32 %v4211_v42, %v4212_v7  ;;  %v4216_v2 = vmax.f32 %v4214_v53, %v4215_v27  ;;  %v4217_v44 = vsel %vm3896_vm1, %v4179_v63, -inf  ;;  %v4218_v4 = vsel %vm3896_vm1, %v4181_v26, -inf }
 0x464   : > { %v4219_v0 = vmax.f32 %v4217_v44, %v4218_v4  ;;  %v4220_v50 = vsel %vm3896_vm1, %v4180_v45, -inf  ;;  %v4221_v31 = vsel %vm3896_vm1, %v4182_v15, -inf  ;;  %v4223_v11 = vsel %vm3896_vm1, %v4183_v9, -inf }
 0x465   : > { %v8916_v46 = vmax.f32 %v4220_v50, %v4221_v31  ;;  %v4224_v10 = vsel %vm3896_vm1, %v4185_v6, -inf  ;;  %v4226_v51 = vsel %vm3896_vm1, %v4184_v16, -inf  ;;  %v4227_v18 = vsel %vm3896_vm1, %v4186_v14, -inf }
 0x466   : > { %v4225_v52 = vmax.f32 %v4223_v11, %v4224_v10  ;;  %v8921_v33 = vmax.f32 %v4226_v51, %v4227_v18  ;;  %v4229_v36 = vsel %vm3896_vm1, %v4187_v58, -inf  ;;  %v4230_v23 = vsel %vm3896_vm1, %v4189_v24, -inf }
 0x467   : > { %v8925_v25 = vmax.f32 %v4229_v36, %v4230_v23  ;;  %v4232_v34 = vsel %vm3896_vm1, %v4188_v61, -inf  ;;  %v4233_v41 = vsel %vm3896_vm1, %v4190_v13, -inf  ;;  %v4235_v5 = vsel %vm3896_vm1, %v4191_v12, -inf }
 0x468   : > { %v8930_v17 = vmax.f32 %v4232_v34, %v4233_v41  ;;  %v4236_v57 = vsel %vm3896_vm1, %v4193_v1, -inf  ;;  %v4238_v43 = vsel %vm3896_vm1, %v4192_v56, -inf  ;;  %v4239_v40 = vsel %vm3896_vm1, %v4194_v39, -inf }
 0x469   : > { %v8935_v35 = vmax.f32 %v4235_v5, %v4236_v57  ;;  %v8937_v49 = vmax.f32 %v4238_v43, %v4239_v40  ;;  %v4241_v60 = vsel %vm3896_vm1, %v4195_v19, -inf  ;;  %v4242_v63 = vsel %vm3896_vm1, %v4197_v37, -inf }
 0x46a   : > { %v8941_v45 = vmax.f32 %v4241_v60, %v4242_v63  ;;  %v4244_v26 = vsel %vm3896_vm1, %v4196_v22, -inf  ;;  %v4245_v15 = vsel %vm3896_vm1, %v4198_v3, -inf  ;;  %v4263_v9 = vcombine.high %v4201_v47, %v4201_v47 }
 0x46b   : > { %v8945_v16 = vmax.f32 %v4244_v26, %v4245_v15  ;;  %v8948_v6 = vrot.slane %v4201_v47, %v8861_v29  ;;  %v4280_v14 = vcombine.high %v4204_v62, %v4204_v62  ;;  %v8951_v58 = vrot.slane %v4204_v62, %v8861_v29 }
 0x46c   : > { %v8954_v61 = vrot.slane %v4263_v9, %v8861_v29  ;;  %v4297_v24 = vcombine.high %v4207_v28, %v4207_v28  ;;  %v8957_v13 = vrot.slane %v4207_v28, %v8861_v29  ;;  %v4314_v12 = vcombine.high %v4210_v38, %v4210_v38 }
 0x46d   : > { %v4278_v56 = vcombine.high %v8948_v6, %v8948_v6  ;;  %v8962_v1 = vrot.slane %v4280_v14, %v8861_v29  ;;  %v8967_v19 = vrot.slane %v4210_v38, %v8861_v29  ;;  %v4331_v21 = vcombine.high %v4213_v20, %v4213_v20 }
 0x46e   : > { %v4279_v22 = vcombine.high %v8954_v61, %v8954_v61  ;;  %v8972_v37 = vrot.slane %v4297_v24, %v8861_v29  ;;  %v4312_v3 = vcombine.high %v8957_v13, %v8957_v13  ;;  %v8977_v54 = vrot.slane %v4314_v12, %v8861_v29 }
 0x46f   : > { %v4329_v8 = vcombine.high %v8967_v19, %v8967_v19  ;;  %v8982_v55 = vrot.slane %v4213_v20, %v8861_v29  ;;  %v4348_v47 = vcombine.high %v4216_v2, %v4216_v2  ;;  %v8989_v32 = vrot.slane %v4216_v2, %v8861_v29 }
 0x470   : > { %v4313_v62 = vcombine.high %v8972_v37, %v8972_v37  ;;  %v4365_v28 = vcombine.high %v4219_v0, %v4219_v0  ;;  %v8992_v30 = vrot.slane %v4331_v21, %v8861_v29  ;;  %v9000_v38 = vrot.slane %v4219_v0, %v8861_v29 }
 0x471   : > { %v4346_v59 = vcombine.high %v8982_v55, %v8982_v55  ;;  %v8997_v42 = vrot.slane %v4348_v47, %v8861_v29  ;;  %v4382_v27 = vcombine.high %v8916_v46, %v8916_v46  ;;  %v9011_v20 = vrot.slane %v8916_v46, %v8861_v29 }
 0x472   : > { %v9005_v53 = vrot.slane %v4365_v28, %v8861_v29  ;;  %v4347_v2 = vcombine.high %v8992_v30, %v8992_v30  ;;  %v4380_v44 = vcombine.high %v9000_v38, %v9000_v38  ;;  %v4399_v4 = vcombine.high %v4225_v52, %v4225_v52 }
 0x473   : > { %v9018_v0 = vrot.slane %v4225_v52, %v8861_v29  ;;  %v9023_v31 = vrot.slane %v4382_v27, %v8861_v29  ;;  %v4416_v46 = vcombine.high %v8921_v33, %v8921_v33  ;;  %v9036_v18 = vrot.slane %v8921_v33, %v8861_v29 }
 0x474   : > { %v4381_v50 = vcombine.high %v9005_v53, %v9005_v53  ;;  %v9030_v10 = vrot.slane %v4399_v4, %v8861_v29  ;;  %v4433_v52 = vcombine.high %v8925_v25, %v8925_v25  ;;  %v9045_v23 = vrot.slane %v8925_v25, %v8861_v29 }
 0x475   : > { %v4414_v51 = vcombine.high %v9018_v0, %v9018_v0  ;;  %v9041_v36 = vrot.slane %v4416_v46, %v8861_v29  ;;  %v4450_v34 = vcombine.high %v8930_v17, %v8930_v17  ;;  %v9051_v41 = vrot.slane %v8930_v17, %v8861_v29 }
 0x476   : > { %v9058_v57 = vrot.slane %v4433_v52, %v8861_v29  ;;  %v4467_v25 = vcombine.high %v8935_v35, %v8935_v35  ;;  %v9071_v60 = vrot.slane %v8935_v35, %v8861_v29  ;;  %v4484_v15 = vcombine.high %v8937_v49, %v8937_v49 }
 0x477   : > { %9757 = vst [vmem:[#allocation33_spill] sm:$0xff] %v9051_v41  ;;  %v9065_v40 = vrot.slane %v4450_v34, %v8861_v29  ;;  %v9082_v9 = vrot.slane %v8937_v49, %v8861_v29  ;;  %v4501_v35 = vcombine.high %v8941_v45, %v8941_v45  ;;  %v9090_v24 = vrot.slane %v8941_v45, %v8861_v29 }
 0x478   : > { %v9076_v26 = vrot.slane %v4467_v25, %v8861_v29  ;;  %v4518_v12 = vcombine.high %v8945_v16, %v8945_v16  ;;  %v9097_v47 = vrot.slane %v4484_v15, %v8861_v29  ;;  %v9103_v28 = vrot.slane %v8945_v16, %v8861_v29 }
 0x479   : > { %9758 = vst [vmem:[#allocation4_spill] sm:$0xff] %v9065_v40  ;;  %9759 = vst [vmem:[#allocation34_spill] sm:$0xff] %v9082_v9  ;;  %v9106_v27 = vrot.slane %v4501_v35, %v8861_v29  ;;  %v4600_v46 = vsel %vm4599_vm2, %v8948_v6, -inf  ;;  %v4607_v16 = vsel %vm4599_vm2, %v4278_v56, -inf  ;;  %v4614_v25 = vsel %vm4599_vm2, %v8954_v61, -inf }
 0x47a   : > { %9760 = vst [vmem:[#allocation5_spill] sm:$0xff] %v9097_v47  ;;  %9761 = vst [vmem:[#allocation35_spill] sm:$0xff] %v9103_v28  ;;  %v9111_v4 = vrot.slane %v4518_v12, %v8861_v29  ;;  %v4601_v34 = vrot.slane %v4600_v46, 4  ;;  %v4608_v29 = vrot.slane %v4607_v16, 4  ;;  %v4615_v35 = vrot.slane %v4614_v25, 4 }
 0x47b   : > { %v9129_v12 = vsel %vm4599_vm2, %v4279_v22, -inf  ;;  %v4628_v6 = vsel %vm4599_vm2, %v8951_v58, -inf  ;;  %v4656_v56 = vsel %vm4599_vm2, %v8957_v13, -inf  ;;  %v4663_v61 = vsel %vm4599_vm2, %v4312_v3, -inf }
 0x47c   : > { %9762 = vst [vmem:[#allocation6_spill] sm:$0xff] %v9111_v4  ;;  %v4602_v52 = vmax.f32 %v4600_v46, %v4601_v34  ;;  %v4609_v17 = vmax.f32 %v4607_v16, %v4608_v29  ;;  %v4616_v5 = vmax.f32 %v4614_v25, %v4615_v35  ;;  %v4629_v11 = vrot.slane %v4628_v6, 4 }
 0x47d   : > { %v4657_v7 = vrot.slane %v4656_v56, 4  ;;  %v4670_v22 = vsel %vm4599_vm2, %v8972_v37, -inf  ;;  %v4677_v46 = vsel %vm4599_vm2, %v4313_v62, -inf  ;;  %v4664_v35 = vrot.slane %v4663_v61, 4 }
 0x47e   : > { %v4603_v48 = vrot.slane %v4602_v52, 2  ;;  %v4610_v34 = vrot.slane %v4609_v17, 2  ;;  %v4617_v39 = vrot.slane %v4616_v5, 2  ;;  %v9146_v16 = vmax.f32 %v4628_v6, %v4629_v11 }
 0x47f   : > { %v4658_v25 = vmax.f32 %v4656_v56, %v4657_v7  ;;  %v4671_v49 = vrot.slane %v4670_v22, 4  ;;  %v4678_v15 = vrot.slane %v4677_v46, 4  ;;  %v4684_v21 = vsel %vm4599_vm2, %v8967_v19, -inf }
 0x480   : > { %v4604_v29 = vmax.f32 %v4602_v52, %v4603_v48  ;;  %v9148_v13 = vmax.f32 %v4609_v17, %v4610_v34  ;;  %v9150_v3 = vmax.f32 %v4616_v5, %v4617_v39  ;;  %v4665_v14 = vmax.f32 %v4663_v61, %v4664_v35 }
 0x481   : > { %v4659_v45 = vrot.slane %v4658_v25, 2  ;;  %v4672_v62 = vmax.f32 %v4670_v22, %v4671_v49  ;;  %v4679_v63 = vmax.f32 %v4677_v46, %v4678_v15  ;;  %v4685_v7 = vrot.slane %v4684_v21, 4 }
 0x482   : > { %v4605_v37 = vrot.slane %v4604_v29, 1  ;;  %v4691_v48 = vsel %vm4599_vm2, %v4329_v8, -inf  ;;  %v4666_v39 = vrot.slane %v4665_v14, 2  ;;  %v4698_v49 = vsel %vm4599_vm2, %v8977_v54, -inf }
 0x483   : > { %v4660_v6 = vmax.f32 %v4658_v25, %v4659_v45  ;;  %v4673_v5 = vrot.slane %v4672_v62, 2  ;;  %v4680_v52 = vrot.slane %v4679_v63, 2  ;;  %v4686_v34 = vmax.f32 %v4684_v21, %v4685_v7 }
 0x484   : > { %v9159_v17 = vmax.f32 %v4604_v29, %v4605_v37  ;;  %v4692_v43 = vrot.slane %v4691_v48, 4  ;;  %v4667_v15 = vmax.f32 %v4665_v14, %v4666_v39  ;;  %v4699_v22 = vrot.slane %v4698_v49, 4 }
 0x485   : > { %v4661_v56 = vrot.slane %v4660_v6, 1  ;;  %v4674_v61 = vmax.f32 %v4672_v62, %v4673_v5  ;;  %v9163_v45 = vmax.f32 %v4679_v63, %v4680_v52  ;;  %v4687_v19 = vrot.slane %v4686_v34, 2 }
 0x486   : > { %v9167_v8 = vmax.f32 %v4691_v48, %v4692_v43  ;;  %v4712_v25 = vsel %vm4599_vm2, %v8982_v55, -inf  ;;  %v4668_v29 = vrot.slane %v4667_v15, 1  ;;  %v9171_v21 = vmax.f32 %v4698_v49, %v4699_v22 }
 0x487   : > { %v9165_v46 = vmax.f32 %v4660_v6, %v4661_v56  ;;  %v4675_v35 = vrot.slane %v4674_v61, 1  ;;  %v4713_v37 = vrot.slane %v4712_v25, 4  ;;  %v9173_v7 = vmax.f32 %v4686_v34, %v4687_v19 }
 0x488   : > { %v4719_v63 = vsel %vm4599_vm2, %v4346_v59, -inf  ;;  %v4726_v43 = vsel %vm4599_vm2, %v8992_v30, -inf  ;;  %v9182_v62 = vmax.f32 %v4667_v15, %v4668_v29  ;;  %v9191_v56 = vsel %vm4599_vm2, %v4347_v2, -inf }
 0x489   : > { %v9184_v6 = vmax.f32 %v4674_v61, %v4675_v35  ;;  %v4714_v48 = vmax.f32 %v4712_v25, %v4713_v37  ;;  %v4720_v39 = vrot.slane %v4719_v63, 4  ;;  %v4727_v52 = vrot.slane %v4726_v43, 4 }
 0x48a   : > { %v4740_v55 = vsel %vm4599_vm2, %v8989_v32, -inf  ;;  %v4768_v22 = vsel %vm4599_vm2, %v9000_v38, -inf  ;;  %v4775_v30 = vsel %vm4599_vm2, %v4380_v44, -inf  ;;  %v4782_v2 = vsel %vm4599_vm2, %v9005_v53, -inf }
 0x48b   : > { %v4715_v59 = vrot.slane %v4714_v48, 2  ;;  %v4721_v34 = vmax.f32 %v4719_v63, %v4720_v39  ;;  %v4741_v15 = vrot.slane %v4740_v55, 4  ;;  %v4728_v61 = vmax.f32 %v4726_v43, %v4727_v52 }
 0x48c   : > { %v4769_v35 = vrot.slane %v4768_v22, 4  ;;  %v4776_v63 = vrot.slane %v4775_v30, 4  ;;  %v4783_v39 = vrot.slane %v4782_v2, 4  ;;  %v9210_v43 = vsel %vm4599_vm2, %v4381_v50, -inf }
 0x48d   : > { %v4716_v19 = vmax.f32 %v4714_v48, %v4715_v59  ;;  %v4722_v25 = vrot.slane %v4721_v34, 2  ;;  %v9204_v29 = vmax.f32 %v4740_v55, %v4741_v15  ;;  %v4729_v37 = vrot.slane %v4728_v61, 2 }
 0x48e   : > { %v4770_v44 = vmax.f32 %v4768_v22, %v4769_v35  ;;  %v4777_v55 = vmax.f32 %v4775_v30, %v4776_v63  ;;  %v4784_v59 = vmax.f32 %v4782_v2, %v4783_v39  ;;  %v4796_v15 = vsel %vm4599_vm2, %v9011_v20, -inf }
 0x48f   : > { %v4717_v38 = vrot.slane %v4716_v19, 1  ;;  %v9212_v52 = vmax.f32 %v4721_v34, %v4722_v25  ;;  %v9215_v48 = vmax.f32 %v4728_v61, %v4729_v37  ;;  %v4797_v50 = vrot.slane %v4796_v15, 4 }
 0x490   : > { %v4771_v5 = vrot.slane %v4770_v44, 2  ;;  %v4778_v11 = vrot.slane %v4777_v55, 2  ;;  %v4785_v33 = vrot.slane %v4784_v59, 2  ;;  %v4824_v34 = vsel %vm4599_vm2, %v9018_v0, -inf }
 0x491   : > { %v9219_v14 = vmax.f32 %v4716_v19, %v4717_v38  ;;  %v4831_v61 = vsel %vm4599_vm2, %v4414_v51, -inf  ;;  %v9228_v30 = vmax.f32 %v4796_v15, %v4797_v50  ;;  %v4825_v2 = vrot.slane %v4824_v34, 4 }
 0x492   : > { %v4772_v22 = vmax.f32 %v4770_v44, %v4771_v5  ;;  %v4832_v19 = vrot.slane %v4831_v61, 4  ;;  %v9230_v25 = vmax.f32 %v4777_v55, %v4778_v11  ;;  %v9232_v35 = vmax.f32 %v4784_v59, %v4785_v33 }
 0x493   : > { %v4838_v37 = vsel %vm4599_vm2, %v9030_v10, -inf  ;;  %v9763_v63 = vcombine.high %v9030_v10, %v9030_v10  ;;  %v4826_v51 = vmax.f32 %v4824_v34, %v4825_v2  ;;  %v4852_v33 = vsel %vm4599_vm2, %v9036_v18, -inf }
 0x494   : > { %v4773_v0 = vrot.slane %v4772_v22, 1  ;;  %v4833_v5 = vmax.f32 %v4831_v61, %v4832_v19  ;;  %v4839_v38 = vrot.slane %v4838_v37, 4  ;;  %v4880_v55 = vsel %vm4599_vm2, %v9045_v23, -inf }
 0x495   : > { %v9240_v39 = vsel %vm4599_vm2, %v9763_v63, -inf  ;;  %v4827_v10 = vrot.slane %v4826_v51, 2  ;;  %v4853_v63 = vrot.slane %v4852_v33, 4  ;;  %v4881_v49 = vrot.slane %v4880_v55, 4 }
 0x496   : > { %v9248_v59 = vmax.f32 %v4772_v22, %v4773_v0  ;;  %v4834_v15 = vrot.slane %v4833_v5, 2  ;;  %v4840_v50 = vmax.f32 %v4838_v37, %v4839_v38  ;;  %v9764_v34 = vcombine.high %v9045_v23, %v9045_v23 }
 0x497   : > { %v4894_v2 = vsel %vm4599_vm2, %v9058_v57, -inf  ;;  %v4828_v19 = vmax.f32 %v4826_v51, %v4827_v10  ;;  %v9258_v22 = vmax.f32 %v4852_v33, %v4853_v63  ;;  %v4882_v0 = vmax.f32 %v4880_v55, %v4881_v49 }
 0x498   : > { %v4887_v61 = vsel %vm4599_vm2, %v9764_v34, -inf  ;;  %v9256_v11 = vmax.f32 %v4833_v5, %v4834_v15  ;;  %v4841_v44 = vrot.slane %v4840_v50, 2  ;;  %v4895_v4 = vrot.slane %v4894_v2, 4 }
 0x499   : > { %v4888_v53 = vrot.slane %v4887_v61, 4  ;;  %v9765_v37 = vcombine.high %v9058_v57, %v9058_v57  ;;  %v4829_v23 = vrot.slane %v4828_v19, 1  ;;  %v4883_v5 = vrot.slane %v4882_v0, 2 }
 0x49a   : > { %v9267_v47 = vmax.f32 %v4840_v50, %v4841_v44  ;;  %v4896_v10 = vmax.f32 %v4894_v2, %v4895_v4  ;;  %v4908_v49 = vsel %vm4599_vm2, %v9051_v41, -inf  ;;  %v4936_v63 = vsel %vm4599_vm2, %v9071_v60, -inf }
 0x49b   : > { %v9264_v38 = vsel %vm4599_vm2, %v9765_v37, -inf  ;;  %v4889_v51 = vmax.f32 %v4887_v61, %v4888_v53  ;;  %v9272_v33 = vmax.f32 %v4828_v19, %v4829_v23  ;;  %v4909_v57 = vrot.slane %v4908_v49, 4 }
 0x49c   : > { %v4884_v37 = vmax.f32 %v4882_v0, %v4883_v5  ;;  %v4897_v40 = vrot.slane %v4896_v10, 2  ;;  %v4937_v34 = vrot.slane %v4936_v63, 4  ;;  %v9766_v53 = vcombine.high %v9071_v60, %v9071_v60 }
 0x49d   : > { %v4890_v55 = vrot.slane %v4889_v51, 2  ;;  %v9282_v50 = vmax.f32 %v4908_v49, %v4909_v57  ;;  %v4950_v2 = vsel %vm4599_vm2, %v9076_v26, -inf  ;;  %v9767_v60 = vcombine.high %v9076_v26, %v9076_v26 }
 0x49e   : > { %v4943_v4 = vsel %vm4599_vm2, %v9766_v53, -inf  ;;  %v4885_v19 = vrot.slane %v4884_v37, 1  ;;  %v9286_v23 = vmax.f32 %v4896_v10, %v4897_v40  ;;  %v4938_v15 = vmax.f32 %v4936_v63, %v4937_v34 }
 0x49f   : > { %v9280_v44 = vmax.f32 %v4889_v51, %v4890_v55  ;;  %v4944_v61 = vrot.slane %v4943_v4, 4  ;;  %v4951_v0 = vrot.slane %v4950_v2, 4  ;;  %v9293_v51 = vsel %vm4599_vm2, %v9767_v60, -inf }
 0x4a0   : > { %9768 = vst [vmem:[#allocation23_spill] sm:$0xff] %v9293_v51  ;;  %v4964_v49 = vsel %vm4599_vm2, %v9082_v9, -inf  ;;  %v9297_v55 = vmax.f32 %v4884_v37, %v4885_v19  ;;  %v4939_v57 = vrot.slane %v4938_v15, 2  ;;  %v4992_v63 = vsel %vm4599_vm2, %v9090_v24, -inf }
 0x4a1   : > { %v4945_v41 = vmax.f32 %v4943_v4, %v4944_v61  ;;  %v4952_v53 = vmax.f32 %v4950_v2, %v4951_v0  ;;  %v4965_v10 = vrot.slane %v4964_v49, 4  ;;  %v9770_v26 = vcombine.high %v9090_v24, %v9090_v24 }
 0x4a2   : > { %9769 = vst [vmem:[#allocation7_spill] sm:$0xff] %v9297_v55  ;;  %v4940_v61 = vmax.f32 %v4938_v15, %v4939_v57  ;;  %v4993_v5 = vrot.slane %v4992_v63, 4  ;;  %v5006_v19 = vsel %vm4599_vm2, %v9106_v27, -inf  ;;  %v9772_v0 = vcombine.high %v9106_v27, %v9106_v27 }
 0x4a3   : > { %v4946_v34 = vrot.slane %v4945_v41, 2  ;;  %v4999_v4 = vsel %vm4599_vm2, %v9770_v26, -inf  ;;  %v4953_v60 = vrot.slane %v4952_v53, 2  ;;  %v9308_v2 = vmax.f32 %v4964_v49, %v4965_v10 }
 0x4a4   : > { %v5000_v9 = vrot.slane %v4999_v4, 4  ;;  %v9316_v40 = vsel %vm4599_vm2, %v9772_v0, -inf  ;;  %v4941_v24 = vrot.slane %v4940_v61, 1  ;;  %v4994_v57 = vmax.f32 %v4992_v63, %v4993_v5 }
 0x4a5   : > { %v9306_v37 = vmax.f32 %v4945_v41, %v4946_v34  ;;  %9771 = vst [vmem:[#allocation24_spill] sm:$0xff] %v9308_v2  ;;  %9773 = vst [vmem:[#allocation8_spill] sm:$0xff] %v9316_v40  ;;  %v9318_v15 = vmax.f32 %v4952_v53, %v4953_v60  ;;  %v5007_v34 = vrot.slane %v5006_v19, 4  ;;  %v5020_v10 = vsel %vm4599_vm2, %v9103_v28, -inf }
 0x4a6   : > { %v5001_v26 = vmax.f32 %v4999_v4, %v5000_v9  ;;  %v9324_v2 = vmax.f32 %v4940_v61, %v4941_v24  ;;  %v4995_v27 = vrot.slane %v4994_v57, 2  ;;  %v5021_v0 = vrot.slane %v5020_v10, 4 }
 0x4a7   : > { %v5008_v55 = vmax.f32 %v5006_v19, %v5007_v34  ;;  %v4296_v53 = vcombine.high %v8962_v1, %v8962_v1  ;;  %v9774_v5 = vrot.slane %v9148_v13, 1  ;;  %v4619_v63 = vrot.slane %v9150_v3, 1 }
 0x4a8   : > { %v5002_v51 = vrot.slane %v5001_v26, 2  ;;  %v4996_v4 = vmax.f32 %v4994_v57, %v4995_v27  ;;  %v9334_v49 = vmax.f32 %v5020_v10, %v5021_v0  ;;  %v9776_v61 = vrot.slane %v9129_v12, 4 }
 0x4a9   : > { %v4613_v9 = vmax.f32 %v9148_v13, %v9774_v5  ;;  %v5009_v19 = vrot.slane %v5008_v55, 2  ;;  %v4620_v34 = vmax.f32 %v9150_v3, %v4619_v63  ;;  %v4631_v41 = vrot.slane %v9146_v16, 2 }
 0x4aa   : > { %v9332_v60 = vmax.f32 %v5001_v26, %v5002_v51  ;;  %9775 = vst [vmem:[#allocation9_spill] sm:$0xff] %v9334_v49  ;;  %v4623_v24 = vmax.f32 %v9129_v12, %v9776_v61  ;;  %v9777_v13 = vcombine.high %v8951_v58, %v8951_v58  ;;  %v4997_v57 = vrot.slane %v4996_v4, 1 }
 0x4ab   : > { %v9346_v27 = vmax.f32 %v5008_v55, %v5009_v19  ;;  %v4632_v12 = vmax.f32 %v9146_v16, %v4631_v41  ;;  %v4642_v0 = vsel %vm4599_vm2, %v8962_v1, -inf  ;;  %v4649_v3 = vsel %vm4599_vm2, %v4296_v53, -inf }
 0x4ac   : > { %v4635_v5 = vsel %vm4599_vm2, %v9777_v13, -inf  ;;  %v4624_v26 = vrot.slane %v4623_v24, 2  ;;  %v9352_v63 = vmax.f32 %v4996_v4, %v4997_v57  ;;  %v4643_v13 = vrot.slane %v4642_v0, 4 }
 0x4ad   : > { %v4636_v10 = vrot.slane %v4635_v5, 4  ;;  %v4633_v28 = vrot.slane %v4632_v12, 1  ;;  %v4650_v49 = vrot.slane %v4649_v3, 4  ;;  %v5128_v51 = vsel %vm5127_vm3, %v4613_v9, %v9159_v17 }
 0x4ae   : > { %9778 = vst [vmem:[#allocation3_spill] sm:$0xff] %v9352_v63  ;;  %v4625_v58 = vmax.f32 %v4623_v24, %v4624_v26  ;;  %v4682_v55 = vrot.slane %v9163_v45, 1  ;;  %v4644_v19 = vmax.f32 %v4642_v0, %v4643_v13  ;;  %v5130_v1 = vsel %vm5129_vm4, %v4620_v34, %v5128_v51 }
 0x4af   : > { %v4637_v61 = vmax.f32 %v4635_v5, %v4636_v10  ;;  %v4634_v53 = vmax.f32 %v4632_v12, %v4633_v28  ;;  %v4651_v4 = vmax.f32 %v4649_v3, %v4650_v49  ;;  %v9779_v5 = vrot.slane %v9173_v7, 1 }
 0x4b0   : > { %v4626_v16 = vrot.slane %v4625_v58, 1  ;;  %v4683_v24 = vmax.f32 %v9163_v45, %v4682_v55  ;;  %v4645_v17 = vrot.slane %v4644_v19, 2  ;;  %v9780_v9 = vrot.slane %v9167_v8, 2 }
 0x4b1   : > { %v4638_v41 = vrot.slane %v4637_v61, 2  ;;  %v4690_v57 = vmax.f32 %v9173_v7, %v9779_v5  ;;  %v4652_v40 = vrot.slane %v4651_v4, 2  ;;  %v4701_v0 = vrot.slane %v9171_v21, 2 }
 0x4b2   : > { %v4627_v26 = vmax.f32 %v4625_v58, %v4626_v16  ;;  %v4695_v63 = vmax.f32 %v9167_v8, %v9780_v9  ;;  %v9781_v28 = vcombine.high %v8977_v54, %v8977_v54  ;;  %v5141_v45 = vsel %vm5127_vm3, %v9182_v62, %v9165_v46 }
 0x4b3   : > { %v4639_v10 = vmax.f32 %v4637_v61, %v4638_v41  ;;  %v4646_v34 = vmax.f32 %v4644_v19, %v4645_v17  ;;  %v4653_v3 = vmax.f32 %v4651_v4, %v4652_v40  ;;  %v4702_v58 = vmax.f32 %v9171_v21, %v4701_v0 }
 0x4b4   : > { %v4705_v49 = vsel %vm4599_vm2, %v9781_v28, -inf  ;;  %v5132_v51 = vsel %vm5131_vm5, %v4627_v26, %v5130_v1  ;;  %v4696_v12 = vrot.slane %v4695_v63, 1  ;;  %v5142_v16 = vsel %vm5129_vm4, %v9184_v6, %v5141_v45 }
 0x4b5   : > { %v4640_v7 = vrot.slane %v4639_v10, 1  ;;  %v5134_v8 = vsel %vm5133_vm6, %v4634_v53, %v5132_v51  ;;  %v4706_v61 = vrot.slane %v4705_v49, 4  ;;  %v4647_v55 = vrot.slane %v4646_v34, 1 }
 0x4b6   : > { %v4697_v54 = vmax.f32 %v4695_v63, %v4696_v12  ;;  %v4654_v41 = vrot.slane %v4653_v3, 1  ;;  %v4703_v5 = vrot.slane %v4702_v58, 1  ;;  %v5143_v62 = vsel %vm5131_vm5, %v4683_v24, %v5142_v16 }
 0x4b7   : > { %v4641_v13 = vmax.f32 %v4639_v10, %v4640_v7  ;;  %v4707_v46 = vmax.f32 %v4705_v49, %v4706_v61  ;;  %v4648_v19 = vmax.f32 %v4646_v34, %v4647_v55  ;;  %v5144_v40 = vsel %vm5133_vm6, %v4690_v57, %v5143_v62 }
 0x4b8   : > { %v4364_v21 = vcombine.high %v8997_v42, %v8997_v42  ;;  %v4655_v53 = vmax.f32 %v4653_v3, %v4654_v41  ;;  %v4704_v4 = vmax.f32 %v4702_v58, %v4703_v5  ;;  %v5145_v63 = vsel %vm5135_vm7, %v4697_v54, %v5144_v40 }
 0x4b9   : > { %v5136_v1 = vsel %vm5135_vm7, %v4641_v13, %v5134_v8  ;;  %v4708_v26 = vrot.slane %v4707_v46, 2  ;;  %v9782_v10 = vrot.slane %v9212_v52, 1  ;;  %v4731_v24 = vrot.slane %v9215_v48, 1 }
 0x4ba   : > { %v5138_v6 = vsel %vm5137_vm8, %v4648_v19, %v5136_v1  ;;  %v9783_v9 = vrot.slane %v9191_v56, 4  ;;  %v5146_v49 = vsel %vm5137_vm8, %v4704_v4, %v5145_v63  ;;  %v4743_v45 = vrot.slane %v9204_v29, 2 }
 0x4bb   : > { %v4725_v17 = vmax.f32 %v9212_v52, %v9782_v10  ;;  %v5140_v0 = vsel %vm5139_vm9, %v4655_v53, %v5138_v6  ;;  %v4709_v28 = vmax.f32 %v4707_v46, %v4708_v26  ;;  %v4732_v7 = vmax.f32 %v9215_v48, %v4731_v24 }
 0x4bc   : > { %v4735_v57 = vmax.f32 %v9191_v56, %v9783_v9  ;;  %6848 = vmatprep.mubr.msk.f32.mxu1 %vm3896_vm1, %v5140_v0  ;;  %v9784_v52 = vcombine.high %v8989_v32, %v8989_v32  ;;  %v4754_v56 = vsel %vm4599_vm2, %v8997_v42, -inf  ;;  %v4744_v3 = vmax.f32 %v9204_v29, %v4743_v45 }
 0x4bd   : > { %v4710_v12 = vrot.slane %v4709_v28, 1  ;;  %v4755_v58 = vrot.slane %v4754_v56, 4  ;;  %v4761_v13 = vsel %vm4599_vm2, %v4364_v21, -inf  ;;  %v5148_v48 = vsel %vm5127_vm3, %v4725_v17, %v9219_v14 }
 0x4be   : > { %v4736_v34 = vrot.slane %v4735_v57, 2  ;;  %v4747_v51 = vsel %vm4599_vm2, %v9784_v52, -inf  ;;  %v4398_v55 = vcombine.high %v9023_v31, %v9023_v31  ;;  %v4745_v54 = vrot.slane %v4744_v3, 1 }
 0x4bf   : > { %v4748_v8 = vrot.slane %v4747_v51, 4  ;;  %v4711_v32 = vmax.f32 %v4709_v28, %v4710_v12  ;;  %v4756_v41 = vmax.f32 %v4754_v56, %v4755_v58  ;;  %v4762_v42 = vrot.slane %v4761_v13, 4 }
 0x4c0   : > { %v4737_v61 = vmax.f32 %v4735_v57, %v4736_v34  ;;  %v5149_v46 = vsel %vm5129_vm4, %v4732_v7, %v5148_v48  ;;  %v9785_v29 = vrot.slane %v9230_v25, 1  ;;  %v4746_v1 = vmax.f32 %v4744_v3, %v4745_v54 }
 0x4c1   : > { %v4749_v16 = vmax.f32 %v4747_v51, %v4748_v8  ;;  %v5147_v19 = vsel %vm5139_vm9, %v4711_v32, %v5146_v49  ;;  %v4757_v14 = vrot.slane %v4756_v41, 2  ;;  %v4763_v53 = vmax.f32 %v4761_v13, %v4762_v42 }
 0x4c2   : > { %v4738_v5 = vrot.slane %v4737_v61, 1  ;;  %v4781_v62 = vmax.f32 %v9230_v25, %v9785_v29  ;;  %6849 = vmatmul.mubr.msk.f32.vlgmr.msra.gmra.mrb[32].mxu1 %vm3896_vm1, %v5147_v19  ;;  %v4787_v4 = vrot.slane %v9232_v35, 1  ;;  %v9786_v26 = vrot.slane %v9210_v43, 4 }
 0x4c3   : > { %v4750_v40 = vrot.slane %v4749_v16, 2  ;;  %v4758_v10 = vmax.f32 %v4756_v41, %v4757_v14  ;;  %v4799_v17 = vrot.slane %v9228_v30, 2  ;;  %v9787_v25 = vcombine.high %v9011_v20, %v9011_v20 }
 0x4c4   : > { %v4739_v21 = vmax.f32 %v4737_v61, %v4738_v5  ;;  %v4791_v63 = vmax.f32 %v9210_v43, %v9786_v26  ;;  %v4764_v9 = vrot.slane %v4763_v53, 2  ;;  %v4788_v0 = vmax.f32 %v9232_v35, %v4787_v4 }
 0x4c5   : > { %v4751_v6 = vmax.f32 %v4749_v16, %v4750_v40  ;;  %v4803_v24 = vsel %vm4599_vm2, %v9787_v25, -inf  ;;  %v4759_v45 = vrot.slane %v4758_v10, 1  ;;  %v4800_v43 = vmax.f32 %v9228_v30, %v4799_v17 }
 0x4c6   : > { %v5150_v57 = vsel %vm5131_vm5, %v4739_v21, %v5149_v46  ;;  %v4792_v28 = vrot.slane %v4791_v63, 2  ;;  %v4765_v34 = vmax.f32 %v4763_v53, %v4764_v9  ;;  %v4804_v51 = vrot.slane %v4803_v24, 4 }
 0x4c7   : > { %v4752_v49 = vrot.slane %v4751_v6, 1  ;;  %v5151_v7 = vsel %vm5133_vm6, %v4746_v1, %v5150_v57  ;;  %v4810_v20 = vsel %vm4599_vm2, %v9023_v31, -inf  ;;  %v4760_v12 = vmax.f32 %v4758_v10, %v4759_v45 }
 0x4c8   : > { %v4793_v52 = vmax.f32 %v4791_v63, %v4792_v28  ;;  %v4801_v3 = vrot.slane %v4800_v43, 1  ;;  %v4811_v8 = vrot.slane %v4810_v20, 4  ;;  %v4766_v58 = vrot.slane %v4765_v34, 1 }
 0x4c9   : > { %v4753_v56 = vmax.f32 %v4751_v6, %v4752_v49  ;;  %v4805_v35 = vmax.f32 %v4803_v24, %v4804_v51  ;;  %v4817_v13 = vsel %vm4599_vm2, %v4398_v55, -inf  ;;  %v5155_v29 = vsel %vm5127_vm3, %v4781_v62, %v9248_v59 }
 0x4ca   : > { %v4794_v61 = vrot.slane %v4793_v52, 1  ;;  %v4802_v32 = vmax.f32 %v4800_v43, %v4801_v3  ;;  %v4812_v54 = vmax.f32 %v4810_v20, %v4811_v8  ;;  %v4818_v30 = vrot.slane %v4817_v13, 4 }
 0x4cb   : > { %v5152_v48 = vsel %vm5135_vm7, %v4753_v56, %v5151_v7  ;;  %v4767_v16 = vmax.f32 %v4765_v34, %v4766_v58  ;;  %v4806_v42 = vrot.slane %v4805_v35, 2  ;;  %v4432_v19 = vcombine.high %v9041_v36, %v9041_v36 }
 0x4cc   : > { %v5153_v41 = vsel %vm5137_vm8, %v4760_v12, %v5152_v48  ;;  %v4795_v5 = vmax.f32 %v4793_v52, %v4794_v61  ;;  %v4813_v31 = vrot.slane %v4812_v54, 2  ;;  %v4819_v46 = vmax.f32 %v4817_v13, %v4818_v30  ;;  %v9791_v30 = vld [vmem:[#allocation4_spill] sm:$0xff] }
 0x4cd   : > { %v5154_v55 = vsel %vm5139_vm9, %v4767_v16, %v5153_v41  ;;  %v4807_v1 = vmax.f32 %v4805_v35, %v4806_v42  ;;  %v5156_v40 = vsel %vm5129_vm4, %v4788_v0, %v5155_v29  ;;  %v9788_v14 = vrot.slane %v9256_v11, 1 }
 0x4ce   : > { %6851 = vmatprep.mubr.msk.f32.mxu1 %vm3896_vm1, %v5154_v55  ;;  %v4814_v53 = vmax.f32 %v4812_v54, %v4813_v31  ;;  %v4820_v4 = vrot.slane %v4819_v46, 2  ;;  %v5157_v26 = vsel %vm5131_vm5, %v4795_v5, %v5156_v40  ;;  %v4843_v59 = vrot.slane %v9267_v47, 1  ;;  %v9794_v40 = vld [vmem:[#allocation33_spill] sm:$0xff] }
 0x4cf   : > { %v4837_v21 = vmax.f32 %v9256_v11, %v9788_v14  ;;  %v4808_v62 = vrot.slane %v4807_v1, 1  ;;  %v5158_v63 = vsel %vm5133_vm6, %v4802_v32, %v5157_v26  ;;  %v9789_v6 = vrot.slane %v9240_v39, 4 }
 0x4d0   : > { %v4855_v17 = vrot.slane %v9258_v22, 2  ;;  %v4815_v25 = vrot.slane %v4814_v53, 1  ;;  %v4821_v24 = vmax.f32 %v4819_v46, %v4820_v4  ;;  %v4844_v11 = vmax.f32 %v9267_v47, %v4843_v59 }
 0x4d1   : > { %v4847_v10 = vmax.f32 %v9240_v39, %v9789_v6  ;;  %v9790_v9 = vcombine.high %v9036_v18, %v9036_v18  ;;  %v4809_v0 = vmax.f32 %v4807_v1, %v4808_v62  ;;  %v4866_v39 = vsel %vm4599_vm2, %v9041_v36, -inf }
 0x4d2   : > { %v4856_v49 = vmax.f32 %v9258_v22, %v4855_v17  ;;  %v4816_v7 = vmax.f32 %v4814_v53, %v4815_v25  ;;  %v4822_v43 = vrot.slane %v4821_v24, 1  ;;  %v4873_v34 = vsel %vm4599_vm2, %v4432_v19, -inf }
 0x4d3   : > { %v4859_v57 = vsel %vm4599_vm2, %v9790_v9, -inf  ;;  %v4848_v28 = vrot.slane %v4847_v10, 2  ;;  %v5159_v52 = vsel %vm5135_vm7, %v4809_v0, %v5158_v63  ;;  %v4867_v12 = vrot.slane %v4866_v39, 4 }
 0x4d4   : > { %v4860_v45 = vrot.slane %v4859_v57, 4  ;;  %v4857_v51 = vrot.slane %v4856_v49, 1  ;;  %v4823_v18 = vmax.f32 %v4821_v24, %v4822_v43  ;;  %v5160_v56 = vsel %vm5137_vm8, %v4816_v7, %v5159_v52  ;;  %v9796_v43 = vld [vmem:[#allocation7_spill] sm:$0xff] }
 0x4d5   : > { %v4849_v47 = vmax.f32 %v4847_v10, %v4848_v28  ;;  %v4874_v3 = vrot.slane %v4873_v34, 4  ;;  %v5162_v61 = vsel %vm5127_vm3, %v4837_v21, %v9272_v33  ;;  %v4868_v35 = vmax.f32 %v4866_v39, %v4867_v12  ;;  %v9797_v12 = vld [vmem:[#allocation5_spill] sm:$0xff] }
 0x4d6   : > { %v4861_v20 = vmax.f32 %v4859_v57, %v4860_v45  ;;  %v4858_v22 = vmax.f32 %v4856_v49, %v4857_v51  ;;  %v5161_v36 = vsel %vm5139_vm9, %v4823_v18, %v5160_v56  ;;  %v5163_v48 = vsel %vm5129_vm4, %v4844_v11, %v5162_v61 }
 0x4d7   : > { %v4850_v8 = vrot.slane %v4849_v47, 1  ;;  %v4875_v13 = vmax.f32 %v4873_v34, %v4874_v3  ;;  %6852 = vmatmul.mubr.msk.f32.gmra.mrb[34].mxu1 %vm3896_vm1, %v5161_v36  ;;  %v4466_v16 = vcombine.high %v9791_v30, %v9791_v30  ;;  %v9792_v41 = vrot.slane %v9280_v44, 1 }
 0x4d8   : > { %v4862_v58 = vrot.slane %v4861_v20, 2  ;;  %v4869_v42 = vrot.slane %v4868_v35, 2  ;;  %v4899_v33 = vrot.slane %v9286_v23, 1  ;;  %v9793_v46 = vrot.slane %v9264_v38, 4 }
 0x4d9   : > { %v4851_v32 = vmax.f32 %v4849_v47, %v4850_v8  ;;  %v4893_v5 = vmax.f32 %v9280_v44, %v9792_v41  ;;  %v4876_v31 = vrot.slane %v4875_v13, 2  ;;  %v4911_v1 = vrot.slane %v9282_v50, 2 }
 0x4da   : > { %v4863_v54 = vmax.f32 %v4861_v20, %v4862_v58  ;;  %v4903_v29 = vmax.f32 %v9264_v38, %v9793_v46  ;;  %v9795_v14 = vcombine.high %v9794_v40, %v9794_v40  ;;  %v4870_v53 = vmax.f32 %v4868_v35, %v4869_v42 }
 0x4db   : > { %v5164_v55 = vsel %vm5131_vm5, %v4851_v32, %v5163_v48  ;;  %v4877_v44 = vmax.f32 %v4875_v13, %v4876_v31  ;;  %v4900_v26 = vmax.f32 %v9286_v23, %v4899_v33  ;;  %v4912_v38 = vmax.f32 %v9282_v50, %v4911_v1  ;;  %v9799_v48 = vld [vmem:[#allocation23_spill] sm:$0xff] }
 0x4dc   : > { %v4864_v19 = vrot.slane %v4863_v54, 1  ;;  %v4915_v21 = vsel %vm4599_vm2, %v9795_v14, -inf  ;;  %v5165_v4 = vsel %vm5133_vm6, %v4858_v22, %v5164_v55  ;;  %v4904_v62 = vrot.slane %v4903_v29, 2 }
 0x4dd   : > { %v4916_v63 = vrot.slane %v4915_v21, 4  ;;  %v4871_v6 = vrot.slane %v4870_v53, 1  ;;  %v4878_v10 = vrot.slane %v4877_v44, 1  ;;  %v4922_v17 = vsel %vm4599_vm2, %v9791_v30, -inf  ;;  %v9801_v30 = vld [vmem:[#allocation24_spill] sm:$0xff] }
 0x4de   : > { %v4865_v59 = vmax.f32 %v4863_v54, %v4864_v19  ;;  %v4929_v25 = vsel %vm4599_vm2, %v4466_v16, -inf  ;;  %v4905_v11 = vmax.f32 %v4903_v29, %v4904_v62  ;;  %v4913_v9 = vrot.slane %v4912_v38, 1  ;;  %v9802_v29 = vld [vmem:[#allocation34_spill] sm:$0xff] }
 0x4df   : > { %v4917_v57 = vmax.f32 %v4915_v21, %v4916_v63  ;;  %v4872_v0 = vmax.f32 %v4870_v53, %v4871_v6  ;;  %v4879_v28 = vmax.f32 %v4877_v44, %v4878_v10  ;;  %v4923_v23 = vrot.slane %v4922_v17, 4 }
 0x4e0   : > { %v5166_v24 = vsel %vm5135_vm7, %v4865_v59, %v5165_v4  ;;  %v4930_v49 = vrot.slane %v4929_v25, 4  ;;  %v4906_v45 = vrot.slane %v4905_v11, 1  ;;  %v4914_v7 = vmax.f32 %v4912_v38, %v4913_v9  ;;  %v9804_v9 = vld [vmem:[#allocation6_spill] sm:$0xff] }
 0x4e1   : > { %v4918_v50 = vrot.slane %v4917_v57, 2  ;;  %v5169_v39 = vsel %vm5127_vm3, %v4893_v5, %v9796_v43  ;;  %v5167_v34 = vsel %vm5137_vm8, %v4872_v0, %v5166_v24  ;;  %v4924_v52 = vmax.f32 %v4922_v17, %v4923_v23 }
 0x4e2   : > { %v4931_v47 = vmax.f32 %v4929_v25, %v4930_v49  ;;  %v5170_v51 = vsel %vm5129_vm4, %v4900_v26, %v5169_v39  ;;  %v5168_v20 = vsel %vm5139_vm9, %v4879_v28, %v5167_v34  ;;  %v4907_v18 = vmax.f32 %v4905_v11, %v4906_v45 }
 0x4e3   : > { %v4919_v56 = vmax.f32 %v4917_v57, %v4918_v50  ;;  %v4500_v3 = vcombine.high %v9797_v12, %v9797_v12  ;;  %6854 = vmatprep.mubr.msk.f32.mxu1 %vm3896_vm1, %v5168_v20  ;;  %v4925_v8 = vrot.slane %v4924_v52, 2  ;;  %v9798_v58 = vrot.slane %v9306_v37, 1 }
 0x4e4   : > { %v4932_v22 = vrot.slane %v4931_v47, 2  ;;  %v4955_v36 = vrot.slane %v9318_v15, 1  ;;  %v5171_v13 = vsel %vm5131_vm5, %v4907_v18, %v5170_v51  ;;  %v9800_v32 = vrot.slane %v9799_v48, 4 }
 0x4e5   : > { %v4949_v61 = vmax.f32 %v9306_v37, %v9798_v58  ;;  %v4920_v35 = vrot.slane %v4919_v56, 1  ;;  %v4967_v16 = vrot.slane %v9801_v30, 2  ;;  %v4926_v41 = vmax.f32 %v4924_v52, %v4925_v8 }
 0x4e6   : > { %v4959_v54 = vmax.f32 %v9799_v48, %v9800_v32  ;;  %v4933_v5 = vmax.f32 %v4931_v47, %v4932_v22  ;;  %v5172_v42 = vsel %vm5133_vm6, %v4914_v7, %v5171_v13  ;;  %v4956_v31 = vmax.f32 %v9318_v15, %v4955_v36  ;;  %v9806_v47 = vld [vmem:[#allocation8_spill] sm:$0xff] }
 0x4e7   : > { %v4921_v33 = vmax.f32 %v4919_v56, %v4920_v35  ;;  %v4968_v37 = vmax.f32 %v9801_v30, %v4967_v16  ;;  %v9803_v19 = vcombine.high %v9802_v29, %v9802_v29  ;;  %v4927_v1 = vrot.slane %v4926_v41, 1 }
 0x4e8   : > { %v4960_v46 = vrot.slane %v4959_v54, 2  ;;  %v4934_v40 = vrot.slane %v4933_v5, 1  ;;  %v4978_v21 = vsel %vm4599_vm2, %v9797_v12, -inf  ;;  %v4985_v38 = vsel %vm4599_vm2, %v4500_v3, -inf  ;;  %v9808_v3 = vld [vmem:[#allocation9_spill] sm:$0xff] }
 0x4e9   : > { %v4971_v55 = vsel %vm4599_vm2, %v9803_v19, -inf  ;;  %v5173_v53 = vsel %vm5135_vm7, %v4921_v33, %v5172_v42  ;;  %v4969_v4 = vrot.slane %v4968_v37, 1  ;;  %v4979_v15 = vrot.slane %v4978_v21, 4 }
 0x4ea   : > { %v4972_v14 = vrot.slane %v4971_v55, 4  ;;  %v4961_v44 = vmax.f32 %v4959_v54, %v4960_v46  ;;  %v4928_v26 = vmax.f32 %v4926_v41, %v4927_v1  ;;  %v4935_v59 = vmax.f32 %v4933_v5, %v4934_v40  ;;  %v9811_v40 = vld [vmem:[#allocation3_spill] sm:$0xff] }
 0x4eb   : > { %v4970_v6 = vmax.f32 %v4968_v37, %v4969_v4  ;;  %v4980_v10 = vmax.f32 %v4978_v21, %v4979_v15  ;;  %v4986_v17 = vrot.slane %v4985_v38, 4  ;;  %v5176_v11 = vsel %vm5127_vm3, %v4949_v61, %v9324_v2  ;;  %v9809_v61 = vld [vmem:[#allocation35_spill] sm:$0xff] }
 0x4ec   : > { %v4973_v62 = vmax.f32 %v4971_v55, %v4972_v14  ;;  %v4962_v63 = vrot.slane %v4961_v44, 1  ;;  %v5174_v25 = vsel %vm5137_vm8, %v4928_v26, %v5173_v53  ;;  %v4534_v57 = vcombine.high %v9804_v9, %v9804_v9 }
 0x4ed   : > { %v5175_v0 = vsel %vm5139_vm9, %v4935_v59, %v5174_v25  ;;  %v4981_v23 = vrot.slane %v4980_v10, 2  ;;  %v4987_v49 = vmax.f32 %v4985_v38, %v4986_v17  ;;  %v5177_v7 = vsel %vm5129_vm4, %v4956_v31, %v5176_v11 }
 0x4ee   : > { %v4974_v24 = vrot.slane %v4973_v62, 2  ;;  %v4963_v28 = vmax.f32 %v4961_v44, %v4962_v63  ;;  %6855 = vmatmul.mubr.msk.f32.gmra.mrb[36].mxu1 %vm3896_vm1, %v5175_v0  ;;  %v9805_v50 = vrot.slane %v9332_v60, 1  ;;  %v5011_v39 = vrot.slane %v9346_v27, 1 }
 0x4ef   : > { %v4982_v2 = vmax.f32 %v4980_v10, %v4981_v23  ;;  %v4988_v34 = vrot.slane %v4987_v49, 2  ;;  %v9807_v51 = vrot.slane %v9806_v47, 4  ;;  %v5023_v8 = vrot.slane %v9808_v3, 2 }
 0x4f0   : > { %v4975_v45 = vmax.f32 %v4973_v62, %v4974_v24  ;;  %v5005_v43 = vmax.f32 %v9332_v60, %v9805_v50  ;;  %v5178_v52 = vsel %vm5131_vm5, %v4963_v28, %v5177_v7  ;;  %v5012_v12 = vmax.f32 %v9346_v27, %v5011_v39 }
 0x4f1   : > { %v5015_v20 = vmax.f32 %v9806_v47, %v9807_v51  ;;  %v5179_v56 = vsel %vm5133_vm6, %v4970_v6, %v5178_v52  ;;  %v4983_v22 = vrot.slane %v4982_v2, 1  ;;  %v4989_v58 = vmax.f32 %v4987_v49, %v4988_v34  ;;  %v5977_v49 = vld [vmem:[%s9593_s6] ss:$0 sm:$0xff] }
 0x4f2   : > { %v4976_v18 = vrot.slane %v4975_v45, 1  ;;  %v9810_v36 = vcombine.high %v9809_v61, %v9809_v61  ;;  %v5024_v48 = vmax.f32 %v9808_v3, %v5023_v8  ;;  %v5034_v54 = vsel %vm4599_vm2, %v9804_v9, -inf }
 0x4f3   : > { %v5016_v60 = vrot.slane %v5015_v20, 2  ;;  %v4984_v30 = vmax.f32 %v4982_v2, %v4983_v22  ;;  %v4990_v16 = vrot.slane %v4989_v58, 1  ;;  %v5035_v41 = vrot.slane %v5034_v54, 4 }
 0x4f4   : > { %v5027_v35 = vsel %vm4599_vm2, %v9810_v36, -inf  ;;  %v4977_v13 = vmax.f32 %v4975_v45, %v4976_v18  ;;  %v5025_v42 = vrot.slane %v5024_v48, 1  ;;  %v5041_v33 = vsel %vm4599_vm2, %v4534_v57, -inf }
 0x4f5   : > { %v5028_v32 = vrot.slane %v5027_v35, 4  ;;  %v5017_v27 = vmax.f32 %v5015_v20, %v5016_v60  ;;  %v4991_v46 = vmax.f32 %v4989_v58, %v4990_v16  ;;  %v5036_v19 = vmax.f32 %v5034_v54, %v5035_v41 }
 0x4f6   : > { %v5180_v5 = vsel %vm5135_vm7, %v4977_v13, %v5179_v56  ;;  %v5042_v1 = vrot.slane %v5041_v33, 4  ;;  %v5183_v14 = vsel %vm5127_vm3, %v5005_v43, %v9811_v40  ;;  %v5026_v15 = vmax.f32 %v5024_v48, %v5025_v42 }
 0x4f7   : > { %v5029_v31 = vmax.f32 %v5027_v35, %v5028_v32  ;;  %v5181_v37 = vsel %vm5137_vm8, %v4984_v30, %v5180_v5  ;;  %v5018_v29 = vrot.slane %v5017_v27, 1  ;;  %v5037_v44 = vrot.slane %v5036_v19, 2 }
 0x4f8   : > { %v5182_v21 = vsel %vm5139_vm9, %v4991_v46, %v5181_v37  ;;  %v5184_v4 = vsel %vm5129_vm4, %v5012_v12, %v5183_v14  ;;  %v5043_v59 = vmax.f32 %v5041_v33, %v5042_v1 }
 0x4f9   : > { %v5030_v55 = vrot.slane %v5029_v31, 2  ;;  %v5019_v53 = vmax.f32 %v5017_v27, %v5018_v29  ;;  %6857 = vmatprep.mubr.msk.f32.mxu1 %vm3896_vm1, %v5182_v21  ;;  %v5038_v62 = vmax.f32 %v5036_v19, %v5037_v44 }
 0x4fa   : > { %v5044_v6 = vrot.slane %v5043_v59, 2 }
 0x4fb   : > { %v5031_v26 = vmax.f32 %v5029_v31, %v5030_v55  ;;  %v5185_v38 = vsel %vm5131_vm5, %v5019_v53, %v5184_v4  ;;  %v5039_v17 = vrot.slane %v5038_v62, 1 }
 0x4fc   : > { %v5186_v10 = vsel %vm5133_vm6, %v5026_v15, %v5185_v38  ;;  %v5045_v24 = vmax.f32 %v5043_v59, %v5044_v6 }
 0x4fd   : > { %v5032_v63 = vrot.slane %v5031_v26, 1  ;;  %v5040_v11 = vmax.f32 %v5038_v62, %v5039_v17 }
 0x4fe   : > { %v5046_v9 = vrot.slane %v5045_v24, 1 }
 0x4ff   : > { %v5033_v25 = vmax.f32 %v5031_v26, %v5032_v63 }
 0x500   : > { %v5047_v28 = vmax.f32 %v5045_v24, %v5046_v9 }
 0x501   : > { %v5187_v57 = vsel %vm5135_vm7, %v5033_v25, %v5186_v10 }
 0x502   : > { %v5188_v0 = vsel %vm5137_vm8, %v5040_v11, %v5187_v57 }
 0x503   : > { %v5189_v23 = vsel %vm5139_vm9, %v5047_v28, %v5188_v0 }
 0x504   : > { %6858 = vmatmul.mubr.msk.f32.gmra.mrb[38].mxu1 %vm3896_vm1, %v5189_v23 }
 0x595   : > { %v6850_v45 = vpop.f32.mrb[32].mxu1 }
 0x596   : > { %v5278_v7 = vadd.f32 %v6850_v45, %v5977_v49  ;;  %v5272_v50 = vpop.f32.mrb[33].mxu1 }
 0x597   : > { %v5273_v43 = vadd.f32 %v5977_v49, %v5272_v50 }
 0x598   : > { %5312 = vst.msk [vmem:[%s376_s13 + $0x8] sm:$0xff] %vm3896_vm1, %v5278_v7 }
 0x599   : > { %5311 = vst.msk [vmem:[%s376_s13] sm:$0xff] %vm3896_vm1, %v5273_v43 }
 0x5aa   : > { %v6853_v39 = vpop.f32.mrb[34].mxu1 }
 0x5ab   : > { %v5288_v2 = vadd.f32 %v6853_v39, %v5977_v49  ;;  %v5282_v34 = vpop.f32.mrb[35].mxu1 }
 0x5ac   : > { %v5283_v52 = vadd.f32 %v5977_v49, %v5282_v34 }
 0x5ad   : > { %5314 = vst.msk [vmem:[%s376_s13 + $0x18] sm:$0xff] %vm3896_vm1, %v5288_v2 }
 0x5ae   : > { %5313 = vst.msk [vmem:[%s376_s13 + $0x10] sm:$0xff] %vm3896_vm1, %v5283_v52 }
 0x5c1   : > { %v6856_v47 = vpop.f32.mrb[36].mxu1 }
 0x5c2   : > { %v5298_v51 = vadd.f32 %v6856_v47, %v5977_v49  ;;  %v5292_v20 = vpop.f32.mrb[37].mxu1 }
 0x5c3   : > { %v5293_v18 = vadd.f32 %v5977_v49, %v5292_v20 }
 0x5c4   : > { %5316 = vst.msk [vmem:[%s376_s13 + $0x28] sm:$0xff] %vm3896_vm1, %v5298_v51 }
 0x5c5   : > { %5315 = vst.msk [vmem:[%s376_s13 + $0x20] sm:$0xff] %vm3896_vm1, %v5293_v18 }
 0x5d7   : > { %v6859_v56 = vpop.f32.mrb[38].mxu1 }
 0x5d8   : > { %v5308_v12 = vadd.f32 %v6859_v56, %v5977_v49  ;;  %v5302_v3 = vpop.f32.mrb[39].mxu1 }
 0x5d9   : > { %v5303_v8 = vadd.f32 %v5977_v49, %v5302_v3 }
 0x5da   : > { %5318 = vst.msk [vmem:[%s376_s13 + $0x38] sm:$0xff] %vm3896_vm1, %v5308_v12 }
 0x5db   : > { %5317 = vst.msk [vmem:[%s376_s13 + $0x30] sm:$0xff] %vm3896_vm1, %v5303_v8 }
 0x5dc PF: > { %s17_s28 = sadd.s32 1, %s7298_s28   ;;  %s9812_s24 = smov %s7290_s26 }
 0x5dd   : > { %p14_p7 = scmp.ge.s32.totalorder %s17_s28, 6   ;;  %s9813_s25 = smov %s7294_s27 }
 0x5de   : > { %s9814_s26 = smov %s9817_s29  ;;  %s9815_s27 = smov %s9821_s30 }
 0x5df   :  { %16 = sbr.rel (!%p14_p7) target bundleno = 3 (0x3), region = 100 }

</bundles_post_ra>
